<compile_context>
chip_gen: v7x
topology: tpu7x:2x2x1
jax: 0.10.0
libtpu: 0.0.40
codegen_flags: <defaults>
</compile_context>

<pallas_src>
import functools

import numpy as np
import jax
import jax.numpy as jnp
from jax.experimental import pallas as pl
from jax.experimental.pallas import tpu as pltpu

NUM_CLASSES = 10      # original module: int(sys.argv[1])
LANE = 128            # lane-dense output width for conv + FC layers
TB = 8                # images folded into the matmul M dimension per conv grid step


def _round_up(x, m):
    return (x + m - 1) // m * m


# ---------------------------------------------------------------------------
# Pallas kernels
# ---------------------------------------------------------------------------
def _conv_relu_pool_kernel(xe_ref, xo_ref, w_ref, b_ref, o_ref, acc_ref, *, k, m, tb, nh):
    """Fused VALID conv(kxk, stride 1) + bias + ReLU + 2x2/2 max-pool for TB images.

    xe_ref/xo_ref : [1, H2*TB, K]   even / odd input rows, flat rows ordered (row, image)
    w_ref         : [k, K, 2*nh]    per-row-tap block-Toeplitz weights;
                                    lanes [0,nh) = even conv cols, [nh,2nh) = odd conv cols
    b_ref         : [1, nh]         bias tiled across pooled output columns (zero padded)
    o_ref         : [1, m, nh]      m = oh2*TB pooled rows, ordered (pooled_row, image)
    acc_ref       : VMEM [m, 2*nh] f32 accumulator scratch (keeps vreg pressure low)
    """
    pooled = None
    for r_par in range(2):                      # conv-output row within the pool window
        for di in range(k):                     # conv kernel row tap
            s = r_par + di                      # input image-row offset of this tap
            x_src = xe_ref if s % 2 == 0 else xo_ref
            start = (s // 2) * tb               # sublane-aligned (tb multiple of 8)
            xs = x_src[0, start:start + m, :]   # [m, K], contiguous
            contrib = jnp.dot(xs, w_ref[di], preferred_element_type=jnp.float32)
            if di == 0:
                acc_ref[...] = contrib
            else:
                acc_ref[...] = acc_ref[...] + contrib
        acc = acc_ref[...]
        half = jnp.maximum(acc[:, :nh], acc[:, nh:])          # pool over column parity
        pooled = half if pooled is None else jnp.maximum(pooled, half)
    # shared bias + monotone ReLU commute with the pool max.
    o_ref[0] = jnp.maximum(pooled + b_ref[...], 0.0).astype(o_ref.dtype)


def _fused_mlp_kernel(x_ref, w1_ref, b1_ref, w2_ref, b2_ref, w3_ref, b3_ref, o_ref):
    """o = relu(relu(x@W1+b1)@W2+b2)@W3+b3 with all N padded to 128, K lane-dense."""
    h = jnp.dot(x_ref[...], w1_ref[...], preferred_element_type=jnp.float32) + b1_ref[...]
    h = jnp.maximum(h, 0.0)
    h = jnp.dot(h, w2_ref[...], preferred_element_type=jnp.float32) + b2_ref[...]
    h = jnp.maximum(h, 0.0)
    o_ref[...] = (jnp.dot(h, w3_ref[...], preferred_element_type=jnp.float32)
                  + b3_ref[...]).astype(o_ref.dtype)


# ---------------------------------------------------------------------------
# Pallas wrappers
# ---------------------------------------------------------------------------
def conv_relu_pool(x_even, x_odd, w, b, *, oh2, tb):
    """x_even/x_odd: [T, H2*tb, K] -> pooled activation [T, oh2*tb, 128]."""
    T, rows, K = x_even.shape
    k, kdim, n2 = w.shape
    assert kdim == K
    nh = n2 // 2
    m = oh2 * tb
    kern = functools.partial(_conv_relu_pool_kernel, k=k, m=m, tb=tb, nh=nh)
    return pl.pallas_call(
        kern,
        out_shape=jax.ShapeDtypeStruct((T, m, nh), jnp.float32),
        grid_spec=pltpu.PrefetchScalarGridSpec(
            num_scalar_prefetch=0,
            grid=(T,),
            in_specs=[
                pl.BlockSpec((1, rows, K), lambda t: (t, 0, 0)),
                pl.BlockSpec((1, rows, K), lambda t: (t, 0, 0)),
                pl.BlockSpec((k, K, n2), lambda t: (0, 0, 0)),   # weights stay resident
                pl.BlockSpec((1, nh), lambda t: (0, 0)),
            ],
            out_specs=pl.BlockSpec((1, m, nh), lambda t: (t, 0, 0)),
            scratch_shapes=[pltpu.VMEM((m, n2), jnp.float32)],
        ),
        compiler_params=pltpu.CompilerParams(dimension_semantics=("parallel",)),
    )(x_even, x_odd, w, b)


def fused_mlp(x, w1, b1, w2, b2, w3, b3):
    """x: [B, 640] -> [B, 128] (padded lanes; caller slices NUM_CLASSES)."""
    B, K = x.shape
    n3 = w3.shape[1]
    tm = min(512, _round_up(B, 8))
    mp = _round_up(B, tm)
    if mp != B:
        x = jnp.pad(x, ((0, mp - B), (0, 0)))
    out = pl.pallas_call(
        _fused_mlp_kernel,
        out_shape=jax.ShapeDtypeStruct((mp, n3), jnp.float32),
        grid=(mp // tm,),
        in_specs=[
            pl.BlockSpec((tm, K), lambda i: (i, 0)),
            pl.BlockSpec(w1.shape, lambda i: (0, 0)),
            pl.BlockSpec(b1.shape, lambda i: (0, 0)),
            pl.BlockSpec(w2.shape, lambda i: (0, 0)),
            pl.BlockSpec(b2.shape, lambda i: (0, 0)),
            pl.BlockSpec(w3.shape, lambda i: (0, 0)),
            pl.BlockSpec(b3.shape, lambda i: (0, 0)),
        ],
        out_specs=pl.BlockSpec((tm, n3), lambda i: (i, 0)),
        compiler_params=pltpu.CompilerParams(dimension_semantics=("parallel",)),
    )(x, w1, b1, w2, b2, w3, b3)
    return out[:B]


# ---------------------------------------------------------------------------
# One-time weight preparation (done at init, outside the jitted forward)
# ---------------------------------------------------------------------------
def _build_conv_tap_weights(w_oihw, b, img_w, kdim, k=5, lane=LANE):
    """Block-Toeplitz per-row-tap matrices for conv-as-matmul on a [H, W*Cin]-folded
    activation, with even/odd output-column halves concatenated along N (each padded
    to `lane`).  Returns (W_taps [k, kdim, 2*lane], bias_tiled [1, lane])."""
    w = np.asarray(w_oihw, np.float32)          # [Cout, Cin, k, k]
    bias = np.asarray(b, np.float32)
    cout, cin = w.shape[0], w.shape[1]
    ow = img_w - k + 1
    assert ow % 2 == 0, "output width must be even for 2x2/2 pooling"
    ow2 = ow // 2
    assert ow2 * cout <= lane and img_w * cin <= kdim
    wt = np.zeros((k, kdim, 2 * lane), np.float32)
    for di in range(k):
        for dj in range(k):
            blk = w[:, :, di, dj].T             # [Cin, Cout]
            for wp in range(ow2):               # pooled output column
                for c_par in range(2):          # conv output column 2*wp + c_par
                    row0 = (2 * wp + c_par + dj) * cin
                    col0 = c_par * lane + wp * cout
                    wt[di, row0:row0 + cin, col0:col0 + cout] = blk
    b_t = np.zeros((1, lane), np.float32)
    b_t[0, :ow2 * cout] = np.tile(bias, ow2)
    return jnp.asarray(wt), jnp.asarray(b_t)


def _build_fc_weights(p):
    c2, hh, ww = 16, 5, 5
    lane = LANE
    kin = hh * lane                              # 640: conv2 rows x padded lanes

    def pad(mat, rows, cols):
        out = np.zeros((rows, cols), np.float32)
        out[:mat.shape[0], :mat.shape[1]] = mat
        return out

    # Our flatten order is (row, pooled_col*16 + chan) over the padded 128 lanes;
    # PyTorch's view(-1, 400) is NCHW (chan, row, col).  Fold the permutation and the
    # zero-padded lanes/rows into fc1's weight.
    fc1_w = np.asarray(p["fc1_w"], np.float32)   # [120, 400]
    w1 = np.zeros((kin, lane), np.float32)
    for h in range(hh):
        for wcol in range(ww):
            for c in range(c2):
                f = h * lane + wcol * c2 + c
                orig = c * (hh * ww) + h * ww + wcol
                w1[f, :fc1_w.shape[0]] = fc1_w[:, orig]
    w2 = pad(np.asarray(p["fc2_w"], np.float32).T, lane, lane)
    w3 = pad(np.asarray(p["fc3_w"], np.float32).T, lane, lane)
    return dict(
        w1=jnp.asarray(w1),
        b1=jnp.asarray(pad(np.asarray(p["fc1_b"], np.float32).reshape(1, -1), 1, lane)),
        w2=jnp.asarray(w2),
        b2=jnp.asarray(pad(np.asarray(p["fc2_b"], np.float32).reshape(1, -1), 1, lane)),
        w3=jnp.asarray(w3),
        b3=jnp.asarray(pad(np.asarray(p["fc3_b"], np.float32).reshape(1, -1), 1, lane)),
    )


def prepare_kernel_params(p):
    # conv1: raw input folded to 32*3 = 96 lanes; conv2: conv1's padded 128-lane output.
    c1_w, c1_b = _build_conv_tap_weights(p["conv1_w"], p["conv1_b"], img_w=32, kdim=96)
    c2_w, c2_b = _build_conv_tap_weights(p["conv2_w"], p["conv2_b"], img_w=14, kdim=LANE)
    kp = dict(c1_w=c1_w, c1_b=c1_b, c2_w=c2_w, c2_b=c2_b)
    kp.update(_build_fc_weights(p))
    return kp


# ---------------------------------------------------------------------------
# Parameters (deterministic synthetic init, PyTorch layouts)
# ---------------------------------------------------------------------------
def init_params(key):
    ks = jax.random.split(key, 10)
    scale = 0.1

    def nrm(k, shape):
        return (scale * jax.random.normal(k, shape)).astype(jnp.float32)

    return {
        "conv1_w": nrm(ks[0], (6, 3, 5, 5)),      # [out_c, in_c, kh, kw]
        "conv1_b": nrm(ks[1], (6,)),
        "conv2_w": nrm(ks[2], (16, 6, 5, 5)),
        "conv2_b": nrm(ks[3], (16,)),
        "fc1_w": nrm(ks[4], (120, 16 * 5 * 5)),   # [out, in]
        "fc1_b": nrm(ks[5], (120,)),
        "fc2_w": nrm(ks[6], (84, 120)),
        "fc2_b": nrm(ks[7], (84,)),
        "fc3_w": nrm(ks[8], (NUM_CLASSES, 84)),
        "fc3_b": nrm(ks[9], (NUM_CLASSES,)),
    }


# ---------------------------------------------------------------------------
# Forward pass (mirrors Net.forward)
# ---------------------------------------------------------------------------
@jax.jit
def net_forward(kp, x_nchw):
    B, C, H, W = x_nchw.shape
    assert (C, H, W) == (3, 32, 32), "Net expects 3x32x32 inputs (16*5*5 flatten)"
    Bp = _round_up(B, TB)
    T = Bp // TB

    x = jnp.transpose(x_nchw, (0, 2, 3, 1)).reshape(B, 32, 32 * 3)      # [B,32,96]
    if Bp != B:
        x = jnp.pad(x, ((0, Bp - B), (0, 0), (0, 0)))
    # Per batch tile: rows-major, image-minor layout so M = oh2*TB per matmul.
    x = x.reshape(T, TB, 32, 96).transpose(0, 2, 1, 3)                  # [T,32,TB,96]
    xe = x[:, 0::2].reshape(T, 16 * TB, 96)
    xo = x[:, 1::2].reshape(T, 16 * TB, 96)

    y1 = conv_relu_pool(xe, xo, kp["c1_w"], kp["c1_b"], oh2=14, tb=TB)  # [T,14*TB,128]
    # TODO(synk): emit even/odd pooled-row outputs directly from the conv kernel to
    # drop this XLA strided split (one extra HBM pass over a small activation).
    y1 = y1.reshape(T, 14, TB, LANE)
    y1e = y1[:, 0::2].reshape(T, 7 * TB, LANE)
    y1o = y1[:, 1::2].reshape(T, 7 * TB, LANE)

    y2 = conv_relu_pool(y1e, y1o, kp["c2_w"], kp["c2_b"], oh2=5, tb=TB)  # [T,5*TB,128]
    y2 = y2.reshape(T, 5, TB, LANE).transpose(0, 2, 1, 3).reshape(Bp, 5 * LANE)

    out = fused_mlp(y2, kp["w1"], kp["b1"], kp["w2"], kp["b2"],
                    kp["w3"], kp["b3"])                                  # [Bp,128]
    return out[:B, :NUM_CLASSES]


# ---------------------------------------------------------------------------
# Pure-JAX reference (for a built-in numerical self-check)
# ---------------------------------------------------------------------------
def reference_forward(p, x_nchw):
    hp = jax.lax.Precision.HIGHEST
    x = jnp.transpose(x_nchw, (0, 2, 3, 1))

    def conv(x, w, b):
        wh = jnp.transpose(w, (2, 3, 1, 0))
        y = jax.lax.conv_general_dilated(
            x, wh, (1, 1), "VALID",
            dimension_numbers=("NHWC", "HWIO", "NHWC"), precision=hp)
        return jax.nn.relu(y + b)

    def pool(x):
        B, H, W, C = x.shape
        return jnp.max(x.reshape(B, H // 2, 2, W // 2, 2, C), axis=(2, 4))

    x = pool(conv(x, p["conv1_w"], p["conv1_b"]))
    x = pool(conv(x, p["conv2_w"], p["conv2_b"]))
    B = x.shape[0]
    x = jnp.transpose(x, (0, 3, 1, 2)).reshape(B, 16 * 5 * 5)
    x = jax.nn.relu(jnp.dot(x, p["fc1_w"].T, precision=hp) + p["fc1_b"])
    x = jax.nn.relu(jnp.dot(x, p["fc2_w"].T, precision=hp) + p["fc2_b"])
    return jnp.dot(x, p["fc3_w"].T, precision=hp) + p["fc3_b"]


if __name__ == "__main__":
    key = jax.random.PRNGKey(0)
    pkey, xkey = jax.random.split(key)
    params = init_params(pkey)
    kparams = prepare_kernel_params(params)

    # Input must be 32x32 spatially so the flatten matches 16*5*5 = 400.
    x = jax.random.normal(xkey, (2, 3, 32, 32), dtype=jnp.float32)

    out = net_forward(kparams, x)
    jax.block_until_ready(out)
    assert out.shape == (2, NUM_CLASSES) and out.dtype == jnp.float32

    ref = reference_forward(params, x)
    err = float(np.max(np.abs(np.asarray(out) - np.asarray(ref))))
    assert np.allclose(np.asarray(out), np.asarray(ref), atol=2e-2, rtol=2e-2), err

    print("KERNEL_OK")
</pallas_src>

<mosaic_0001>
module attributes {stable_mosaic.version = 11 : i64} {
  func.func @_conv_relu_pool_kernel(%arg0: i32, %arg1: memref<1x128x96xf32, #tpu.memory_space<vmem>>, %arg2: memref<1x128x96xf32, #tpu.memory_space<vmem>>, %arg3: memref<5x96x256xf32, #tpu.memory_space<vmem>>, %arg4: memref<1x128xf32, #tpu.memory_space<vmem>>, %arg5: memref<1x112x128xf32, #tpu.memory_space<vmem>>, %arg6: memref<112x256xf32, #tpu.memory_space<vmem>>) attributes {dimension_semantics = [#tpu.dimension_semantics<parallel>], iteration_bounds = array<i64: 1>, scalar_prefetch = 0 : i64, scratch_operands = 1 : i64, tpu.core_type = #tpu.core_type<tc>, window_params = [{transform_indices = @transform_0, window_bounds = array<i64: 1, 128, 96>}, {transform_indices = @transform_1, window_bounds = array<i64: 1, 128, 96>}, {pipeline_mode = #tpu.pipeline_mode<synchronous>, transform_indices = @transform_2, window_bounds = array<i64: 5, 96, 256>}, {pipeline_mode = #tpu.pipeline_mode<synchronous>, transform_indices = @transform_3, window_bounds = array<i64: 1, 128>}, {transform_indices = @transform_4, window_bounds = array<i64: 1, 112, 128>}]} {
    %c0 = arith.constant 0 : index
    %c0_0 = arith.constant 0 : index
    %c0_1 = arith.constant 0 : index
    %0 = vector.load %arg1[%c0, %c0_0, %c0_1] : memref<1x128x96xf32, #tpu.memory_space<vmem>>, vector<1x112x96xf32>
    %1 = vector.shape_cast %0 : vector<1x112x96xf32> to vector<112x96xf32>
    %c0_2 = arith.constant 0 : index
    %c0_3 = arith.constant 0 : index
    %c0_4 = arith.constant 0 : index
    %2 = vector.load %arg3[%c0_2, %c0_3, %c0_4] : memref<5x96x256xf32, #tpu.memory_space<vmem>>, vector<1x96x256xf32>
    %3 = vector.shape_cast %2 : vector<1x96x256xf32> to vector<96x256xf32>
    %cst = arith.constant dense<0.000000e+00> : vector<112x256xf32>
    %4 = tpu.matmul %1, %3, %cst {dimension_numbers = #tpu.dot_dimension_numbers<[1], [0], [0], [1], [0, 0, 1, 1], [], []>} : vector<112x96xf32>, vector<96x256xf32>, vector<112x256xf32> -> vector<112x256xf32>
    %c0_5 = arith.constant 0 : index
    %c0_6 = arith.constant 0 : index
    %5 = vector.load %arg6[%c0_5, %c0_6] : memref<112x256xf32, #tpu.memory_space<vmem>>, vector<112x256xf32>
    tpu.vector_store %arg6[%c0_5, %c0_6], %4 {strides = array<i32>} : memref<112x256xf32, #tpu.memory_space<vmem>>, vector<112x256xf32>,
    %c0_7 = arith.constant 0 : index
    %c0_8 = arith.constant 0 : index
    %c0_9 = arith.constant 0 : index
    %6 = vector.load %arg2[%c0_7, %c0_8, %c0_9] : memref<1x128x96xf32, #tpu.memory_space<vmem>>, vector<1x112x96xf32>
    %7 = vector.shape_cast %6 : vector<1x112x96xf32> to vector<112x96xf32>
    %c1 = arith.constant 1 : index
    %c0_10 = arith.constant 0 : index
    %c0_11 = arith.constant 0 : index
    %8 = vector.load %arg3[%c1, %c0_10, %c0_11] : memref<5x96x256xf32, #tpu.memory_space<vmem>>, vector<1x96x256xf32>
    %9 = vector.shape_cast %8 : vector<1x96x256xf32> to vector<96x256xf32>
    %cst_12 = arith.constant dense<0.000000e+00> : vector<112x256xf32>
    %10 = tpu.matmul %7, %9, %cst_12 {dimension_numbers = #tpu.dot_dimension_numbers<[1], [0], [0], [1], [0, 0, 1, 1], [], []>} : vector<112x96xf32>, vector<96x256xf32>, vector<112x256xf32> -> vector<112x256xf32>
    %c0_13 = arith.constant 0 : index
    %c0_14 = arith.constant 0 : index
    %11 = vector.load %arg6[%c0_13, %c0_14] : memref<112x256xf32, #tpu.memory_space<vmem>>, vector<112x256xf32>
    %12 = arith.addf %11, %10 : vector<112x256xf32>
    %c0_15 = arith.constant 0 : index
    %c0_16 = arith.constant 0 : index
    %13 = vector.load %arg6[%c0_15, %c0_16] : memref<112x256xf32, #tpu.memory_space<vmem>>, vector<112x256xf32>
    tpu.vector_store %arg6[%c0_15, %c0_16], %12 {strides = array<i32>} : memref<112x256xf32, #tpu.memory_space<vmem>>, vector<112x256xf32>,
    %c0_17 = arith.constant 0 : index
    %c8 = arith.constant 8 : index
    %c0_18 = arith.constant 0 : index
    %14 = vector.load %arg1[%c0_17, %c8, %c0_18] : memref<1x128x96xf32, #tpu.memory_space<vmem>>, vector<1x112x96xf32>
    %15 = vector.shape_cast %14 : vector<1x112x96xf32> to vector<112x96xf32>
    %c2 = arith.constant 2 : index
    %c0_19 = arith.constant 0 : index
    %c0_20 = arith.constant 0 : index
    %16 = vector.load %arg3[%c2, %c0_19, %c0_20] : memref<5x96x256xf32, #tpu.memory_space<vmem>>, vector<1x96x256xf32>
    %17 = vector.shape_cast %16 : vector<1x96x256xf32> to vector<96x256xf32>
    %cst_21 = arith.constant dense<0.000000e+00> : vector<112x256xf32>
    %18 = tpu.matmul %15, %17, %cst_21 {dimension_numbers = #tpu.dot_dimension_numbers<[1], [0], [0], [1], [0, 0, 1, 1], [], []>} : vector<112x96xf32>, vector<96x256xf32>, vector<112x256xf32> -> vector<112x256xf32>
    %c0_22 = arith.constant 0 : index
    %c0_23 = arith.constant 0 : index
    %19 = vector.load %arg6[%c0_22, %c0_23] : memref<112x256xf32, #tpu.memory_space<vmem>>, vector<112x256xf32>
    %20 = arith.addf %19, %18 : vector<112x256xf32>
    %c0_24 = arith.constant 0 : index
    %c0_25 = arith.constant 0 : index
    %21 = vector.load %arg6[%c0_24, %c0_25] : memref<112x256xf32, #tpu.memory_space<vmem>>, vector<112x256xf32>
    tpu.vector_store %arg6[%c0_24, %c0_25], %20 {strides = array<i32>} : memref<112x256xf32, #tpu.memory_space<vmem>>, vector<112x256xf32>,
    %c0_26 = arith.constant 0 : index
    %c8_27 = arith.constant 8 : index
    %c0_28 = arith.constant 0 : index
    %22 = vector.load %arg2[%c0_26, %c8_27, %c0_28] : memref<1x128x96xf32, #tpu.memory_space<vmem>>, vector<1x112x96xf32>
    %23 = vector.shape_cast %22 : vector<1x112x96xf32> to vector<112x96xf32>
    %c3 = arith.constant 3 : index
    %c0_29 = arith.constant 0 : index
    %c0_30 = arith.constant 0 : index
    %24 = vector.load %arg3[%c3, %c0_29, %c0_30] : memref<5x96x256xf32, #tpu.memory_space<vmem>>, vector<1x96x256xf32>
    %25 = vector.shape_cast %24 : vector<1x96x256xf32> to vector<96x256xf32>
    %cst_31 = arith.constant dense<0.000000e+00> : vector<112x256xf32>
    %26 = tpu.matmul %23, %25, %cst_31 {dimension_numbers = #tpu.dot_dimension_numbers<[1], [0], [0], [1], [0, 0, 1, 1], [], []>} : vector<112x96xf32>, vector<96x256xf32>, vector<112x256xf32> -> vector<112x256xf32>
    %c0_32 = arith.constant 0 : index
    %c0_33 = arith.constant 0 : index
    %27 = vector.load %arg6[%c0_32, %c0_33] : memref<112x256xf32, #tpu.memory_space<vmem>>, vector<112x256xf32>
    %28 = arith.addf %27, %26 : vector<112x256xf32>
    %c0_34 = arith.constant 0 : index
    %c0_35 = arith.constant 0 : index
    %29 = vector.load %arg6[%c0_34, %c0_35] : memref<112x256xf32, #tpu.memory_space<vmem>>, vector<112x256xf32>
    tpu.vector_store %arg6[%c0_34, %c0_35], %28 {strides = array<i32>} : memref<112x256xf32, #tpu.memory_space<vmem>>, vector<112x256xf32>,
    %c0_36 = arith.constant 0 : index
    %c16 = arith.constant 16 : index
    %c0_37 = arith.constant 0 : index
    %30 = vector.load %arg1[%c0_36, %c16, %c0_37] : memref<1x128x96xf32, #tpu.memory_space<vmem>>, vector<1x112x96xf32>
    %31 = vector.shape_cast %30 : vector<1x112x96xf32> to vector<112x96xf32>
    %c4 = arith.constant 4 : index
    %c0_38 = arith.constant 0 : index
    %c0_39 = arith.constant 0 : index
    %32 = vector.load %arg3[%c4, %c0_38, %c0_39] : memref<5x96x256xf32, #tpu.memory_space<vmem>>, vector<1x96x256xf32>
    %33 = vector.shape_cast %32 : vector<1x96x256xf32> to vector<96x256xf32>
    %cst_40 = arith.constant dense<0.000000e+00> : vector<112x256xf32>
    %34 = tpu.matmul %31, %33, %cst_40 {dimension_numbers = #tpu.dot_dimension_numbers<[1], [0], [0], [1], [0, 0, 1, 1], [], []>} : vector<112x96xf32>, vector<96x256xf32>, vector<112x256xf32> -> vector<112x256xf32>
    %c0_41 = arith.constant 0 : index
    %c0_42 = arith.constant 0 : index
    %35 = vector.load %arg6[%c0_41, %c0_42] : memref<112x256xf32, #tpu.memory_space<vmem>>, vector<112x256xf32>
    %36 = arith.addf %35, %34 : vector<112x256xf32>
    %c0_43 = arith.constant 0 : index
    %c0_44 = arith.constant 0 : index
    %37 = vector.load %arg6[%c0_43, %c0_44] : memref<112x256xf32, #tpu.memory_space<vmem>>, vector<112x256xf32>
    tpu.vector_store %arg6[%c0_43, %c0_44], %36 {strides = array<i32>} : memref<112x256xf32, #tpu.memory_space<vmem>>, vector<112x256xf32>,
    %c0_45 = arith.constant 0 : index
    %c0_46 = arith.constant 0 : index
    %38 = vector.load %arg6[%c0_45, %c0_46] : memref<112x256xf32, #tpu.memory_space<vmem>>, vector<112x256xf32>
    %39 = vector.extract_strided_slice %38 {offsets = [0, 0], sizes = [112, 128], strides = [1, 1]} : vector<112x256xf32> to vector<112x128xf32>
    %40 = vector.extract_strided_slice %38 {offsets = [0, 128], sizes = [112, 128], strides = [1, 1]} : vector<112x256xf32> to vector<112x128xf32>
    %41 = arith.maximumf %39, %40 : vector<112x128xf32>
    %c0_47 = arith.constant 0 : index
    %c0_48 = arith.constant 0 : index
    %c0_49 = arith.constant 0 : index
    %42 = vector.load %arg2[%c0_47, %c0_48, %c0_49] : memref<1x128x96xf32, #tpu.memory_space<vmem>>, vector<1x112x96xf32>
    %43 = vector.shape_cast %42 : vector<1x112x96xf32> to vector<112x96xf32>
    %c0_50 = arith.constant 0 : index
    %c0_51 = arith.constant 0 : index
    %c0_52 = arith.constant 0 : index
    %44 = vector.load %arg3[%c0_50, %c0_51, %c0_52] : memref<5x96x256xf32, #tpu.memory_space<vmem>>, vector<1x96x256xf32>
    %45 = vector.shape_cast %44 : vector<1x96x256xf32> to vector<96x256xf32>
    %cst_53 = arith.constant dense<0.000000e+00> : vector<112x256xf32>
    %46 = tpu.matmul %43, %45, %cst_53 {dimension_numbers = #tpu.dot_dimension_numbers<[1], [0], [0], [1], [0, 0, 1, 1], [], []>} : vector<112x96xf32>, vector<96x256xf32>, vector<112x256xf32> -> vector<112x256xf32>
    %c0_54 = arith.constant 0 : index
    %c0_55 = arith.constant 0 : index
    %47 = vector.load %arg6[%c0_54, %c0_55] : memref<112x256xf32, #tpu.memory_space<vmem>>, vector<112x256xf32>
    tpu.vector_store %arg6[%c0_54, %c0_55], %46 {strides = array<i32>} : memref<112x256xf32, #tpu.memory_space<vmem>>, vector<112x256xf32>,
    %c0_56 = arith.constant 0 : index
    %c8_57 = arith.constant 8 : index
    %c0_58 = arith.constant 0 : index
    %48 = vector.load %arg1[%c0_56, %c8_57, %c0_58] : memref<1x128x96xf32, #tpu.memory_space<vmem>>, vector<1x112x96xf32>
    %49 = vector.shape_cast %48 : vector<1x112x96xf32> to vector<112x96xf32>
    %c1_59 = arith.constant 1 : index
    %c0_60 = arith.constant 0 : index
    %c0_61 = arith.constant 0 : index
    %50 = vector.load %arg3[%c1_59, %c0_60, %c0_61] : memref<5x96x256xf32, #tpu.memory_space<vmem>>, vector<1x96x256xf32>
    %51 = vector.shape_cast %50 : vector<1x96x256xf32> to vector<96x256xf32>
    %cst_62 = arith.constant dense<0.000000e+00> : vector<112x256xf32>
    %52 = tpu.matmul %49, %51, %cst_62 {dimension_numbers = #tpu.dot_dimension_numbers<[1], [0], [0], [1], [0, 0, 1, 1], [], []>} : vector<112x96xf32>, vector<96x256xf32>, vector<112x256xf32> -> vector<112x256xf32>
    %c0_63 = arith.constant 0 : index
    %c0_64 = arith.constant 0 : index
    %53 = vector.load %arg6[%c0_63, %c0_64] : memref<112x256xf32, #tpu.memory_space<vmem>>, vector<112x256xf32>
    %54 = arith.addf %53, %52 : vector<112x256xf32>
    %c0_65 = arith.constant 0 : index
    %c0_66 = arith.constant 0 : index
    %55 = vector.load %arg6[%c0_65, %c0_66] : memref<112x256xf32, #tpu.memory_space<vmem>>, vector<112x256xf32>
    tpu.vector_store %arg6[%c0_65, %c0_66], %54 {strides = array<i32>} : memref<112x256xf32, #tpu.memory_space<vmem>>, vector<112x256xf32>,
    %c0_67 = arith.constant 0 : index
    %c8_68 = arith.constant 8 : index
    %c0_69 = arith.constant 0 : index
    %56 = vector.load %arg2[%c0_67, %c8_68, %c0_69] : memref<1x128x96xf32, #tpu.memory_space<vmem>>, vector<1x112x96xf32>
    %57 = vector.shape_cast %56 : vector<1x112x96xf32> to vector<112x96xf32>
    %c2_70 = arith.constant 2 : index
    %c0_71 = arith.constant 0 : index
    %c0_72 = arith.constant 0 : index
    %58 = vector.load %arg3[%c2_70, %c0_71, %c0_72] : memref<5x96x256xf32, #tpu.memory_space<vmem>>, vector<1x96x256xf32>
    %59 = vector.shape_cast %58 : vector<1x96x256xf32> to vector<96x256xf32>
    %cst_73 = arith.constant dense<0.000000e+00> : vector<112x256xf32>
    %60 = tpu.matmul %57, %59, %cst_73 {dimension_numbers = #tpu.dot_dimension_numbers<[1], [0], [0], [1], [0, 0, 1, 1], [], []>} : vector<112x96xf32>, vector<96x256xf32>, vector<112x256xf32> -> vector<112x256xf32>
    %c0_74 = arith.constant 0 : index
    %c0_75 = arith.constant 0 : index
    %61 = vector.load %arg6[%c0_74, %c0_75] : memref<112x256xf32, #tpu.memory_space<vmem>>, vector<112x256xf32>
    %62 = arith.addf %61, %60 : vector<112x256xf32>
    %c0_76 = arith.constant 0 : index
    %c0_77 = arith.constant 0 : index
    %63 = vector.load %arg6[%c0_76, %c0_77] : memref<112x256xf32, #tpu.memory_space<vmem>>, vector<112x256xf32>
    tpu.vector_store %arg6[%c0_76, %c0_77], %62 {strides = array<i32>} : memref<112x256xf32, #tpu.memory_space<vmem>>, vector<112x256xf32>,
    %c0_78 = arith.constant 0 : index
    %c16_79 = arith.constant 16 : index
    %c0_80 = arith.constant 0 : index
    %64 = vector.load %arg1[%c0_78, %c16_79, %c0_80] : memref<1x128x96xf32, #tpu.memory_space<vmem>>, vector<1x112x96xf32>
    %65 = vector.shape_cast %64 : vector<1x112x96xf32> to vector<112x96xf32>
    %c3_81 = arith.constant 3 : index
    %c0_82 = arith.constant 0 : index
    %c0_83 = arith.constant 0 : index
    %66 = vector.load %arg3[%c3_81, %c0_82, %c0_83] : memref<5x96x256xf32, #tpu.memory_space<vmem>>, vector<1x96x256xf32>
    %67 = vector.shape_cast %66 : vector<1x96x256xf32> to vector<96x256xf32>
    %cst_84 = arith.constant dense<0.000000e+00> : vector<112x256xf32>
    %68 = tpu.matmul %65, %67, %cst_84 {dimension_numbers = #tpu.dot_dimension_numbers<[1], [0], [0], [1], [0, 0, 1, 1], [], []>} : vector<112x96xf32>, vector<96x256xf32>, vector<112x256xf32> -> vector<112x256xf32>
    %c0_85 = arith.constant 0 : index
    %c0_86 = arith.constant 0 : index
    %69 = vector.load %arg6[%c0_85, %c0_86] : memref<112x256xf32, #tpu.memory_space<vmem>>, vector<112x256xf32>
    %70 = arith.addf %69, %68 : vector<112x256xf32>
    %c0_87 = arith.constant 0 : index
    %c0_88 = arith.constant 0 : index
    %71 = vector.load %arg6[%c0_87, %c0_88] : memref<112x256xf32, #tpu.memory_space<vmem>>, vector<112x256xf32>
    tpu.vector_store %arg6[%c0_87, %c0_88], %70 {strides = array<i32>} : memref<112x256xf32, #tpu.memory_space<vmem>>, vector<112x256xf32>,
    %c0_89 = arith.constant 0 : index
    %c16_90 = arith.constant 16 : index
    %c0_91 = arith.constant 0 : index
    %72 = vector.load %arg2[%c0_89, %c16_90, %c0_91] : memref<1x128x96xf32, #tpu.memory_space<vmem>>, vector<1x112x96xf32>
    %73 = vector.shape_cast %72 : vector<1x112x96xf32> to vector<112x96xf32>
    %c4_92 = arith.constant 4 : index
    %c0_93 = arith.constant 0 : index
    %c0_94 = arith.constant 0 : index
    %74 = vector.load %arg3[%c4_92, %c0_93, %c0_94] : memref<5x96x256xf32, #tpu.memory_space<vmem>>, vector<1x96x256xf32>
    %75 = vector.shape_cast %74 : vector<1x96x256xf32> to vector<96x256xf32>
    %cst_95 = arith.constant dense<0.000000e+00> : vector<112x256xf32>
    %76 = tpu.matmul %73, %75, %cst_95 {dimension_numbers = #tpu.dot_dimension_numbers<[1], [0], [0], [1], [0, 0, 1, 1], [], []>} : vector<112x96xf32>, vector<96x256xf32>, vector<112x256xf32> -> vector<112x256xf32>
    %c0_96 = arith.constant 0 : index
    %c0_97 = arith.constant 0 : index
    %77 = vector.load %arg6[%c0_96, %c0_97] : memref<112x256xf32, #tpu.memory_space<vmem>>, vector<112x256xf32>
    %78 = arith.addf %77, %76 : vector<112x256xf32>
    %c0_98 = arith.constant 0 : index
    %c0_99 = arith.constant 0 : index
    %79 = vector.load %arg6[%c0_98, %c0_99] : memref<112x256xf32, #tpu.memory_space<vmem>>, vector<112x256xf32>
    tpu.vector_store %arg6[%c0_98, %c0_99], %78 {strides = array<i32>} : memref<112x256xf32, #tpu.memory_space<vmem>>, vector<112x256xf32>,
    %c0_100 = arith.constant 0 : index
    %c0_101 = arith.constant 0 : index
    %80 = vector.load %arg6[%c0_100, %c0_101] : memref<112x256xf32, #tpu.memory_space<vmem>>, vector<112x256xf32>
    %81 = vector.extract_strided_slice %80 {offsets = [0, 0], sizes = [112, 128], strides = [1, 1]} : vector<112x256xf32> to vector<112x128xf32>
    %82 = vector.extract_strided_slice %80 {offsets = [0, 128], sizes = [112, 128], strides = [1, 1]} : vector<112x256xf32> to vector<112x128xf32>
    %83 = arith.maximumf %81, %82 : vector<112x128xf32>
    %84 = arith.maximumf %41, %83 : vector<112x128xf32>
    %c0_102 = arith.constant 0 : index
    %c0_103 = arith.constant 0 : index
    %85 = vector.load %arg4[%c0_102, %c0_103] : memref<1x128xf32, #tpu.memory_space<vmem>>, vector<1x128xf32>
    %86 = vector.broadcast %85 : vector<1x128xf32> to vector<112x128xf32>
    %87 = arith.addf %84, %86 : vector<112x128xf32>
    %cst_104 = arith.constant 0.000000e+00 : f32
    %88 = vector.broadcast %cst_104 : f32 to vector<112x128xf32>
    %89 = arith.maximumf %87, %88 : vector<112x128xf32>
    %c0_105 = arith.constant 0 : index
    %c0_106 = arith.constant 0 : index
    %c0_107 = arith.constant 0 : index
    %90 = vector.load %arg5[%c0_105, %c0_106, %c0_107] : memref<1x112x128xf32, #tpu.memory_space<vmem>>, vector<1x112x128xf32>
    %91 = vector.shape_cast %90 : vector<1x112x128xf32> to vector<112x128xf32>
    %92 = vector.shape_cast %89 : vector<112x128xf32> to vector<1x112x128xf32>
    tpu.vector_store %arg5[%c0_105, %c0_106, %c0_107], %92 {strides = array<i32>} : memref<1x112x128xf32, #tpu.memory_space<vmem>>, vector<1x112x128xf32>,
    return
  }
  func.func @transform_0(%arg0: i32) -> (i32, i32, i32) {
    %c0_i32 = arith.constant 0 : i32
    %c0_i32_0 = arith.constant 0 : i32
    %c0_i32_1 = arith.constant 0 : i32
    return %arg0, %c0_i32, %c0_i32_0 : i32, i32, i32
  }
  func.func @transform_1(%arg0: i32) -> (i32, i32, i32) {
    %c0_i32 = arith.constant 0 : i32
    %c0_i32_0 = arith.constant 0 : i32
    %c0_i32_1 = arith.constant 0 : i32
    return %arg0, %c0_i32, %c0_i32_0 : i32, i32, i32
  }
  func.func @transform_2(%arg0: i32) -> (i32, i32, i32) {
    %c0_i32 = arith.constant 0 : i32
    %c0_i32_0 = arith.constant 0 : i32
    %c0_i32_1 = arith.constant 0 : i32
    %c0_i32_2 = arith.constant 0 : i32
    return %c0_i32, %c0_i32_0, %c0_i32_1 : i32, i32, i32
  }
  func.func @transform_3(%arg0: i32) -> (i32, i32) {
    %c0_i32 = arith.constant 0 : i32
    %c0_i32_0 = arith.constant 0 : i32
    %c0_i32_1 = arith.constant 0 : i32
    return %c0_i32, %c0_i32_0 : i32, i32
  }
  func.func @transform_4(%arg0: i32) -> (i32, i32, i32) {
    %c0_i32 = arith.constant 0 : i32
    %c0_i32_0 = arith.constant 0 : i32
    %c0_i32_1 = arith.constant 0 : i32
    return %arg0, %c0_i32, %c0_i32_0 : i32, i32, i32
  }
}

module attributes {stable_mosaic.version = 11 : i64} {
  func.func @_conv_relu_pool_kernel(%arg0: i32, %arg1: memref<1x56x128xf32, #tpu.memory_space<vmem>>, %arg2: memref<1x56x128xf32, #tpu.memory_space<vmem>>, %arg3: memref<5x128x256xf32, #tpu.memory_space<vmem>>, %arg4: memref<1x128xf32, #tpu.memory_space<vmem>>, %arg5: memref<1x40x128xf32, #tpu.memory_space<vmem>>, %arg6: memref<40x256xf32, #tpu.memory_space<vmem>>) attributes {dimension_semantics = [#tpu.dimension_semantics<parallel>], iteration_bounds = array<i64: 1>, scalar_prefetch = 0 : i64, scratch_operands = 1 : i64, tpu.core_type = #tpu.core_type<tc>, window_params = [{transform_indices = @transform_0, window_bounds = array<i64: 1, 56, 128>}, {transform_indices = @transform_1, window_bounds = array<i64: 1, 56, 128>}, {pipeline_mode = #tpu.pipeline_mode<synchronous>, transform_indices = @transform_2, window_bounds = array<i64: 5, 128, 256>}, {pipeline_mode = #tpu.pipeline_mode<synchronous>, transform_indices = @transform_3, window_bounds = array<i64: 1, 128>}, {transform_indices = @transform_4, window_bounds = array<i64: 1, 40, 128>}]} {
    %c0 = arith.constant 0 : index
    %c0_0 = arith.constant 0 : index
    %c0_1 = arith.constant 0 : index
    %0 = vector.load %arg1[%c0, %c0_0, %c0_1] : memref<1x56x128xf32, #tpu.memory_space<vmem>>, vector<1x40x128xf32>
    %1 = vector.shape_cast %0 : vector<1x40x128xf32> to vector<40x128xf32>
    %c0_2 = arith.constant 0 : index
    %c0_3 = arith.constant 0 : index
    %c0_4 = arith.constant 0 : index
    %2 = vector.load %arg3[%c0_2, %c0_3, %c0_4] : memref<5x128x256xf32, #tpu.memory_space<vmem>>, vector<1x128x256xf32>
    %3 = vector.shape_cast %2 : vector<1x128x256xf32> to vector<128x256xf32>
    %cst = arith.constant dense<0.000000e+00> : vector<40x256xf32>
    %4 = tpu.matmul %1, %3, %cst {dimension_numbers = #tpu.dot_dimension_numbers<[1], [0], [0], [1], [0, 0, 1, 1], [], []>} : vector<40x128xf32>, vector<128x256xf32>, vector<40x256xf32> -> vector<40x256xf32>
    %c0_5 = arith.constant 0 : index
    %c0_6 = arith.constant 0 : index
    %5 = vector.load %arg6[%c0_5, %c0_6] : memref<40x256xf32, #tpu.memory_space<vmem>>, vector<40x256xf32>
    tpu.vector_store %arg6[%c0_5, %c0_6], %4 {strides = array<i32>} : memref<40x256xf32, #tpu.memory_space<vmem>>, vector<40x256xf32>,
    %c0_7 = arith.constant 0 : index
    %c0_8 = arith.constant 0 : index
    %c0_9 = arith.constant 0 : index
    %6 = vector.load %arg2[%c0_7, %c0_8, %c0_9] : memref<1x56x128xf32, #tpu.memory_space<vmem>>, vector<1x40x128xf32>
    %7 = vector.shape_cast %6 : vector<1x40x128xf32> to vector<40x128xf32>
    %c1 = arith.constant 1 : index
    %c0_10 = arith.constant 0 : index
    %c0_11 = arith.constant 0 : index
    %8 = vector.load %arg3[%c1, %c0_10, %c0_11] : memref<5x128x256xf32, #tpu.memory_space<vmem>>, vector<1x128x256xf32>
    %9 = vector.shape_cast %8 : vector<1x128x256xf32> to vector<128x256xf32>
    %cst_12 = arith.constant dense<0.000000e+00> : vector<40x256xf32>
    %10 = tpu.matmul %7, %9, %cst_12 {dimension_numbers = #tpu.dot_dimension_numbers<[1], [0], [0], [1], [0, 0, 1, 1], [], []>} : vector<40x128xf32>, vector<128x256xf32>, vector<40x256xf32> -> vector<40x256xf32>
    %c0_13 = arith.constant 0 : index
    %c0_14 = arith.constant 0 : index
    %11 = vector.load %arg6[%c0_13, %c0_14] : memref<40x256xf32, #tpu.memory_space<vmem>>, vector<40x256xf32>
    %12 = arith.addf %11, %10 : vector<40x256xf32>
    %c0_15 = arith.constant 0 : index
    %c0_16 = arith.constant 0 : index
    %13 = vector.load %arg6[%c0_15, %c0_16] : memref<40x256xf32, #tpu.memory_space<vmem>>, vector<40x256xf32>
    tpu.vector_store %arg6[%c0_15, %c0_16], %12 {strides = array<i32>} : memref<40x256xf32, #tpu.memory_space<vmem>>, vector<40x256xf32>,
    %c0_17 = arith.constant 0 : index
    %c8 = arith.constant 8 : index
    %c0_18 = arith.constant 0 : index
    %14 = vector.load %arg1[%c0_17, %c8, %c0_18] : memref<1x56x128xf32, #tpu.memory_space<vmem>>, vector<1x40x128xf32>
    %15 = vector.shape_cast %14 : vector<1x40x128xf32> to vector<40x128xf32>
    %c2 = arith.constant 2 : index
    %c0_19 = arith.constant 0 : index
    %c0_20 = arith.constant 0 : index
    %16 = vector.load %arg3[%c2, %c0_19, %c0_20] : memref<5x128x256xf32, #tpu.memory_space<vmem>>, vector<1x128x256xf32>
    %17 = vector.shape_cast %16 : vector<1x128x256xf32> to vector<128x256xf32>
    %cst_21 = arith.constant dense<0.000000e+00> : vector<40x256xf32>
    %18 = tpu.matmul %15, %17, %cst_21 {dimension_numbers = #tpu.dot_dimension_numbers<[1], [0], [0], [1], [0, 0, 1, 1], [], []>} : vector<40x128xf32>, vector<128x256xf32>, vector<40x256xf32> -> vector<40x256xf32>
    %c0_22 = arith.constant 0 : index
    %c0_23 = arith.constant 0 : index
    %19 = vector.load %arg6[%c0_22, %c0_23] : memref<40x256xf32, #tpu.memory_space<vmem>>, vector<40x256xf32>
    %20 = arith.addf %19, %18 : vector<40x256xf32>
    %c0_24 = arith.constant 0 : index
    %c0_25 = arith.constant 0 : index
    %21 = vector.load %arg6[%c0_24, %c0_25] : memref<40x256xf32, #tpu.memory_space<vmem>>, vector<40x256xf32>
    tpu.vector_store %arg6[%c0_24, %c0_25], %20 {strides = array<i32>} : memref<40x256xf32, #tpu.memory_space<vmem>>, vector<40x256xf32>,
    %c0_26 = arith.constant 0 : index
    %c8_27 = arith.constant 8 : index
    %c0_28 = arith.constant 0 : index
    %22 = vector.load %arg2[%c0_26, %c8_27, %c0_28] : memref<1x56x128xf32, #tpu.memory_space<vmem>>, vector<1x40x128xf32>
    %23 = vector.shape_cast %22 : vector<1x40x128xf32> to vector<40x128xf32>
    %c3 = arith.constant 3 : index
    %c0_29 = arith.constant 0 : index
    %c0_30 = arith.constant 0 : index
    %24 = vector.load %arg3[%c3, %c0_29, %c0_30] : memref<5x128x256xf32, #tpu.memory_space<vmem>>, vector<1x128x256xf32>
    %25 = vector.shape_cast %24 : vector<1x128x256xf32> to vector<128x256xf32>
    %cst_31 = arith.constant dense<0.000000e+00> : vector<40x256xf32>
    %26 = tpu.matmul %23, %25, %cst_31 {dimension_numbers = #tpu.dot_dimension_numbers<[1], [0], [0], [1], [0, 0, 1, 1], [], []>} : vector<40x128xf32>, vector<128x256xf32>, vector<40x256xf32> -> vector<40x256xf32>
    %c0_32 = arith.constant 0 : index
    %c0_33 = arith.constant 0 : index
    %27 = vector.load %arg6[%c0_32, %c0_33] : memref<40x256xf32, #tpu.memory_space<vmem>>, vector<40x256xf32>
    %28 = arith.addf %27, %26 : vector<40x256xf32>
    %c0_34 = arith.constant 0 : index
    %c0_35 = arith.constant 0 : index
    %29 = vector.load %arg6[%c0_34, %c0_35] : memref<40x256xf32, #tpu.memory_space<vmem>>, vector<40x256xf32>
    tpu.vector_store %arg6[%c0_34, %c0_35], %28 {strides = array<i32>} : memref<40x256xf32, #tpu.memory_space<vmem>>, vector<40x256xf32>,
    %c0_36 = arith.constant 0 : index
    %c16 = arith.constant 16 : index
    %c0_37 = arith.constant 0 : index
    %30 = vector.load %arg1[%c0_36, %c16, %c0_37] : memref<1x56x128xf32, #tpu.memory_space<vmem>>, vector<1x40x128xf32>
    %31 = vector.shape_cast %30 : vector<1x40x128xf32> to vector<40x128xf32>
    %c4 = arith.constant 4 : index
    %c0_38 = arith.constant 0 : index
    %c0_39 = arith.constant 0 : index
    %32 = vector.load %arg3[%c4, %c0_38, %c0_39] : memref<5x128x256xf32, #tpu.memory_space<vmem>>, vector<1x128x256xf32>
    %33 = vector.shape_cast %32 : vector<1x128x256xf32> to vector<128x256xf32>
    %cst_40 = arith.constant dense<0.000000e+00> : vector<40x256xf32>
    %34 = tpu.matmul %31, %33, %cst_40 {dimension_numbers = #tpu.dot_dimension_numbers<[1], [0], [0], [1], [0, 0, 1, 1], [], []>} : vector<40x128xf32>, vector<128x256xf32>, vector<40x256xf32> -> vector<40x256xf32>
    %c0_41 = arith.constant 0 : index
    %c0_42 = arith.constant 0 : index
    %35 = vector.load %arg6[%c0_41, %c0_42] : memref<40x256xf32, #tpu.memory_space<vmem>>, vector<40x256xf32>
    %36 = arith.addf %35, %34 : vector<40x256xf32>
    %c0_43 = arith.constant 0 : index
    %c0_44 = arith.constant 0 : index
    %37 = vector.load %arg6[%c0_43, %c0_44] : memref<40x256xf32, #tpu.memory_space<vmem>>, vector<40x256xf32>
    tpu.vector_store %arg6[%c0_43, %c0_44], %36 {strides = array<i32>} : memref<40x256xf32, #tpu.memory_space<vmem>>, vector<40x256xf32>,
    %c0_45 = arith.constant 0 : index
    %c0_46 = arith.constant 0 : index
    %38 = vector.load %arg6[%c0_45, %c0_46] : memref<40x256xf32, #tpu.memory_space<vmem>>, vector<40x256xf32>
    %39 = vector.extract_strided_slice %38 {offsets = [0, 0], sizes = [40, 128], strides = [1, 1]} : vector<40x256xf32> to vector<40x128xf32>
    %40 = vector.extract_strided_slice %38 {offsets = [0, 128], sizes = [40, 128], strides = [1, 1]} : vector<40x256xf32> to vector<40x128xf32>
    %41 = arith.maximumf %39, %40 : vector<40x128xf32>
    %c0_47 = arith.constant 0 : index
    %c0_48 = arith.constant 0 : index
    %c0_49 = arith.constant 0 : index
    %42 = vector.load %arg2[%c0_47, %c0_48, %c0_49] : memref<1x56x128xf32, #tpu.memory_space<vmem>>, vector<1x40x128xf32>
    %43 = vector.shape_cast %42 : vector<1x40x128xf32> to vector<40x128xf32>
    %c0_50 = arith.constant 0 : index
    %c0_51 = arith.constant 0 : index
    %c0_52 = arith.constant 0 : index
    %44 = vector.load %arg3[%c0_50, %c0_51, %c0_52] : memref<5x128x256xf32, #tpu.memory_space<vmem>>, vector<1x128x256xf32>
    %45 = vector.shape_cast %44 : vector<1x128x256xf32> to vector<128x256xf32>
    %cst_53 = arith.constant dense<0.000000e+00> : vector<40x256xf32>
    %46 = tpu.matmul %43, %45, %cst_53 {dimension_numbers = #tpu.dot_dimension_numbers<[1], [0], [0], [1], [0, 0, 1, 1], [], []>} : vector<40x128xf32>, vector<128x256xf32>, vector<40x256xf32> -> vector<40x256xf32>
    %c0_54 = arith.constant 0 : index
    %c0_55 = arith.constant 0 : index
    %47 = vector.load %arg6[%c0_54, %c0_55] : memref<40x256xf32, #tpu.memory_space<vmem>>, vector<40x256xf32>
    tpu.vector_store %arg6[%c0_54, %c0_55], %46 {strides = array<i32>} : memref<40x256xf32, #tpu.memory_space<vmem>>, vector<40x256xf32>,
    %c0_56 = arith.constant 0 : index
    %c8_57 = arith.constant 8 : index
    %c0_58 = arith.constant 0 : index
    %48 = vector.load %arg1[%c0_56, %c8_57, %c0_58] : memref<1x56x128xf32, #tpu.memory_space<vmem>>, vector<1x40x128xf32>
    %49 = vector.shape_cast %48 : vector<1x40x128xf32> to vector<40x128xf32>
    %c1_59 = arith.constant 1 : index
    %c0_60 = arith.constant 0 : index
    %c0_61 = arith.constant 0 : index
    %50 = vector.load %arg3[%c1_59, %c0_60, %c0_61] : memref<5x128x256xf32, #tpu.memory_space<vmem>>, vector<1x128x256xf32>
    %51 = vector.shape_cast %50 : vector<1x128x256xf32> to vector<128x256xf32>
    %cst_62 = arith.constant dense<0.000000e+00> : vector<40x256xf32>
    %52 = tpu.matmul %49, %51, %cst_62 {dimension_numbers = #tpu.dot_dimension_numbers<[1], [0], [0], [1], [0, 0, 1, 1], [], []>} : vector<40x128xf32>, vector<128x256xf32>, vector<40x256xf32> -> vector<40x256xf32>
    %c0_63 = arith.constant 0 : index
    %c0_64 = arith.constant 0 : index
    %53 = vector.load %arg6[%c0_63, %c0_64] : memref<40x256xf32, #tpu.memory_space<vmem>>, vector<40x256xf32>
    %54 = arith.addf %53, %52 : vector<40x256xf32>
    %c0_65 = arith.constant 0 : index
    %c0_66 = arith.constant 0 : index
    %55 = vector.load %arg6[%c0_65, %c0_66] : memref<40x256xf32, #tpu.memory_space<vmem>>, vector<40x256xf32>
    tpu.vector_store %arg6[%c0_65, %c0_66], %54 {strides = array<i32>} : memref<40x256xf32, #tpu.memory_space<vmem>>, vector<40x256xf32>,
    %c0_67 = arith.constant 0 : index
    %c8_68 = arith.constant 8 : index
    %c0_69 = arith.constant 0 : index
    %56 = vector.load %arg2[%c0_67, %c8_68, %c0_69] : memref<1x56x128xf32, #tpu.memory_space<vmem>>, vector<1x40x128xf32>
    %57 = vector.shape_cast %56 : vector<1x40x128xf32> to vector<40x128xf32>
    %c2_70 = arith.constant 2 : index
    %c0_71 = arith.constant 0 : index
    %c0_72 = arith.constant 0 : index
    %58 = vector.load %arg3[%c2_70, %c0_71, %c0_72] : memref<5x128x256xf32, #tpu.memory_space<vmem>>, vector<1x128x256xf32>
    %59 = vector.shape_cast %58 : vector<1x128x256xf32> to vector<128x256xf32>
    %cst_73 = arith.constant dense<0.000000e+00> : vector<40x256xf32>
    %60 = tpu.matmul %57, %59, %cst_73 {dimension_numbers = #tpu.dot_dimension_numbers<[1], [0], [0], [1], [0, 0, 1, 1], [], []>} : vector<40x128xf32>, vector<128x256xf32>, vector<40x256xf32> -> vector<40x256xf32>
    %c0_74 = arith.constant 0 : index
    %c0_75 = arith.constant 0 : index
    %61 = vector.load %arg6[%c0_74, %c0_75] : memref<40x256xf32, #tpu.memory_space<vmem>>, vector<40x256xf32>
    %62 = arith.addf %61, %60 : vector<40x256xf32>
    %c0_76 = arith.constant 0 : index
    %c0_77 = arith.constant 0 : index
    %63 = vector.load %arg6[%c0_76, %c0_77] : memref<40x256xf32, #tpu.memory_space<vmem>>, vector<40x256xf32>
    tpu.vector_store %arg6[%c0_76, %c0_77], %62 {strides = array<i32>} : memref<40x256xf32, #tpu.memory_space<vmem>>, vector<40x256xf32>,
    %c0_78 = arith.constant 0 : index
    %c16_79 = arith.constant 16 : index
    %c0_80 = arith.constant 0 : index
    %64 = vector.load %arg1[%c0_78, %c16_79, %c0_80] : memref<1x56x128xf32, #tpu.memory_space<vmem>>, vector<1x40x128xf32>
    %65 = vector.shape_cast %64 : vector<1x40x128xf32> to vector<40x128xf32>
    %c3_81 = arith.constant 3 : index
    %c0_82 = arith.constant 0 : index
    %c0_83 = arith.constant 0 : index
    %66 = vector.load %arg3[%c3_81, %c0_82, %c0_83] : memref<5x128x256xf32, #tpu.memory_space<vmem>>, vector<1x128x256xf32>
    %67 = vector.shape_cast %66 : vector<1x128x256xf32> to vector<128x256xf32>
    %cst_84 = arith.constant dense<0.000000e+00> : vector<40x256xf32>
    %68 = tpu.matmul %65, %67, %cst_84 {dimension_numbers = #tpu.dot_dimension_numbers<[1], [0], [0], [1], [0, 0, 1, 1], [], []>} : vector<40x128xf32>, vector<128x256xf32>, vector<40x256xf32> -> vector<40x256xf32>
    %c0_85 = arith.constant 0 : index
    %c0_86 = arith.constant 0 : index
    %69 = vector.load %arg6[%c0_85, %c0_86] : memref<40x256xf32, #tpu.memory_space<vmem>>, vector<40x256xf32>
    %70 = arith.addf %69, %68 : vector<40x256xf32>
    %c0_87 = arith.constant 0 : index
    %c0_88 = arith.constant 0 : index
    %71 = vector.load %arg6[%c0_87, %c0_88] : memref<40x256xf32, #tpu.memory_space<vmem>>, vector<40x256xf32>
    tpu.vector_store %arg6[%c0_87, %c0_88], %70 {strides = array<i32>} : memref<40x256xf32, #tpu.memory_space<vmem>>, vector<40x256xf32>,
    %c0_89 = arith.constant 0 : index
    %c16_90 = arith.constant 16 : index
    %c0_91 = arith.constant 0 : index
    %72 = vector.load %arg2[%c0_89, %c16_90, %c0_91] : memref<1x56x128xf32, #tpu.memory_space<vmem>>, vector<1x40x128xf32>
    %73 = vector.shape_cast %72 : vector<1x40x128xf32> to vector<40x128xf32>
    %c4_92 = arith.constant 4 : index
    %c0_93 = arith.constant 0 : index
    %c0_94 = arith.constant 0 : index
    %74 = vector.load %arg3[%c4_92, %c0_93, %c0_94] : memref<5x128x256xf32, #tpu.memory_space<vmem>>, vector<1x128x256xf32>
    %75 = vector.shape_cast %74 : vector<1x128x256xf32> to vector<128x256xf32>
    %cst_95 = arith.constant dense<0.000000e+00> : vector<40x256xf32>
    %76 = tpu.matmul %73, %75, %cst_95 {dimension_numbers = #tpu.dot_dimension_numbers<[1], [0], [0], [1], [0, 0, 1, 1], [], []>} : vector<40x128xf32>, vector<128x256xf32>, vector<40x256xf32> -> vector<40x256xf32>
    %c0_96 = arith.constant 0 : index
    %c0_97 = arith.constant 0 : index
    %77 = vector.load %arg6[%c0_96, %c0_97] : memref<40x256xf32, #tpu.memory_space<vmem>>, vector<40x256xf32>
    %78 = arith.addf %77, %76 : vector<40x256xf32>
    %c0_98 = arith.constant 0 : index
    %c0_99 = arith.constant 0 : index
    %79 = vector.load %arg6[%c0_98, %c0_99] : memref<40x256xf32, #tpu.memory_space<vmem>>, vector<40x256xf32>
    tpu.vector_store %arg6[%c0_98, %c0_99], %78 {strides = array<i32>} : memref<40x256xf32, #tpu.memory_space<vmem>>, vector<40x256xf32>,
    %c0_100 = arith.constant 0 : index
    %c0_101 = arith.constant 0 : index
    %80 = vector.load %arg6[%c0_100, %c0_101] : memref<40x256xf32, #tpu.memory_space<vmem>>, vector<40x256xf32>
    %81 = vector.extract_strided_slice %80 {offsets = [0, 0], sizes = [40, 128], strides = [1, 1]} : vector<40x256xf32> to vector<40x128xf32>
    %82 = vector.extract_strided_slice %80 {offsets = [0, 128], sizes = [40, 128], strides = [1, 1]} : vector<40x256xf32> to vector<40x128xf32>
    %83 = arith.maximumf %81, %82 : vector<40x128xf32>
    %84 = arith.maximumf %41, %83 : vector<40x128xf32>
    %c0_102 = arith.constant 0 : index
    %c0_103 = arith.constant 0 : index
    %85 = vector.load %arg4[%c0_102, %c0_103] : memref<1x128xf32, #tpu.memory_space<vmem>>, vector<1x128xf32>
    %86 = vector.broadcast %85 : vector<1x128xf32> to vector<40x128xf32>
    %87 = arith.addf %84, %86 : vector<40x128xf32>
    %cst_104 = arith.constant 0.000000e+00 : f32
    %88 = vector.broadcast %cst_104 : f32 to vector<40x128xf32>
    %89 = arith.maximumf %87, %88 : vector<40x128xf32>
    %c0_105 = arith.constant 0 : index
    %c0_106 = arith.constant 0 : index
    %c0_107 = arith.constant 0 : index
    %90 = vector.load %arg5[%c0_105, %c0_106, %c0_107] : memref<1x40x128xf32, #tpu.memory_space<vmem>>, vector<1x40x128xf32>
    %91 = vector.shape_cast %90 : vector<1x40x128xf32> to vector<40x128xf32>
    %92 = vector.shape_cast %89 : vector<40x128xf32> to vector<1x40x128xf32>
    tpu.vector_store %arg5[%c0_105, %c0_106, %c0_107], %92 {strides = array<i32>} : memref<1x40x128xf32, #tpu.memory_space<vmem>>, vector<1x40x128xf32>,
    return
  }
  func.func @transform_0(%arg0: i32) -> (i32, i32, i32) {
    %c0_i32 = arith.constant 0 : i32
    %c0_i32_0 = arith.constant 0 : i32
    %c0_i32_1 = arith.constant 0 : i32
    return %arg0, %c0_i32, %c0_i32_0 : i32, i32, i32
  }
  func.func @transform_1(%arg0: i32) -> (i32, i32, i32) {
    %c0_i32 = arith.constant 0 : i32
    %c0_i32_0 = arith.constant 0 : i32
    %c0_i32_1 = arith.constant 0 : i32
    return %arg0, %c0_i32, %c0_i32_0 : i32, i32, i32
  }
  func.func @transform_2(%arg0: i32) -> (i32, i32, i32) {
    %c0_i32 = arith.constant 0 : i32
    %c0_i32_0 = arith.constant 0 : i32
    %c0_i32_1 = arith.constant 0 : i32
    %c0_i32_2 = arith.constant 0 : i32
    return %c0_i32, %c0_i32_0, %c0_i32_1 : i32, i32, i32
  }
  func.func @transform_3(%arg0: i32) -> (i32, i32) {
    %c0_i32 = arith.constant 0 : i32
    %c0_i32_0 = arith.constant 0 : i32
    %c0_i32_1 = arith.constant 0 : i32
    return %c0_i32, %c0_i32_0 : i32, i32
  }
  func.func @transform_4(%arg0: i32) -> (i32, i32, i32) {
    %c0_i32 = arith.constant 0 : i32
    %c0_i32_0 = arith.constant 0 : i32
    %c0_i32_1 = arith.constant 0 : i32
    return %arg0, %c0_i32, %c0_i32_0 : i32, i32, i32
  }
}

module attributes {stable_mosaic.version = 11 : i64} {
  func.func @_fused_mlp_kernel(%arg0: i32, %arg1: memref<8x640xf32, #tpu.memory_space<vmem>>, %arg2: memref<640x128xf32, #tpu.memory_space<vmem>>, %arg3: memref<1x128xf32, #tpu.memory_space<vmem>>, %arg4: memref<128x128xf32, #tpu.memory_space<vmem>>, %arg5: memref<1x128xf32, #tpu.memory_space<vmem>>, %arg6: memref<128x128xf32, #tpu.memory_space<vmem>>, %arg7: memref<1x128xf32, #tpu.memory_space<vmem>>, %arg8: memref<8x128xf32, #tpu.memory_space<vmem>>) attributes {dimension_semantics = [#tpu.dimension_semantics<parallel>], iteration_bounds = array<i64: 1>, scalar_prefetch = 0 : i64, scratch_operands = 0 : i64, tpu.core_type = #tpu.core_type<tc>, window_params = [{transform_indices = @transform_0, window_bounds = array<i64: 8, 640>}, {pipeline_mode = #tpu.pipeline_mode<synchronous>, transform_indices = @transform_1, window_bounds = array<i64: 640, 128>}, {pipeline_mode = #tpu.pipeline_mode<synchronous>, transform_indices = @transform_2, window_bounds = array<i64: 1, 128>}, {pipeline_mode = #tpu.pipeline_mode<synchronous>, transform_indices = @transform_3, window_bounds = array<i64: 128, 128>}, {pipeline_mode = #tpu.pipeline_mode<synchronous>, transform_indices = @transform_4, window_bounds = array<i64: 1, 128>}, {pipeline_mode = #tpu.pipeline_mode<synchronous>, transform_indices = @transform_5, window_bounds = array<i64: 128, 128>}, {pipeline_mode = #tpu.pipeline_mode<synchronous>, transform_indices = @transform_6, window_bounds = array<i64: 1, 128>}, {transform_indices = @transform_7, window_bounds = array<i64: 8, 128>}]} {
    %c0 = arith.constant 0 : index
    %c0_0 = arith.constant 0 : index
    %0 = vector.load %arg1[%c0, %c0_0] : memref<8x640xf32, #tpu.memory_space<vmem>>, vector<8x640xf32>
    %c0_1 = arith.constant 0 : index
    %c0_2 = arith.constant 0 : index
    %1 = vector.load %arg2[%c0_1, %c0_2] : memref<640x128xf32, #tpu.memory_space<vmem>>, vector<640x128xf32>
    %cst = arith.constant dense<0.000000e+00> : vector<8x128xf32>
    %2 = tpu.matmul %0, %1, %cst {dimension_numbers = #tpu.dot_dimension_numbers<[1], [0], [0], [1], [0, 0, 1, 1], [], []>} : vector<8x640xf32>, vector<640x128xf32>, vector<8x128xf32> -> vector<8x128xf32>
    %c0_3 = arith.constant 0 : index
    %c0_4 = arith.constant 0 : index
    %3 = vector.load %arg3[%c0_3, %c0_4] : memref<1x128xf32, #tpu.memory_space<vmem>>, vector<1x128xf32>
    %4 = vector.broadcast %3 : vector<1x128xf32> to vector<8x128xf32>
    %5 = arith.addf %2, %4 : vector<8x128xf32>
    %cst_5 = arith.constant 0.000000e+00 : f32
    %6 = vector.broadcast %cst_5 : f32 to vector<8x128xf32>
    %7 = arith.maximumf %5, %6 : vector<8x128xf32>
    %c0_6 = arith.constant 0 : index
    %c0_7 = arith.constant 0 : index
    %8 = vector.load %arg4[%c0_6, %c0_7] : memref<128x128xf32, #tpu.memory_space<vmem>>, vector<128x128xf32>
    %cst_8 = arith.constant dense<0.000000e+00> : vector<8x128xf32>
    %9 = tpu.matmul %7, %8, %cst_8 {dimension_numbers = #tpu.dot_dimension_numbers<[1], [0], [0], [1], [0, 0, 1, 1], [], []>} : vector<8x128xf32>, vector<128x128xf32>, vector<8x128xf32> -> vector<8x128xf32>
    %c0_9 = arith.constant 0 : index
    %c0_10 = arith.constant 0 : index
    %10 = vector.load %arg5[%c0_9, %c0_10] : memref<1x128xf32, #tpu.memory_space<vmem>>, vector<1x128xf32>
    %11 = vector.broadcast %10 : vector<1x128xf32> to vector<8x128xf32>
    %12 = arith.addf %9, %11 : vector<8x128xf32>
    %cst_11 = arith.constant 0.000000e+00 : f32
    %13 = vector.broadcast %cst_11 : f32 to vector<8x128xf32>
    %14 = arith.maximumf %12, %13 : vector<8x128xf32>
    %c0_12 = arith.constant 0 : index
    %c0_13 = arith.constant 0 : index
    %15 = vector.load %arg6[%c0_12, %c0_13] : memref<128x128xf32, #tpu.memory_space<vmem>>, vector<128x128xf32>
    %cst_14 = arith.constant dense<0.000000e+00> : vector<8x128xf32>
    %16 = tpu.matmul %14, %15, %cst_14 {dimension_numbers = #tpu.dot_dimension_numbers<[1], [0], [0], [1], [0, 0, 1, 1], [], []>} : vector<8x128xf32>, vector<128x128xf32>, vector<8x128xf32> -> vector<8x128xf32>
    %c0_15 = arith.constant 0 : index
    %c0_16 = arith.constant 0 : index
    %17 = vector.load %arg7[%c0_15, %c0_16] : memref<1x128xf32, #tpu.memory_space<vmem>>, vector<1x128xf32>
    %18 = vector.broadcast %17 : vector<1x128xf32> to vector<8x128xf32>
    %19 = arith.addf %16, %18 : vector<8x128xf32>
    %c0_17 = arith.constant 0 : index
    %c0_18 = arith.constant 0 : index
    %20 = vector.load %arg8[%c0_17, %c0_18] : memref<8x128xf32, #tpu.memory_space<vmem>>, vector<8x128xf32>
    tpu.vector_store %arg8[%c0_17, %c0_18], %19 {strides = array<i32>} : memref<8x128xf32, #tpu.memory_space<vmem>>, vector<8x128xf32>,
    return
  }
  func.func @transform_0(%arg0: i32) -> (i32, i32) {
    %c0_i32 = arith.constant 0 : i32
    %c0_i32_0 = arith.constant 0 : i32
    return %arg0, %c0_i32 : i32, i32
  }
  func.func @transform_1(%arg0: i32) -> (i32, i32) {
    %c0_i32 = arith.constant 0 : i32
    %c0_i32_0 = arith.constant 0 : i32
    %c0_i32_1 = arith.constant 0 : i32
    return %c0_i32, %c0_i32_0 : i32, i32
  }
  func.func @transform_2(%arg0: i32) -> (i32, i32) {
    %c0_i32 = arith.constant 0 : i32
    %c0_i32_0 = arith.constant 0 : i32
    %c0_i32_1 = arith.constant 0 : i32
    return %c0_i32, %c0_i32_0 : i32, i32
  }
  func.func @transform_3(%arg0: i32) -> (i32, i32) {
    %c0_i32 = arith.constant 0 : i32
    %c0_i32_0 = arith.constant 0 : i32
    %c0_i32_1 = arith.constant 0 : i32
    return %c0_i32, %c0_i32_0 : i32, i32
  }
  func.func @transform_4(%arg0: i32) -> (i32, i32) {
    %c0_i32 = arith.constant 0 : i32
    %c0_i32_0 = arith.constant 0 : i32
    %c0_i32_1 = arith.constant 0 : i32
    return %c0_i32, %c0_i32_0 : i32, i32
  }
  func.func @transform_5(%arg0: i32) -> (i32, i32) {
    %c0_i32 = arith.constant 0 : i32
    %c0_i32_0 = arith.constant 0 : i32
    %c0_i32_1 = arith.constant 0 : i32
    return %c0_i32, %c0_i32_0 : i32, i32
  }
  func.func @transform_6(%arg0: i32) -> (i32, i32) {
    %c0_i32 = arith.constant 0 : i32
    %c0_i32_0 = arith.constant 0 : i32
    %c0_i32_1 = arith.constant 0 : i32
    return %c0_i32, %c0_i32_0 : i32, i32
  }
  func.func @transform_7(%arg0: i32) -> (i32, i32) {
    %c0_i32 = arith.constant 0 : i32
    %c0_i32_0 = arith.constant 0 : i32
    return %arg0, %c0_i32 : i32, i32
  }
}

</mosaic_0001>

<bundles_post_ra>
// kernel: net_forward.5
= control target key start
LH: loop header
LB: loop body
LE: loop exit
PB: predicated region body
PF: predicated region fallthrough
CT: control target
= control target key end

     0   :  { %vm890_vm0 = vmmov 0   ;;  %s1322_s1 = inlined_call_operand.vmem [shape: f32[640,128], index: 1, kind: input, shape index: {}]   ;;  %s1323_s0 = inlined_call_operand.vmem [shape: f32[8,640], index: 0, kind: input, shape index: {}]   ;;  %s1324_s3 = inlined_call_operand.vmem [shape: f32[128,128], index: 3, kind: input, shape index: {}]   ;;  %s1325_s5 = inlined_call_operand.vmem [shape: f32[128,128], index: 5, kind: input, shape index: {}]   ;;  %s1326_s2 = inlined_call_operand.vmem [shape: f32[1,128], index: 2, kind: input, shape index: {}]   ;;  %s1327_s4 = inlined_call_operand.vmem [shape: f32[1,128], index: 4, kind: input, shape index: {}]   ;;  %s1328_s6 = inlined_call_operand.vmem [shape: f32[1,128], index: 6, kind: input, shape index: {}]   ;;  %s1329_s7 = inlined_call_operand.vmem [shape: f32[8,128], index: 7, kind: output, shape index: {}]  }
   0x1   :  { %v47_v0 = vld [vmem:[%s1322_s1 + $0x80] sm:$0xff]  ;;  %v48_v1 = vld [vmem:[%s1322_s1 + $0x88] sm:$0xff]  ;;  %v49_v11 = vld [vmem:[%s1322_s1 + $0x90] sm:$0xff] }
   0x2   :  { %v31_v2 = vld [vmem:[%s1322_s1] sm:$0xff]  ;;  %v750_v3 = vpack.c.bf16 %v48_v1, %v47_v0  ;;  %v32_v4 = vld [vmem:[%s1322_s1 + $0x8] sm:$0xff]  ;;  %v50_v13 = vld [vmem:[%s1322_s1 + $0x98] sm:$0xff] }
   0x3   :  { %v79_v5 = vld [vmem:[%s1322_s1 + $0x180] sm:$0xff]  ;;  %v80_v6 = vld [vmem:[%s1322_s1 + $0x188] sm:$0xff]  ;;  %v752_v7 = vpack.c.bf16 %v32_v4, %v31_v2  ;;  %v33_v14 = vld [vmem:[%s1322_s1 + $0x10] sm:$0xff]  ;;  %v754_v16 = vpack.c.bf16 %v50_v13, %v49_v11 }
   0x4   :  { %v782_v8 = vpack.c.bf16 %v80_v6, %v79_v5  ;;  %v63_v9 = vld [vmem:[%s1322_s1 + $0x100] sm:$0xff]  ;;  %v64_v10 = vld [vmem:[%s1322_s1 + $0x108] sm:$0xff]  ;;  %751 = vmatprep.subr.bf16.mxu0 %v750_v3  ;;  %v34_v15 = vld [vmem:[%s1322_s1 + $0x18] sm:$0xff] }
   0x5   :  { %v784_v12 = vpack.c.bf16 %v64_v10, %v63_v9  ;;  %753 = vmatpush3.bf16.msra.mxu0 %v752_v7  ;;  %v756_v17 = vpack.c.bf16 %v34_v15, %v33_v14  ;;  %v81_v18 = vld [vmem:[%s1322_s1 + $0x190] sm:$0xff]  ;;  %v82_v19 = vld [vmem:[%s1322_s1 + $0x198] sm:$0xff]  ;;  %v51_v23 = vld [vmem:[%s1322_s1 + $0xa0] sm:$0xff] }
   0x6   :  { %783 = vmatprep.subr.bf16.mxu1 %v782_v8  ;;  %v65_v20 = vld [vmem:[%s1322_s1 + $0x110] sm:$0xff]  ;;  %v786_v21 = vpack.c.bf16 %v82_v19, %v81_v18  ;;  %v66_v22 = vld [vmem:[%s1322_s1 + $0x118] sm:$0xff]  ;;  %v52_v24 = vld [vmem:[%s1322_s1 + $0xa8] sm:$0xff]  ;;  %755 = vmatprep.subr.bf16.mxu0 %v754_v16 }
   0x7   :  { %785 = vmatpush3.bf16.msra.mxu1 %v784_v12  ;;  %v788_v25 = vpack.c.bf16 %v66_v22, %v65_v20  ;;  %v758_v26 = vpack.c.bf16 %v52_v24, %v51_v23  ;;  %v35_v27 = vld [vmem:[%s1322_s1 + $0x20] sm:$0xff]  ;;  %v36_v28 = vld [vmem:[%s1322_s1 + $0x28] sm:$0xff]  ;;  %v53_v35 = vld [vmem:[%s1322_s1 + $0xb0] sm:$0xff] }
   0x8   :  { %v83_v29 = vld [vmem:[%s1322_s1 + $0x1a0] sm:$0xff]  ;;  %787 = vmatprep.subr.bf16.mxu1 %v786_v21  ;;  %v84_v30 = vld [vmem:[%s1322_s1 + $0x1a8] sm:$0xff]  ;;  %v760_v33 = vpack.c.bf16 %v36_v28, %v35_v27  ;;  %v54_v36 = vld [vmem:[%s1322_s1 + $0xb8] sm:$0xff] }
   0x9   :  { %v67_v31 = vld [vmem:[%s1322_s1 + $0x120] sm:$0xff]  ;;  %v68_v32 = vld [vmem:[%s1322_s1 + $0x128] sm:$0xff]  ;;  %757 = vmatpush3.bf16.msra.mxu0 %v756_v17  ;;  %v790_v34 = vpack.c.bf16 %v84_v30, %v83_v29  ;;  %v37_v37 = vld [vmem:[%s1322_s1 + $0x30] sm:$0xff]  ;;  %v762_v39 = vpack.c.bf16 %v54_v36, %v53_v35 }
   0xa   :  { %759 = vmatprep.subr.bf16.mxu0 %v758_v26  ;;  %v792_v38 = vpack.c.bf16 %v68_v32, %v67_v31  ;;  %v38_v40 = vld [vmem:[%s1322_s1 + $0x38] sm:$0xff]  ;;  %v85_v41 = vld [vmem:[%s1322_s1 + $0x1b0] sm:$0xff]  ;;  %v55_v46 = vld [vmem:[%s1322_s1 + $0xc0] sm:$0xff] }
   0xb   :  { %789 = vmatpush3.bf16.msra.mxu1 %v788_v25  ;;  %v86_v42 = vld [vmem:[%s1322_s1 + $0x1b8] sm:$0xff]  ;;  %v69_v44 = vld [vmem:[%s1322_s1 + $0x130] sm:$0xff]  ;;  %v56_v47 = vld [vmem:[%s1322_s1 + $0xc8] sm:$0xff]  ;;  %v764_v48 = vpack.c.bf16 %v38_v40, %v37_v37 }
   0xc   :  { %791 = vmatprep.subr.bf16.mxu1 %v790_v34  ;;  %v794_v43 = vpack.c.bf16 %v86_v42, %v85_v41  ;;  %v70_v45 = vld [vmem:[%s1322_s1 + $0x138] sm:$0xff]  ;;  %v87_v49 = vld [vmem:[%s1322_s1 + $0x1c0] sm:$0xff]  ;;  %v88_v50 = vld [vmem:[%s1322_s1 + $0x1c8] sm:$0xff]  ;;  %v766_v52 = vpack.c.bf16 %v56_v47, %v55_v46 }
   0xd   :  { %761 = vmatpush3.bf16.msra.mxu0 %v760_v33  ;;  %v796_v51 = vpack.c.bf16 %v70_v45, %v69_v44  ;;  %v39_v53 = vld [vmem:[%s1322_s1 + $0x40] sm:$0xff]  ;;  %v40_v54 = vld [vmem:[%s1322_s1 + $0x48] sm:$0xff]  ;;  %v798_v56 = vpack.c.bf16 %v88_v50, %v87_v49  ;;  %v57_v58 = vld [vmem:[%s1322_s1 + $0xd0] sm:$0xff]  ;;  %v891_v45 = vmov 0.0  }
   0xe   :  { %763 = vmatprep.subr.bf16.mxu0 %v762_v39  ;;  %v71_v55 = vld [vmem:[%s1322_s1 + $0x140] sm:$0xff]  ;;  %v72_v57 = vld [vmem:[%s1322_s1 + $0x148] sm:$0xff]  ;;  %v58_v59 = vld [vmem:[%s1322_s1 + $0xd8] sm:$0xff]  ;;  %v768_v62 = vpack.c.bf16 %v40_v54, %v39_v53 }
   0xf   :  { %793 = vmatpush3.bf16.msra.mxu1 %v792_v38  ;;  %v89_v60 = vld [vmem:[%s1322_s1 + $0x1d0] sm:$0xff]  ;;  %v90_v61 = vld [vmem:[%s1322_s1 + $0x1d8] sm:$0xff]  ;;  %v800_v63 = vpack.c.bf16 %v72_v57, %v71_v55  ;;  %v770_v0 = vpack.c.bf16 %v58_v59, %v57_v58  ;;  %v59_v6 = vld [vmem:[%s1322_s1 + $0xe0] sm:$0xff]  ;;  %v889_v38 = vmov 0.0|0.0  }
  0x10   :  { %795 = vmatprep.subr.bf16.mxu1 %v794_v43  ;;  %v41_v1 = vld [vmem:[%s1322_s1 + $0x50] sm:$0xff]  ;;  %v42_v2 = vld [vmem:[%s1322_s1 + $0x58] sm:$0xff]  ;;  %v802_v4 = vpack.c.bf16 %v90_v61, %v89_v60  ;;  %v60_v7 = vld [vmem:[%s1322_s1 + $0xe8] sm:$0xff] }
  0x11   :  { %765 = vmatpush3.bf16.msra.mxu0 %v764_v48  ;;  %v73_v3 = vld [vmem:[%s1322_s1 + $0x150] sm:$0xff]  ;;  %v74_v5 = vld [vmem:[%s1322_s1 + $0x158] sm:$0xff]  ;;  %v91_v8 = vld [vmem:[%s1322_s1 + $0x1e0] sm:$0xff]  ;;  %v772_v10 = vpack.c.bf16 %v42_v2, %v41_v1  ;;  %v774_v14 = vpack.c.bf16 %v60_v7, %v59_v6 }
  0x12   :  { %767 = vmatprep.subr.bf16.mxu0 %v766_v52  ;;  %v92_v9 = vld [vmem:[%s1322_s1 + $0x1e8] sm:$0xff]  ;;  %v43_v11 = vld [vmem:[%s1322_s1 + $0x60] sm:$0xff]  ;;  %v804_v13 = vpack.c.bf16 %v74_v5, %v73_v3  ;;  %v61_v19 = vld [vmem:[%s1322_s1 + $0xf0] sm:$0xff] }
  0x13   :  { %797 = vmatpush3.bf16.msra.mxu1 %v796_v51  ;;  %v27_v12 = vld [vmem:[%s1323_s0 + $0x8] sm:$0xff]  ;;  %v75_v16 = vld [vmem:[%s1322_s1 + $0x160] sm:$0xff]  ;;  %v806_v18 = vpack.c.bf16 %v92_v9, %v91_v8  ;;  %v62_v20 = vld [vmem:[%s1322_s1 + $0xf8] sm:$0xff] }
  0x14   :  { %799 = vmatprep.subr.bf16.mxu1 %v798_v56  ;;  %v44_v15 = vld [vmem:[%s1322_s1 + $0x68] sm:$0xff]  ;;  %182 = vmatprep.mubr.f32.mxu0 %v27_v12  ;;  %v29_v21 = vld [vmem:[%s1323_s0 + $0x18] sm:$0xff]  ;;  %v93_v22 = vld [vmem:[%s1322_s1 + $0x1f0] sm:$0xff]  ;;  %v778_v26 = vpack.c.bf16 %v62_v20, %v61_v19 }
  0x15   :  { %769 = vmatpush3.bf16.msra.mxu0 %v768_v62  ;;  %v76_v17 = vld [vmem:[%s1322_s1 + $0x168] sm:$0xff]  ;;  %v94_v23 = vld [vmem:[%s1322_s1 + $0x1f8] sm:$0xff]  ;;  %252 = vmatprep.mubr.f32.mxu1 %v29_v21  ;;  %v776_v24 = vpack.c.bf16 %v44_v15, %v43_v11  ;;  %v45_v27 = vld [vmem:[%s1322_s1 + $0x70] sm:$0xff] }
  0x16   :  { %771 = vmatprep.subr.bf16.mxu0 %v770_v0  ;;  %v808_v25 = vpack.c.bf16 %v76_v17, %v75_v16  ;;  %v46_v28 = vld [vmem:[%s1322_s1 + $0x78] sm:$0xff]  ;;  %v810_v29 = vpack.c.bf16 %v94_v23, %v93_v22  ;;  %v77_v30 = vld [vmem:[%s1322_s1 + $0x170] sm:$0xff]  ;;  %v95_v34 = vld [vmem:[%s1322_s1 + $0x200] sm:$0xff] }
  0x17   :  { %801 = vmatpush3.bf16.msra.mxu1 %v800_v63  ;;  %v78_v31 = vld [vmem:[%s1322_s1 + $0x178] sm:$0xff]  ;;  %v780_v32 = vpack.c.bf16 %v46_v28, %v45_v27  ;;  %v96_v35 = vld [vmem:[%s1322_s1 + $0x208] sm:$0xff]  ;;  %v26_v36 = vld [vmem:[%s1323_s0] sm:$0xff] }
  0x18   :  { %803 = vmatprep.subr.bf16.mxu1 %v802_v4  ;;  %v812_v33 = vpack.c.bf16 %v78_v31, %v77_v30  ;;  %v815_v37 = vpack.c.bf16 %v96_v35, %v95_v34  ;;  %v28_v39 = vld [vmem:[%s1323_s0 + $0x10] sm:$0xff]  ;;  %v98_v41 = vld [vmem:[%s1322_s1 + $0x218] sm:$0xff]  ;;  %v99_v43 = vld [vmem:[%s1322_s1 + $0x220] sm:$0xff] }
  0x19   :  { %773 = vmatpush3.bf16.msra.mxu0 %v772_v10  ;;  %v97_v40 = vld [vmem:[%s1322_s1 + $0x210] sm:$0xff]  ;;  %v100_v44 = vld [vmem:[%s1322_s1 + $0x228] sm:$0xff]  ;;  %v102_v48 = vld [vmem:[%s1322_s1 + $0x238] sm:$0xff] }
  0x1a   :  { %775 = vmatprep.subr.bf16.mxu0 %v774_v14  ;;  %v818_v42 = vpack.c.bf16 %v98_v41, %v97_v40  ;;  %v821_v46 = vpack.c.bf16 %v100_v44, %v99_v43  ;;  %v101_v47 = vld [vmem:[%s1322_s1 + $0x230] sm:$0xff]  ;;  %v103_v50 = vld [vmem:[%s1322_s1 + $0x240] sm:$0xff]  ;;  %v104_v51 = vld [vmem:[%s1322_s1 + $0x248] sm:$0xff] }
  0x1b   :  { %805 = vmatpush3.bf16.msra.mxu1 %v804_v13  ;;  %v824_v49 = vpack.c.bf16 %v102_v48, %v101_v47  ;;  %v827_v52 = vpack.c.bf16 %v104_v51, %v103_v50  ;;  %v105_v53 = vld [vmem:[%s1322_s1 + $0x250] sm:$0xff]  ;;  %v106_v54 = vld [vmem:[%s1322_s1 + $0x258] sm:$0xff]  ;;  %v107_v56 = vld [vmem:[%s1322_s1 + $0x260] sm:$0xff] }
  0x1c   :  { %807 = vmatprep.subr.bf16.mxu1 %v806_v18  ;;  %v830_v55 = vpack.c.bf16 %v106_v54, %v105_v53  ;;  %v108_v57 = vld [vmem:[%s1322_s1 + $0x268] sm:$0xff]  ;;  %v109_v59 = vld [vmem:[%s1322_s1 + $0x270] sm:$0xff]  ;;  %v110_v60 = vld [vmem:[%s1322_s1 + $0x278] sm:$0xff] }
  0x1d   :  { %777 = vmatpush3.bf16.msra.mxu0 %v776_v24  ;;  %v833_v58 = vpack.c.bf16 %v108_v57, %v107_v56  ;;  %v836_v61 = vpack.c.bf16 %v110_v60, %v109_v59  ;;  %v30_v62 = vld [vmem:[%s1323_s0 + $0x20] sm:$0xff]  ;;  %v330_v0 = vld [vmem:[%s1324_s3 + $0x8] sm:$0xff]  ;;  %v331_v2 = vld [vmem:[%s1324_s3 + $0x10] sm:$0xff] }
  0x1e   :  { %779 = vmatprep.subr.bf16.mxu0 %v778_v26  ;;  %v329_v63 = vld [vmem:[%s1324_s3] sm:$0xff]  ;;  %v332_v3 = vld [vmem:[%s1324_s3 + $0x18] sm:$0xff]  ;;  %v334_v6 = vld [vmem:[%s1324_s3 + $0x28] sm:$0xff] }
  0x1f   :  { %809 = vmatpush3.bf16.msra.mxu1 %v808_v25  ;;  %v839_v1 = vpack.c.bf16 %v330_v0, %v329_v63  ;;  %v842_v4 = vpack.c.bf16 %v332_v3, %v331_v2  ;;  %v333_v5 = vld [vmem:[%s1324_s3 + $0x20] sm:$0xff]  ;;  %v335_v8 = vld [vmem:[%s1324_s3 + $0x30] sm:$0xff]  ;;  %v336_v9 = vld [vmem:[%s1324_s3 + $0x38] sm:$0xff] }
  0x20   :  { %811 = vmatprep.subr.bf16.mxu1 %v810_v29  ;;  %v845_v7 = vpack.c.bf16 %v334_v6, %v333_v5  ;;  %v848_v10 = vpack.c.bf16 %v336_v9, %v335_v8  ;;  %v337_v11 = vld [vmem:[%s1324_s3 + $0x40] sm:$0xff]  ;;  %v338_v12 = vld [vmem:[%s1324_s3 + $0x48] sm:$0xff]  ;;  %v339_v14 = vld [vmem:[%s1324_s3 + $0x50] sm:$0xff] }
  0x21   :  { %781 = vmatpush3.bf16.msra.mxu0 %v780_v32  ;;  %v851_v13 = vpack.c.bf16 %v338_v12, %v337_v11  ;;  %v340_v15 = vld [vmem:[%s1324_s3 + $0x58] sm:$0xff]  ;;  %v341_v17 = vld [vmem:[%s1324_s3 + $0x60] sm:$0xff]  ;;  %v342_v18 = vld [vmem:[%s1324_s3 + $0x68] sm:$0xff] }
  0x22   :  { %814 = vmatprep.subr.bf16.mxu0 %v889_v38  ;;  %v854_v16 = vpack.c.bf16 %v340_v15, %v339_v14  ;;  %v857_v19 = vpack.c.bf16 %v342_v18, %v341_v17  ;;  %v343_v20 = vld [vmem:[%s1324_s3 + $0x70] sm:$0xff]  ;;  %v344_v21 = vld [vmem:[%s1324_s3 + $0x78] sm:$0xff]  ;;  %v423_v23 = vld [vmem:[%s1325_s5] sm:$0xff] }
  0x23   :  { %813 = vmatpush3.bf16.msra.mxu1 %v812_v33  ;;  %v860_v22 = vpack.c.bf16 %v344_v21, %v343_v20  ;;  %v424_v24 = vld [vmem:[%s1325_s5 + $0x8] sm:$0xff]  ;;  %v425_v25 = vld [vmem:[%s1325_s5 + $0x10] sm:$0xff]  ;;  %v426_v27 = vld [vmem:[%s1325_s5 + $0x18] sm:$0xff] }
  0x24   :  { %838 = vmatprep.subr.bf16.mxu1 %v889_v38  ;;  %183 = vmatmul.mubr.f32.vlgmr.msra.gmra.mrb[0].mxu0 %v26_v36  ;;  %v863_v26 = vpack.c.bf16 %v424_v24, %v423_v23  ;;  %v866_v28 = vpack.c.bf16 %v426_v27, %v425_v25  ;;  %v427_v29 = vld [vmem:[%s1325_s5 + $0x20] sm:$0xff]  ;;  %v428_v30 = vld [vmem:[%s1325_s5 + $0x28] sm:$0xff]  ;;  %v429_v32 = vld [vmem:[%s1325_s5 + $0x30] sm:$0xff] }
  0x25   :  { %816 = vmatpush3.bf16.msra.mxu0 %v815_v37  ;;  %677 = vmatprep.mubr.msk.f32.mxu0 %vm890_vm0, %v891_v45  ;;  %v869_v31 = vpack.c.bf16 %v428_v30, %v427_v29  ;;  %v430_v33 = vld [vmem:[%s1325_s5 + $0x38] sm:$0xff]  ;;  %v431_v35 = vld [vmem:[%s1325_s5 + $0x40] sm:$0xff]  ;;  %v432_v36 = vld [vmem:[%s1325_s5 + $0x48] sm:$0xff] }
  0x26   :  { %253 = vmatmul.mubr.f32.vlgmr.msra.gmra.mrb[0].mxu1 %v28_v39  ;;  %817 = vmatprep.subr.bf16.mxu0 %v889_v38  ;;  %v872_v34 = vpack.c.bf16 %v430_v33, %v429_v32  ;;  %v875_v37 = vpack.c.bf16 %v432_v36, %v431_v35  ;;  %v433_v39 = vld [vmem:[%s1325_s5 + $0x50] sm:$0xff]  ;;  %v434_v40 = vld [vmem:[%s1325_s5 + $0x58] sm:$0xff]  ;;  %v436_v43 = vld [vmem:[%s1325_s5 + $0x68] sm:$0xff] }
  0x27   :  { %712 = vmatprep.mubr.msk.f32.mxu1 %vm890_vm0, %v891_v45  ;;  %840 = vmatpush3.bf16.msra.mxu1 %v839_v1  ;;  %v878_v41 = vpack.c.bf16 %v434_v40, %v433_v39  ;;  %v522_v60 = vld [vmem:[%s1327_s4] ss:$0 sm:$0xff] }
  0x28   :  { %841 = vmatprep.subr.bf16.mxu1 %v889_v38  ;;  %v523_v1 = vld [vmem:[%s1328_s6] ss:$0 sm:$0xff] }
  0x29   :  { %819 = vmatpush3.bf16.msra.mxu0 %v818_v42  ;;  %v435_v42 = vld [vmem:[%s1325_s5 + $0x60] sm:$0xff] }
  0x2a   :  { %820 = vmatprep.subr.bf16.mxu0 %v889_v38  ;;  %v881_v44 = vpack.c.bf16 %v436_v43, %v435_v42 }
  0x2b   :  { %843 = vmatpush3.bf16.msra.mxu1 %v842_v4 }
  0x2c   :  { %844 = vmatprep.subr.bf16.mxu1 %v889_v38 }
  0x2d   :  { %822 = vmatpush3.bf16.msra.mxu0 %v821_v46  ;;  %v521_v46 = vld [vmem:[%s1326_s2] ss:$0 sm:$0xff] }
  0x2e   :  { %823 = vmatprep.subr.bf16.mxu0 %v889_v38 }
  0x2f   :  { %846 = vmatpush3.bf16.msra.mxu1 %v845_v7 }
  0x30   :  { %847 = vmatprep.subr.bf16.mxu1 %v889_v38 }
  0x31   :  { %825 = vmatpush3.bf16.msra.mxu0 %v824_v49 }
  0x32   :  { %826 = vmatprep.subr.bf16.mxu0 %v889_v38 }
  0x33   :  { %849 = vmatpush3.bf16.msra.mxu1 %v848_v10 }
  0x34   :  { %850 = vmatprep.subr.bf16.mxu1 %v889_v38 }
  0x35   :  { %828 = vmatpush3.bf16.msra.mxu0 %v827_v52 }
  0x36   :  { %829 = vmatprep.subr.bf16.mxu0 %v889_v38 }
  0x37   :  { %852 = vmatpush3.bf16.msra.mxu1 %v851_v13 }
  0x38   :  { %853 = vmatprep.subr.bf16.mxu1 %v889_v38 }
  0x39   :  { %831 = vmatpush3.bf16.msra.mxu0 %v830_v55 }
  0x3a   :  { %832 = vmatprep.subr.bf16.mxu0 %v889_v38 }
  0x3b   :  { %855 = vmatpush3.bf16.msra.mxu1 %v854_v16 }
  0x3c   :  { %856 = vmatprep.subr.bf16.mxu1 %v889_v38 }
  0x3d   :  { %834 = vmatpush3.bf16.msra.mxu0 %v833_v58  ;;  %v438_v58 = vld [vmem:[%s1325_s5 + $0x78] sm:$0xff] }
  0x3e   :  { %835 = vmatprep.subr.bf16.mxu0 %v889_v38 }
  0x3f   :  { %858 = vmatpush3.bf16.msra.mxu1 %v857_v19 }
  0x40   :  { %859 = vmatprep.subr.bf16.mxu1 %v889_v38 }
  0x41   :  { %837 = vmatpush3.bf16.msra.mxu0 %v836_v61 }
  0x42   :  { %862 = vmatprep.subr.bf16.mxu0 %v889_v38 }
  0x43   :  { %861 = vmatpush3.bf16.msra.mxu1 %v860_v22 }
  0x44   :  { %678 = vmatmul.mubr.f32.vlgmr.msra.gmra.mrb[2].mxu0 %v30_v62 }
  0x45   :  { %747 = vmatprep.mubr.msk.f32.mxu0 %vm890_vm0, %v891_v45  ;;  %864 = vmatpush3.bf16.msra.mxu0 %v863_v26 }
  0x46   :  { %865 = vmatprep.subr.bf16.mxu0 %v889_v38 }
  0x49   :  { %867 = vmatpush3.bf16.msra.mxu0 %v866_v28 }
  0x4a   :  { %868 = vmatprep.subr.bf16.mxu0 %v889_v38 }
  0x4d   :  { %870 = vmatpush3.bf16.msra.mxu0 %v869_v31 }
  0x4e   :  { %871 = vmatprep.subr.bf16.mxu0 %v889_v38 }
  0x51   :  { %873 = vmatpush3.bf16.msra.mxu0 %v872_v34 }
  0x52   :  { %874 = vmatprep.subr.bf16.mxu0 %v889_v38 }
  0x55   :  { %876 = vmatpush3.bf16.msra.mxu0 %v875_v37 }
  0x56   :  { %877 = vmatprep.subr.bf16.mxu0 %v889_v38 }
  0x59   :  { %879 = vmatpush3.bf16.msra.mxu0 %v878_v41 }
  0x5a   :  { %880 = vmatprep.subr.bf16.mxu0 %v889_v38 }
  0x5d   :  { %882 = vmatpush3.bf16.msra.mxu0 %v881_v44 }
  0x5e   :  { %883 = vmatprep.subr.bf16.mxu0 %v889_v38  ;;  %v437_v38 = vld [vmem:[%s1325_s5 + $0x70] sm:$0xff] }
  0x5f   :  { %v884_v59 = vpack.c.bf16 %v438_v58, %v437_v38 }
  0x61   :  { %885 = vmatpush3.bf16.msra.mxu0 %v884_v59 }
  0xf7   :  { %v556_v45 = vpop.f32.mrb[0].mxu0 }
  0xf8   :  { %v557_v47 = vpop.f32.mrb[1].mxu0 }
  0xf9   :  { %v591_v48 = vpop.f32.mrb[0].mxu1  ;;  %v558_v49 = vadd.f32 %v557_v47, %v556_v45 }
  0xfa   :  { %v592_v50 = vpop.f32.mrb[1].mxu1 }
  0xfb   :  { %v593_v51 = vadd.f32 %v592_v50, %v591_v48  ;;  %v185_v52 = vadd.f32 %v558_v49, %v521_v46 }
  0xfd   :  { %v255_v53 = vadd.f32 %v593_v51, %v185_v52 }
 0x117   :  { %v324_v54 = vpop.f32.mrb[2].mxu0 }
 0x118   :  { %v325_v55 = vadd.f32 %v324_v54, %v255_v53  ;;  %v679_v56 = vpop.f32.mrb[3].mxu0 }
 0x11a   :  { %v328_v57 = vmax.f32 %v325_v55, 0.0 }
 0x11c   :  { %713 = vmatmul.mubr.f32.vlgmr.msra.gmra.mrb[2].mxu1 %v328_v57 }
 0x1ef   :  { %v418_v61 = vpop.f32.mrb[2].mxu1 }
 0x1f0   :  { %v419_v62 = vadd.f32 %v522_v60, %v418_v61  ;;  %v714_v63 = vpop.f32.mrb[3].mxu1 }
 0x1f2   :  { %v422_v0 = vmax.f32 %v419_v62, 0.0 }
 0x1f4   :  { %748 = vmatmul.mubr.f32.vlgmr.msra.gmra.mrb[4].mxu0 %v422_v0 }
 0x2c7   :  { %v512_v2 = vpop.f32.mrb[4].mxu0 }
 0x2c8   :  { %v513_v3 = vadd.f32 %v523_v1, %v512_v2  ;;  %v749_v4 = vpop.f32.mrb[5].mxu0 }
 0x2ca   :  { %516 = vst [vmem:[%s1329_s7] sm:$0xff] %v513_v3 }

// kernel: net_forward.4
= control target key start
LH: loop header
LB: loop body
LE: loop exit
PB: predicated region body
PF: predicated region fallthrough
CT: control target
= control target key end

     0   :  { %v2320_v3 = vmov 0.0   ;;  %s3010_s2 = inlined_call_operand.vmem [shape: f32[5,128,256], index: 2, kind: input, shape index: {}]   ;;  %s3011_s0 = inlined_call_operand.vmem [shape: f32[1,56,128], index: 0, kind: input, shape index: {}]   ;;  %s3012_s1 = inlined_call_operand.vmem [shape: f32[1,56,128], index: 1, kind: input, shape index: {}]   ;;  %s3013_s3 = inlined_call_operand.vmem [shape: f32[1,128], index: 3, kind: input, shape index: {}]   ;;  %s3014_s4 = inlined_call_operand.vmem [shape: f32[1,40,128], index: 4, kind: output, shape index: {}]  }
   0x1   :  { %v23_v0 = vld [vmem:[%s3010_s2 + $0x8] sm:$0xff]  ;;  %v25_v1 = vld [vmem:[%s3010_s2 + $0x18] sm:$0xff]  ;;  %v22_v2 = vld [vmem:[%s3010_s2] sm:$0xff]  ;;  %118 = vmatprep.mubr.f32.mxu0 %v2320_v3  ;;  %927 = vmatprep.mubr.f32.mxu1 %v2320_v3 }
   0x2   :  { %v1919_v4 = vpack.c.bf16 %v25_v1, %v23_v0  ;;  %v24_v5 = vld [vmem:[%s3010_s2 + $0x10] sm:$0xff]  ;;  %v27_v6 = vld [vmem:[%s3010_s2 + $0x28] sm:$0xff]  ;;  %v29_v7 = vld [vmem:[%s3010_s2 + $0x38] sm:$0xff] }
   0x3   :  { %v1921_v8 = vpack.c.bf16 %v24_v5, %v22_v2  ;;  %v1923_v9 = vpack.c.bf16 %v29_v7, %v27_v6  ;;  %v26_v10 = vld [vmem:[%s3010_s2 + $0x20] sm:$0xff]  ;;  %v28_v11 = vld [vmem:[%s3010_s2 + $0x30] sm:$0xff]  ;;  %v31_v12 = vld [vmem:[%s3010_s2 + $0x48] sm:$0xff] }
   0x4   :  { %1920 = vmatprep.subr.bf16.mxu0 %v1919_v4  ;;  %2080 = vmatprep.subr.bf16.mxu1 %v1919_v4  ;;  %v33_v13 = vld [vmem:[%s3010_s2 + $0x58] sm:$0xff]  ;;  %v1925_v14 = vpack.c.bf16 %v28_v11, %v26_v10  ;;  %v30_v16 = vld [vmem:[%s3010_s2 + $0x40] sm:$0xff]  ;;  %v32_v17 = vld [vmem:[%s3010_s2 + $0x50] sm:$0xff] }
   0x5   :  { %1922 = vmatpush1.bf16.msra.mxu0 %v1921_v8  ;;  %2082 = vmatpush1.bf16.msra.mxu1 %v1921_v8  ;;  %v1927_v15 = vpack.c.bf16 %v33_v13, %v31_v12  ;;  %v35_v18 = vld [vmem:[%s3010_s2 + $0x68] sm:$0xff]  ;;  %v37_v19 = vld [vmem:[%s3010_s2 + $0x78] sm:$0xff]  ;;  %v1929_v20 = vpack.c.bf16 %v32_v17, %v30_v16  ;;  %v34_v22 = vld [vmem:[%s3010_s2 + $0x60] sm:$0xff] }
   0x6   :  { %1924 = vmatprep.subr.bf16.mxu0 %v1923_v9  ;;  %2084 = vmatprep.subr.bf16.mxu1 %v1923_v9  ;;  %v1931_v21 = vpack.c.bf16 %v37_v19, %v35_v18  ;;  %v36_v23 = vld [vmem:[%s3010_s2 + $0x70] sm:$0xff]  ;;  %v39_v24 = vld [vmem:[%s3010_s2 + $0x88] sm:$0xff]  ;;  %v41_v25 = vld [vmem:[%s3010_s2 + $0x98] sm:$0xff] }
   0x7   :  { %v1933_v26 = vpack.c.bf16 %v36_v23, %v34_v22  ;;  %v1935_v27 = vpack.c.bf16 %v41_v25, %v39_v24  ;;  %v38_v28 = vld [vmem:[%s3010_s2 + $0x80] sm:$0xff]  ;;  %v40_v29 = vld [vmem:[%s3010_s2 + $0x90] sm:$0xff]  ;;  %v43_v30 = vld [vmem:[%s3010_s2 + $0xa8] sm:$0xff] }
   0x8   :  { %v45_v31 = vld [vmem:[%s3010_s2 + $0xb8] sm:$0xff]  ;;  %v1937_v32 = vpack.c.bf16 %v40_v29, %v38_v28  ;;  %v42_v34 = vld [vmem:[%s3010_s2 + $0xa0] sm:$0xff]  ;;  %v44_v35 = vld [vmem:[%s3010_s2 + $0xb0] sm:$0xff] }
   0x9   :  { %1926 = vmatpush1.bf16.msra.mxu0 %v1925_v14  ;;  %2086 = vmatpush1.bf16.msra.mxu1 %v1925_v14  ;;  %v1939_v33 = vpack.c.bf16 %v45_v31, %v43_v30  ;;  %v47_v36 = vld [vmem:[%s3010_s2 + $0xc8] sm:$0xff]  ;;  %v49_v37 = vld [vmem:[%s3010_s2 + $0xd8] sm:$0xff]  ;;  %v1941_v38 = vpack.c.bf16 %v44_v35, %v42_v34  ;;  %v46_v40 = vld [vmem:[%s3010_s2 + $0xc0] sm:$0xff] }
   0xa   :  { %1928 = vmatprep.subr.bf16.mxu0 %v1927_v15  ;;  %2088 = vmatprep.subr.bf16.mxu1 %v1927_v15  ;;  %v1943_v39 = vpack.c.bf16 %v49_v37, %v47_v36  ;;  %v48_v41 = vld [vmem:[%s3010_s2 + $0xd0] sm:$0xff]  ;;  %v51_v42 = vld [vmem:[%s3010_s2 + $0xe8] sm:$0xff]  ;;  %v53_v43 = vld [vmem:[%s3010_s2 + $0xf8] sm:$0xff] }
   0xb   :  { %v1945_v44 = vpack.c.bf16 %v48_v41, %v46_v40  ;;  %v1947_v45 = vpack.c.bf16 %v53_v43, %v51_v42  ;;  %v50_v46 = vld [vmem:[%s3010_s2 + $0xe0] sm:$0xff]  ;;  %v52_v47 = vld [vmem:[%s3010_s2 + $0xf0] sm:$0xff]  ;;  %v1663_v48 = vld [vmem:[%s3010_s2 + $0x108] sm:$0xff] }
   0xc   :  { %v1665_v49 = vld [vmem:[%s3010_s2 + $0x118] sm:$0xff]  ;;  %v1949_v50 = vpack.c.bf16 %v52_v47, %v50_v46  ;;  %v1662_v52 = vld [vmem:[%s3010_s2 + $0x100] sm:$0xff]  ;;  %v1664_v53 = vld [vmem:[%s3010_s2 + $0x110] sm:$0xff] }
   0xd   :  { %1930 = vmatpush1.bf16.msra.mxu0 %v1929_v20  ;;  %2090 = vmatpush1.bf16.msra.mxu1 %v1929_v20  ;;  %v1951_v51 = vpack.c.bf16 %v1665_v49, %v1663_v48  ;;  %v1667_v54 = vld [vmem:[%s3010_s2 + $0x128] sm:$0xff]  ;;  %v1669_v55 = vld [vmem:[%s3010_s2 + $0x138] sm:$0xff]  ;;  %v17_v56 = vld [vmem:[%s3011_s0] sm:$0xff]  ;;  %v1953_v57 = vpack.c.bf16 %v1664_v53, %v1662_v52 }
   0xe   :  { %1932 = vmatprep.subr.bf16.mxu0 %v1931_v21  ;;  %2092 = vmatprep.subr.bf16.mxu1 %v1931_v21  ;;  %v2468_v58 = vld [vmem:[%s3012_s1] sm:$0xff]  ;;  %v1955_v59 = vpack.c.bf16 %v1669_v55, %v1667_v54  ;;  %v1668_v61 = vld [vmem:[%s3010_s2 + $0x130] sm:$0xff]  ;;  %v1671_v62 = vld [vmem:[%s3010_s2 + $0x148] sm:$0xff] }
   0xf   :  { %v1666_v60 = vld [vmem:[%s3010_s2 + $0x120] sm:$0xff]  ;;  %v1673_v63 = vld [vmem:[%s3010_s2 + $0x158] sm:$0xff]  ;;  %v2486_v1 = vld [vmem:[%s3011_s0 + $0x8] sm:$0xff] }
  0x10   :  { %v1957_v0 = vpack.c.bf16 %v1668_v61, %v1666_v60  ;;  %v2491_v2 = vld [vmem:[%s3012_s1 + $0x8] sm:$0xff]  ;;  %v1959_v4 = vpack.c.bf16 %v1673_v63, %v1671_v62  ;;  %v1670_v5 = vld [vmem:[%s3010_s2 + $0x140] sm:$0xff]  ;;  %v1672_v6 = vld [vmem:[%s3010_s2 + $0x150] sm:$0xff] }
  0x11   :  { %1934 = vmatpush1.bf16.msra.mxu0 %v1933_v26  ;;  %2094 = vmatpush1.bf16.msra.mxu1 %v1933_v26  ;;  %v1675_v7 = vld [vmem:[%s3010_s2 + $0x168] sm:$0xff]  ;;  %v1677_v8 = vld [vmem:[%s3010_s2 + $0x178] sm:$0xff]  ;;  %v1961_v9 = vpack.c.bf16 %v1672_v6, %v1670_v5  ;;  %v2512_v10 = vld [vmem:[%s3011_s0 + $0x10] sm:$0xff] }
  0x12   :  { %1936 = vmatprep.subr.bf16.mxu0 %v1935_v27  ;;  %2096 = vmatprep.subr.bf16.mxu1 %v1935_v27  ;;  %v2517_v11 = vld [vmem:[%s3012_s1 + $0x10] sm:$0xff]  ;;  %v1963_v12 = vpack.c.bf16 %v1677_v8, %v1675_v7  ;;  %v1674_v13 = vld [vmem:[%s3010_s2 + $0x160] sm:$0xff]  ;;  %v1679_v15 = vld [vmem:[%s3010_s2 + $0x188] sm:$0xff] }
  0x13   :  { %v1676_v14 = vld [vmem:[%s3010_s2 + $0x170] sm:$0xff]  ;;  %v1681_v16 = vld [vmem:[%s3010_s2 + $0x198] sm:$0xff]  ;;  %v1678_v21 = vld [vmem:[%s3010_s2 + $0x180] sm:$0xff] }
  0x14   :  { %v1965_v17 = vpack.c.bf16 %v1676_v14, %v1674_v13  ;;  %v2538_v18 = vld [vmem:[%s3011_s0 + $0x18] sm:$0xff]  ;;  %v1967_v20 = vpack.c.bf16 %v1681_v16, %v1679_v15  ;;  %v1680_v22 = vld [vmem:[%s3010_s2 + $0x190] sm:$0xff]  ;;  %v1683_v23 = vld [vmem:[%s3010_s2 + $0x1a8] sm:$0xff] }
  0x15   :  { %1938 = vmatpush1.bf16.msra.mxu0 %v1937_v32  ;;  %2098 = vmatpush1.bf16.msra.mxu1 %v1937_v32  ;;  %v2543_v19 = vld [vmem:[%s3012_s1 + $0x18] sm:$0xff]  ;;  %v1969_v25 = vpack.c.bf16 %v1680_v22, %v1678_v21  ;;  %v2564_v26 = vld [vmem:[%s3011_s0 + $0x20] sm:$0xff]  ;;  %v1684_v30 = vld [vmem:[%s3010_s2 + $0x1b0] sm:$0xff] }
  0x16   :  { %1940 = vmatprep.subr.bf16.mxu0 %v1939_v33  ;;  %2100 = vmatprep.subr.bf16.mxu1 %v1939_v33  ;;  %v1685_v24 = vld [vmem:[%s3010_s2 + $0x1b8] sm:$0xff]  ;;  %v2569_v27 = vld [vmem:[%s3012_s1 + $0x20] sm:$0xff]  ;;  %v1687_v31 = vld [vmem:[%s3010_s2 + $0x1c8] sm:$0xff] }
  0x17   :  { %v1971_v28 = vpack.c.bf16 %v1685_v24, %v1683_v23  ;;  %v1682_v29 = vld [vmem:[%s3010_s2 + $0x1a0] sm:$0xff]  ;;  %v1689_v32 = vld [vmem:[%s3010_s2 + $0x1d8] sm:$0xff]  ;;  %v1688_v36 = vld [vmem:[%s3010_s2 + $0x1d0] sm:$0xff] }
  0x18   :  { %v1973_v33 = vpack.c.bf16 %v1684_v30, %v1682_v29  ;;  %v1975_v34 = vpack.c.bf16 %v1689_v32, %v1687_v31  ;;  %v1686_v35 = vld [vmem:[%s3010_s2 + $0x1c0] sm:$0xff]  ;;  %v1691_v37 = vld [vmem:[%s3010_s2 + $0x1e8] sm:$0xff]  ;;  %v1692_v42 = vld [vmem:[%s3010_s2 + $0x1f0] sm:$0xff] }
  0x19   :  { %1942 = vmatpush1.bf16.msra.mxu0 %v1941_v38  ;;  %2102 = vmatpush1.bf16.msra.mxu1 %v1941_v38  ;;  %v1693_v38 = vld [vmem:[%s3010_s2 + $0x1f8] sm:$0xff]  ;;  %v1690_v41 = vld [vmem:[%s3010_s2 + $0x1e0] sm:$0xff]  ;;  %v1695_v43 = vld [vmem:[%s3010_s2 + $0x208] sm:$0xff] }
  0x1a   :  { %1944 = vmatprep.subr.bf16.mxu0 %v1943_v39  ;;  %2104 = vmatprep.subr.bf16.mxu1 %v1943_v39  ;;  %v1977_v39 = vpack.c.bf16 %v1688_v36, %v1686_v35  ;;  %v1979_v40 = vpack.c.bf16 %v1693_v38, %v1691_v37  ;;  %v1694_v47 = vld [vmem:[%s3010_s2 + $0x200] sm:$0xff]  ;;  %v1696_v48 = vld [vmem:[%s3010_s2 + $0x210] sm:$0xff]  ;;  %v1699_v49 = vld [vmem:[%s3010_s2 + $0x228] sm:$0xff] }
  0x1b   :  { %v1698_v53 = vld [vmem:[%s3010_s2 + $0x220] sm:$0xff]  ;;  %v1700_v54 = vld [vmem:[%s3010_s2 + $0x230] sm:$0xff]  ;;  %v1703_v55 = vld [vmem:[%s3010_s2 + $0x248] sm:$0xff] }
  0x1c   :  { %v1702_v60 = vld [vmem:[%s3010_s2 + $0x240] sm:$0xff]  ;;  %v1704_v61 = vld [vmem:[%s3010_s2 + $0x250] sm:$0xff]  ;;  %v1709_v62 = vld [vmem:[%s3010_s2 + $0x278] sm:$0xff] }
  0x1d   :  { %1946 = vmatpush1.bf16.msra.mxu0 %v1945_v44  ;;  %2106 = vmatpush1.bf16.msra.mxu1 %v1945_v44  ;;  %v1697_v44 = vld [vmem:[%s3010_s2 + $0x218] sm:$0xff]  ;;  %v1993_v63 = vpack.c.bf16 %v1704_v61, %v1702_v60  ;;  %v1708_v5 = vld [vmem:[%s3010_s2 + $0x270] sm:$0xff]  ;;  %v1711_v6 = vld [vmem:[%s3010_s2 + $0x288] sm:$0xff] }
  0x1e   :  { %1948 = vmatprep.subr.bf16.mxu0 %v1947_v45  ;;  %2108 = vmatprep.subr.bf16.mxu1 %v1947_v45  ;;  %v1981_v45 = vpack.c.bf16 %v1692_v42, %v1690_v41  ;;  %v1983_v46 = vpack.c.bf16 %v1697_v44, %v1695_v43  ;;  %v1713_v7 = vld [vmem:[%s3010_s2 + $0x298] sm:$0xff]  ;;  %v1712_v13 = vld [vmem:[%s3010_s2 + $0x290] sm:$0xff]  ;;  %v1715_v14 = vld [vmem:[%s3010_s2 + $0x2a8] sm:$0xff] }
  0x1f   :  { %v1717_v15 = vld [vmem:[%s3010_s2 + $0x2b8] sm:$0xff]  ;;  %v1714_v21 = vld [vmem:[%s3010_s2 + $0x2a0] sm:$0xff]  ;;  %v1716_v22 = vld [vmem:[%s3010_s2 + $0x2b0] sm:$0xff] }
  0x20   :  { %v1719_v23 = vld [vmem:[%s3010_s2 + $0x2c8] sm:$0xff]  ;;  %v1721_v24 = vld [vmem:[%s3010_s2 + $0x2d8] sm:$0xff]  ;;  %v1718_v29 = vld [vmem:[%s3010_s2 + $0x2c0] sm:$0xff] }
  0x21   :  { %1950 = vmatpush1.bf16.msra.mxu0 %v1949_v50  ;;  %2110 = vmatpush1.bf16.msra.mxu1 %v1949_v50  ;;  %v1701_v50 = vld [vmem:[%s3010_s2 + $0x238] sm:$0xff]  ;;  %v1720_v30 = vld [vmem:[%s3010_s2 + $0x2d0] sm:$0xff]  ;;  %v1723_v31 = vld [vmem:[%s3010_s2 + $0x2e8] sm:$0xff] }
  0x22   :  { %1952 = vmatprep.subr.bf16.mxu0 %v1951_v51  ;;  %2112 = vmatprep.subr.bf16.mxu1 %v1951_v51  ;;  %v1985_v51 = vpack.c.bf16 %v1696_v48, %v1694_v47  ;;  %v1987_v52 = vpack.c.bf16 %v1701_v50, %v1699_v49  ;;  %v1725_v32 = vld [vmem:[%s3010_s2 + $0x2f8] sm:$0xff]  ;;  %v1722_v35 = vld [vmem:[%s3010_s2 + $0x2e0] sm:$0xff]  ;;  %v1724_v36 = vld [vmem:[%s3010_s2 + $0x2f0] sm:$0xff] }
  0x23   :  { %v1727_v37 = vld [vmem:[%s3010_s2 + $0x308] sm:$0xff]  ;;  %v1729_v38 = vld [vmem:[%s3010_s2 + $0x318] sm:$0xff]  ;;  %v1726_v41 = vld [vmem:[%s3010_s2 + $0x300] sm:$0xff] }
  0x24   :  { %119 = vmatmul.mubr.f32.vlgmr.msra.gmra.mrb[0].mxu0 %v17_v56  ;;  %928 = vmatmul.mubr.f32.vlgmr.msra.gmra.mrb[0].mxu1 %v2468_v58  ;;  %v1705_v56 = vld [vmem:[%s3010_s2 + $0x258] sm:$0xff]  ;;  %v1728_v42 = vld [vmem:[%s3010_s2 + $0x310] sm:$0xff]  ;;  %v1731_v43 = vld [vmem:[%s3010_s2 + $0x328] sm:$0xff] }
  0x25   :  { %1954 = vmatpush1.bf16.msra.mxu0 %v1953_v57  ;;  %2114 = vmatpush1.bf16.msra.mxu1 %v1953_v57  ;;  %v1989_v57 = vpack.c.bf16 %v1700_v54, %v1698_v53  ;;  %v1733_v44 = vld [vmem:[%s3010_s2 + $0x338] sm:$0xff]  ;;  %v1730_v47 = vld [vmem:[%s3010_s2 + $0x320] sm:$0xff]  ;;  %v1732_v48 = vld [vmem:[%s3010_s2 + $0x330] sm:$0xff] }
  0x26   :  { %1956 = vmatprep.subr.bf16.mxu0 %v1955_v59  ;;  %2116 = vmatprep.subr.bf16.mxu1 %v1955_v59  ;;  %v1991_v59 = vpack.c.bf16 %v1705_v56, %v1703_v55  ;;  %v1735_v49 = vld [vmem:[%s3010_s2 + $0x348] sm:$0xff]  ;;  %v1737_v50 = vld [vmem:[%s3010_s2 + $0x358] sm:$0xff]  ;;  %v1734_v53 = vld [vmem:[%s3010_s2 + $0x340] sm:$0xff] }
  0x27   :  { %124 = vmatprep.mubr.f32.mxu0 %v2320_v3  ;;  %933 = vmatprep.mubr.f32.mxu1 %v2320_v3  ;;  %v1736_v54 = vld [vmem:[%s3010_s2 + $0x350] sm:$0xff]  ;;  %v1741_v55 = vld [vmem:[%s3010_s2 + $0x378] sm:$0xff]  ;;  %v1743_v61 = vld [vmem:[%s3010_s2 + $0x388] sm:$0xff] }
  0x28   :  { %125 = vmatmul.mubr.f32.gmra.mrb[2].mxu0 %v2486_v1  ;;  %934 = vmatmul.mubr.f32.gmra.mrb[2].mxu1 %v2491_v2  ;;  %v2025_v56 = vpack.c.bf16 %v1736_v54, %v1734_v53  ;;  %v1740_v60 = vld [vmem:[%s3010_s2 + $0x370] sm:$0xff] }
  0x29   :  { %1958 = vmatpush1.bf16.msra.mxu0 %v1957_v0  ;;  %2118 = vmatpush1.bf16.msra.mxu1 %v1957_v0 }
  0x2a   :  { %1960 = vmatprep.subr.bf16.mxu0 %v1959_v4  ;;  %2120 = vmatprep.subr.bf16.mxu1 %v1959_v4  ;;  %v1706_v4 = vld [vmem:[%s3010_s2 + $0x260] sm:$0xff] }
  0x2b   :  { %130 = vmatprep.mubr.f32.mxu0 %v2320_v3  ;;  %939 = vmatprep.mubr.f32.mxu1 %v2320_v3  ;;  %v1997_v8 = vpack.c.bf16 %v1708_v5, %v1706_v4  ;;  %v1744_v4 = vld [vmem:[%s3010_s2 + $0x390] sm:$0xff]  ;;  %v1747_v5 = vld [vmem:[%s3010_s2 + $0x3a8] sm:$0xff] }
  0x2c   :  { %131 = vmatmul.mubr.f32.gmra.mrb[4].mxu0 %v2512_v10  ;;  %940 = vmatmul.mubr.f32.gmra.mrb[4].mxu1 %v2517_v11 }
  0x2d   :  { %1962 = vmatpush1.bf16.msra.mxu0 %v1961_v9  ;;  %2122 = vmatpush1.bf16.msra.mxu1 %v1961_v9  ;;  %v1999_v9 = vpack.c.bf16 %v1713_v7, %v1711_v6  ;;  %v1749_v6 = vld [vmem:[%s3010_s2 + $0x3b8] sm:$0xff] }
  0x2e   :  { %1964 = vmatprep.subr.bf16.mxu0 %v1963_v12  ;;  %2124 = vmatprep.subr.bf16.mxu1 %v1963_v12  ;;  %v1710_v12 = vld [vmem:[%s3010_s2 + $0x280] sm:$0xff] }
  0x2f   :  { %136 = vmatprep.mubr.f32.mxu0 %v2320_v3  ;;  %945 = vmatprep.mubr.f32.mxu1 %v2320_v3  ;;  %v2001_v16 = vpack.c.bf16 %v1712_v13, %v1710_v12  ;;  %v1746_v12 = vld [vmem:[%s3010_s2 + $0x3a0] sm:$0xff]  ;;  %v1748_v13 = vld [vmem:[%s3010_s2 + $0x3b0] sm:$0xff] }
  0x30   :  { %137 = vmatmul.mubr.f32.gmra.mrb[6].mxu0 %v2538_v18  ;;  %946 = vmatmul.mubr.f32.gmra.mrb[6].mxu1 %v2543_v19 }
  0x31   :  { %1966 = vmatpush1.bf16.msra.mxu0 %v1965_v17  ;;  %2126 = vmatpush1.bf16.msra.mxu1 %v1965_v17  ;;  %v2690_v17 = vld [vmem:[%s3011_s0 + $0x28] sm:$0xff] }
  0x32   :  { %1968 = vmatprep.subr.bf16.mxu0 %v1967_v20  ;;  %2128 = vmatprep.subr.bf16.mxu1 %v1967_v20  ;;  %v2003_v20 = vpack.c.bf16 %v1717_v15, %v1715_v14  ;;  %v1751_v14 = vld [vmem:[%s3010_s2 + $0x3c8] sm:$0xff]  ;;  %v1753_v15 = vld [vmem:[%s3010_s2 + $0x3d8] sm:$0xff] }
  0x33   :  { %142 = vmatprep.mubr.f32.mxu0 %v2320_v3  ;;  %951 = vmatprep.mubr.f32.mxu1 %v2320_v3 }
  0x34   :  { %143 = vmatmul.mubr.f32.gmra.mrb[8].mxu0 %v2564_v26  ;;  %952 = vmatmul.mubr.f32.gmra.mrb[8].mxu1 %v2569_v27 }
  0x35   :  { %1970 = vmatpush1.bf16.msra.mxu0 %v1969_v25  ;;  %2130 = vmatpush1.bf16.msra.mxu1 %v1969_v25  ;;  %v2005_v25 = vpack.c.bf16 %v1716_v22, %v1714_v21  ;;  %v1750_v21 = vld [vmem:[%s3010_s2 + $0x3c0] sm:$0xff]  ;;  %v1752_v22 = vld [vmem:[%s3010_s2 + $0x3d0] sm:$0xff] }
  0x36   :  { %1972 = vmatprep.subr.bf16.mxu0 %v1971_v28  ;;  %2132 = vmatprep.subr.bf16.mxu1 %v1971_v28  ;;  %v2007_v28 = vpack.c.bf16 %v1721_v24, %v1719_v23  ;;  %v1755_v23 = vld [vmem:[%s3010_s2 + $0x3e8] sm:$0xff]  ;;  %v1757_v24 = vld [vmem:[%s3010_s2 + $0x3f8] sm:$0xff] }
  0x37   :  { %261 = vmatprep.mubr.f32.mxu0 %v2320_v3  ;;  %1069 = vmatprep.mubr.f32.mxu1 %v2320_v3 }
  0x39   :  { %1974 = vmatpush1.bf16.msra.mxu0 %v1973_v33  ;;  %2134 = vmatpush1.bf16.msra.mxu1 %v1973_v33  ;;  %v2009_v33 = vpack.c.bf16 %v1720_v30, %v1718_v29  ;;  %v1754_v29 = vld [vmem:[%s3010_s2 + $0x3e0] sm:$0xff]  ;;  %v1756_v30 = vld [vmem:[%s3010_s2 + $0x3f0] sm:$0xff] }
  0x3a   :  { %1976 = vmatprep.subr.bf16.mxu0 %v1975_v34  ;;  %2136 = vmatprep.subr.bf16.mxu1 %v1975_v34  ;;  %v2011_v34 = vpack.c.bf16 %v1725_v32, %v1723_v31  ;;  %v1759_v31 = vld [vmem:[%s3010_s2 + $0x408] sm:$0xff]  ;;  %v1761_v32 = vld [vmem:[%s3010_s2 + $0x418] sm:$0xff] }
  0x3d   :  { %1978 = vmatpush1.bf16.msra.mxu0 %v1977_v39  ;;  %2138 = vmatpush1.bf16.msra.mxu1 %v1977_v39  ;;  %v2013_v39 = vpack.c.bf16 %v1724_v36, %v1722_v35  ;;  %v1758_v35 = vld [vmem:[%s3010_s2 + $0x400] sm:$0xff]  ;;  %v1760_v36 = vld [vmem:[%s3010_s2 + $0x410] sm:$0xff] }
  0x3e   :  { %1980 = vmatprep.subr.bf16.mxu0 %v1979_v40  ;;  %2140 = vmatprep.subr.bf16.mxu1 %v1979_v40  ;;  %v2015_v40 = vpack.c.bf16 %v1729_v38, %v1727_v37  ;;  %v1763_v37 = vld [vmem:[%s3010_s2 + $0x428] sm:$0xff]  ;;  %v1765_v38 = vld [vmem:[%s3010_s2 + $0x438] sm:$0xff] }
  0x41   :  { %1982 = vmatpush1.bf16.msra.mxu0 %v1981_v45  ;;  %2142 = vmatpush1.bf16.msra.mxu1 %v1981_v45  ;;  %v2017_v45 = vpack.c.bf16 %v1728_v42, %v1726_v41  ;;  %v1762_v41 = vld [vmem:[%s3010_s2 + $0x420] sm:$0xff]  ;;  %v1764_v42 = vld [vmem:[%s3010_s2 + $0x430] sm:$0xff] }
  0x42   :  { %1984 = vmatprep.subr.bf16.mxu0 %v1983_v46  ;;  %2144 = vmatprep.subr.bf16.mxu1 %v1983_v46  ;;  %v2019_v46 = vpack.c.bf16 %v1733_v44, %v1731_v43  ;;  %v1767_v43 = vld [vmem:[%s3010_s2 + $0x448] sm:$0xff]  ;;  %v1769_v44 = vld [vmem:[%s3010_s2 + $0x458] sm:$0xff] }
  0x44   :  { %262 = vmatmul.mubr.f32.vlgmr.msra.gmra.mrb[0].mxu0 %v2468_v58  ;;  %1070 = vmatmul.mubr.f32.vlgmr.msra.gmra.mrb[0].mxu1 %v2486_v1  ;;  %v1707_v58 = vld [vmem:[%s3010_s2 + $0x268] sm:$0xff] }
  0x45   :  { %1986 = vmatpush1.bf16.msra.mxu0 %v1985_v51  ;;  %2146 = vmatpush1.bf16.msra.mxu1 %v1985_v51  ;;  %v1995_v0 = vpack.c.bf16 %v1709_v62, %v1707_v58  ;;  %v2021_v51 = vpack.c.bf16 %v1732_v48, %v1730_v47  ;;  %v1745_v58 = vld [vmem:[%s3010_s2 + $0x398] sm:$0xff]  ;;  %v1766_v47 = vld [vmem:[%s3010_s2 + $0x440] sm:$0xff]  ;;  %v1768_v48 = vld [vmem:[%s3010_s2 + $0x450] sm:$0xff] }
  0x46   :  { %1988 = vmatprep.subr.bf16.mxu0 %v1987_v52  ;;  %2148 = vmatprep.subr.bf16.mxu1 %v1987_v52  ;;  %v2023_v52 = vpack.c.bf16 %v1737_v50, %v1735_v49  ;;  %v2057_v49 = vpack.c.bf16 %v1768_v48, %v1766_v47 }
  0x47   :  { %267 = vmatprep.mubr.f32.mxu0 %v2320_v3  ;;  %1075 = vmatprep.mubr.f32.mxu1 %v2320_v3 }
  0x48   :  { %268 = vmatmul.mubr.f32.gmra.mrb[2].mxu0 %v2491_v2  ;;  %1076 = vmatmul.mubr.f32.gmra.mrb[2].mxu1 %v2512_v10 }
  0x49   :  { %1990 = vmatpush1.bf16.msra.mxu0 %v1989_v57  ;;  %2150 = vmatpush1.bf16.msra.mxu1 %v1989_v57 }
  0x4a   :  { %1992 = vmatprep.subr.bf16.mxu0 %v1991_v59  ;;  %2152 = vmatprep.subr.bf16.mxu1 %v1991_v59  ;;  %v1738_v59 = vld [vmem:[%s3010_s2 + $0x360] sm:$0xff] }
  0x4b   :  { %273 = vmatprep.mubr.f32.mxu0 %v2320_v3  ;;  %1081 = vmatprep.mubr.f32.mxu1 %v2320_v3  ;;  %v2029_v62 = vpack.c.bf16 %v1740_v60, %v1738_v59  ;;  %v1296_v60 = vld [vmem:[%s3011_s0 + $0x30] sm:$0xff] }
  0x4c   :  { %274 = vmatmul.mubr.f32.gmra.mrb[4].mxu0 %v2517_v11  ;;  %1082 = vmatmul.mubr.f32.gmra.mrb[4].mxu1 %v2538_v18 }
  0x4d   :  { %1994 = vmatpush1.bf16.msra.mxu0 %v1993_v63  ;;  %2154 = vmatpush1.bf16.msra.mxu1 %v1993_v63  ;;  %v2031_v63 = vpack.c.bf16 %v1745_v58, %v1743_v61  ;;  %v1778_v58 = vld [vmem:[%s3010_s2 + $0x4a0] sm:$0xff] }
  0x4e   :  { %1996 = vmatprep.subr.bf16.mxu0 %v1995_v0  ;;  %2156 = vmatprep.subr.bf16.mxu1 %v1995_v0  ;;  %v1742_v0 = vld [vmem:[%s3010_s2 + $0x380] sm:$0xff] }
  0x4f   :  { %279 = vmatprep.mubr.f32.mxu0 %v2320_v3  ;;  %1087 = vmatprep.mubr.f32.mxu1 %v2320_v3  ;;  %v2033_v7 = vpack.c.bf16 %v1744_v4, %v1742_v0  ;;  %v1785_v0 = vld [vmem:[%s3010_s2 + $0x4d8] sm:$0xff] }
  0x50   :  { %280 = vmatmul.mubr.f32.gmra.mrb[6].mxu0 %v2543_v19  ;;  %1088 = vmatmul.mubr.f32.gmra.mrb[6].mxu1 %v2564_v26 }
  0x51   :  { %1998 = vmatpush1.bf16.msra.mxu0 %v1997_v8  ;;  %2158 = vmatpush1.bf16.msra.mxu1 %v1997_v8  ;;  %v2811_v8 = vld [vmem:[%s3012_s1 + $0x28] sm:$0xff] }
  0x52   :  { %2000 = vmatprep.subr.bf16.mxu0 %v1999_v9  ;;  %2160 = vmatprep.subr.bf16.mxu1 %v1999_v9  ;;  %v2035_v9 = vpack.c.bf16 %v1749_v6, %v1747_v5  ;;  %v1782_v6 = vld [vmem:[%s3010_s2 + $0x4c0] sm:$0xff] }
  0x53   :  { %285 = vmatprep.mubr.f32.mxu0 %v2320_v3  ;;  %1093 = vmatprep.mubr.f32.mxu1 %v2320_v3 }
  0x54   :  { %286 = vmatmul.mubr.f32.gmra.mrb[8].mxu0 %v2569_v27  ;;  %1094 = vmatmul.mubr.f32.gmra.mrb[8].mxu1 %v2690_v17 }
  0x55   :  { %2002 = vmatpush1.bf16.msra.mxu0 %v2001_v16  ;;  %2162 = vmatpush1.bf16.msra.mxu1 %v2001_v16  ;;  %v2037_v16 = vpack.c.bf16 %v1748_v13, %v1746_v12  ;;  %v1789_v12 = vld [vmem:[%s3010_s2 + $0x4f8] sm:$0xff] }
  0x56   :  { %2004 = vmatprep.subr.bf16.mxu0 %v2003_v20  ;;  %2164 = vmatprep.subr.bf16.mxu1 %v2003_v20  ;;  %v2039_v20 = vpack.c.bf16 %v1753_v15, %v1751_v14  ;;  %v1786_v15 = vld [vmem:[%s3010_s2 + $0x4e0] sm:$0xff] }
  0x57   :  { %424 = vmatprep.mubr.f32.mxu0 %v2320_v3  ;;  %1231 = vmatprep.mubr.f32.mxu1 %v2320_v3 }
  0x59   :  { %2006 = vmatpush1.bf16.msra.mxu0 %v2005_v25  ;;  %2166 = vmatpush1.bf16.msra.mxu1 %v2005_v25  ;;  %v2041_v25 = vpack.c.bf16 %v1752_v22, %v1750_v21  ;;  %v648_v21 = vld [vmem:[%s3011_s0 + $0x10] sm:$0xff] }
  0x5a   :  { %2008 = vmatprep.subr.bf16.mxu0 %v2007_v28  ;;  %2168 = vmatprep.subr.bf16.mxu1 %v2007_v28  ;;  %v2043_v28 = vpack.c.bf16 %v1757_v24, %v1755_v23  ;;  %v1454_v22 = vld [vmem:[%s3012_s1 + $0x10] sm:$0xff]  ;;  %v649_v23 = vld [vmem:[%s3011_s0 + $0x18] sm:$0xff] }
  0x5d   :  { %2010 = vmatpush1.bf16.msra.mxu0 %v2009_v33  ;;  %2170 = vmatpush1.bf16.msra.mxu1 %v2009_v33  ;;  %v2045_v33 = vpack.c.bf16 %v1756_v30, %v1754_v29 }
  0x5e   :  { %2012 = vmatprep.subr.bf16.mxu0 %v2011_v34  ;;  %2172 = vmatprep.subr.bf16.mxu1 %v2011_v34  ;;  %v2047_v34 = vpack.c.bf16 %v1761_v32, %v1759_v31 }
  0x61   :  { %2014 = vmatpush1.bf16.msra.mxu0 %v2013_v39  ;;  %2174 = vmatpush1.bf16.msra.mxu1 %v2013_v39  ;;  %v2049_v39 = vpack.c.bf16 %v1760_v36, %v1758_v35 }
  0x62   :  { %2016 = vmatprep.subr.bf16.mxu0 %v2015_v40  ;;  %2176 = vmatprep.subr.bf16.mxu1 %v2015_v40  ;;  %v2051_v40 = vpack.c.bf16 %v1765_v38, %v1763_v37 }
  0x64   :  { %425 = vmatmul.mubr.f32.vlgmr.msra.gmra.mrb[0].mxu0 %v2486_v1  ;;  %1232 = vmatmul.mubr.f32.vlgmr.msra.gmra.mrb[0].mxu1 %v2491_v2  ;;  %v1739_v1 = vld [vmem:[%s3010_s2 + $0x368] sm:$0xff] }
  0x65   :  { %2018 = vmatpush1.bf16.msra.mxu0 %v2017_v45  ;;  %2178 = vmatpush1.bf16.msra.mxu1 %v2017_v45  ;;  %v2027_v57 = vpack.c.bf16 %v1741_v55, %v1739_v1  ;;  %v2053_v45 = vpack.c.bf16 %v1764_v42, %v1762_v41  ;;  %v1774_v1 = vld [vmem:[%s3010_s2 + $0x480] sm:$0xff]  ;;  %v1776_v55 = vld [vmem:[%s3010_s2 + $0x490] sm:$0xff] }
  0x66   :  { %2020 = vmatprep.subr.bf16.mxu0 %v2019_v46  ;;  %2180 = vmatprep.subr.bf16.mxu1 %v2019_v46  ;;  %v2055_v46 = vpack.c.bf16 %v1769_v44, %v1767_v43  ;;  %v2065_v59 = vpack.c.bf16 %v1776_v55, %v1774_v1 }
  0x67   :  { %430 = vmatprep.mubr.f32.mxu0 %v2320_v3  ;;  %1237 = vmatprep.mubr.f32.mxu1 %v2320_v3 }
  0x68   :  { %431 = vmatmul.mubr.f32.gmra.mrb[2].mxu0 %v2512_v10  ;;  %1238 = vmatmul.mubr.f32.gmra.mrb[2].mxu1 %v2517_v11 }
  0x69   :  { %2022 = vmatpush1.bf16.msra.mxu0 %v2021_v51  ;;  %2182 = vmatpush1.bf16.msra.mxu1 %v2021_v51  ;;  %v1770_v51 = vld [vmem:[%s3010_s2 + $0x460] sm:$0xff] }
  0x6a   :  { %2024 = vmatprep.subr.bf16.mxu0 %v2023_v52  ;;  %2184 = vmatprep.subr.bf16.mxu1 %v2023_v52  ;;  %v1772_v52 = vld [vmem:[%s3010_s2 + $0x470] sm:$0xff] }
  0x6b   :  { %436 = vmatprep.mubr.f32.mxu0 %v2320_v3  ;;  %1243 = vmatprep.mubr.f32.mxu1 %v2320_v3  ;;  %v2061_v53 = vpack.c.bf16 %v1772_v52, %v1770_v51 }
  0x6c   :  { %437 = vmatmul.mubr.f32.gmra.mrb[4].mxu0 %v2538_v18  ;;  %1244 = vmatmul.mubr.f32.gmra.mrb[4].mxu1 %v2543_v19 }
  0x6d   :  { %2026 = vmatpush1.bf16.msra.mxu0 %v2025_v56  ;;  %2186 = vmatpush1.bf16.msra.mxu1 %v2025_v56  ;;  %v1779_v56 = vld [vmem:[%s3010_s2 + $0x4a8] sm:$0xff] }
  0x6e   :  { %2028 = vmatprep.subr.bf16.mxu0 %v2027_v57  ;;  %2188 = vmatprep.subr.bf16.mxu1 %v2027_v57  ;;  %v1781_v57 = vld [vmem:[%s3010_s2 + $0x4b8] sm:$0xff] }
  0x6f   :  { %442 = vmatprep.mubr.f32.mxu0 %v2320_v3  ;;  %1249 = vmatprep.mubr.f32.mxu1 %v2320_v3  ;;  %v2067_v61 = vpack.c.bf16 %v1781_v57, %v1779_v56 }
  0x70   :  { %443 = vmatmul.mubr.f32.gmra.mrb[6].mxu0 %v2564_v26  ;;  %1250 = vmatmul.mubr.f32.gmra.mrb[6].mxu1 %v2569_v27 }
  0x71   :  { %2030 = vmatpush1.bf16.msra.mxu0 %v2029_v62  ;;  %2190 = vmatpush1.bf16.msra.mxu1 %v2029_v62  ;;  %v1780_v62 = vld [vmem:[%s3010_s2 + $0x4b0] sm:$0xff] }
  0x72   :  { %2032 = vmatprep.subr.bf16.mxu0 %v2031_v63  ;;  %2192 = vmatprep.subr.bf16.mxu1 %v2031_v63  ;;  %v1783_v63 = vld [vmem:[%s3010_s2 + $0x4c8] sm:$0xff]  ;;  %v2069_v4 = vpack.c.bf16 %v1780_v62, %v1778_v58 }
  0x73   :  { %448 = vmatprep.mubr.f32.mxu0 %v2320_v3  ;;  %1255 = vmatprep.mubr.f32.mxu1 %v2320_v3  ;;  %v2071_v5 = vpack.c.bf16 %v1785_v0, %v1783_v63 }
  0x74   :  { %449 = vmatmul.mubr.f32.gmra.mrb[8].mxu0 %v2690_v17  ;;  %1256 = vmatmul.mubr.f32.gmra.mrb[8].mxu1 %v2811_v8 }
  0x75   :  { %2034 = vmatpush1.bf16.msra.mxu0 %v2033_v7  ;;  %2194 = vmatpush1.bf16.msra.mxu1 %v2033_v7  ;;  %v1784_v7 = vld [vmem:[%s3010_s2 + $0x4d0] sm:$0xff] }
  0x76   :  { %2036 = vmatprep.subr.bf16.mxu0 %v2035_v9  ;;  %2196 = vmatprep.subr.bf16.mxu1 %v2035_v9  ;;  %v1787_v9 = vld [vmem:[%s3010_s2 + $0x4e8] sm:$0xff]  ;;  %v2073_v13 = vpack.c.bf16 %v1784_v7, %v1782_v6 }
  0x77   :  { %587 = vmatprep.mubr.f32.mxu0 %v2320_v3  ;;  %1393 = vmatprep.mubr.f32.mxu1 %v2320_v3  ;;  %v2075_v14 = vpack.c.bf16 %v1789_v12, %v1787_v9 }
  0x79   :  { %2038 = vmatpush1.bf16.msra.mxu0 %v2037_v16  ;;  %2198 = vmatpush1.bf16.msra.mxu1 %v2037_v16  ;;  %v1788_v16 = vld [vmem:[%s3010_s2 + $0x4f0] sm:$0xff] }
  0x7a   :  { %2040 = vmatprep.subr.bf16.mxu0 %v2039_v20  ;;  %2200 = vmatprep.subr.bf16.mxu1 %v2039_v20  ;;  %v2077_v20 = vpack.c.bf16 %v1788_v16, %v1786_v15 }
  0x7d   :  { %2042 = vmatpush1.bf16.msra.mxu0 %v2041_v25  ;;  %2202 = vmatpush1.bf16.msra.mxu1 %v2041_v25 }
  0x7e   :  { %2044 = vmatprep.subr.bf16.mxu0 %v2043_v28  ;;  %2204 = vmatprep.subr.bf16.mxu1 %v2043_v28 }
  0x81   :  { %2046 = vmatpush1.bf16.msra.mxu0 %v2045_v33  ;;  %2206 = vmatpush1.bf16.msra.mxu1 %v2045_v33 }
  0x82   :  { %2048 = vmatprep.subr.bf16.mxu0 %v2047_v34  ;;  %2208 = vmatprep.subr.bf16.mxu1 %v2047_v34 }
  0x84   :  { %588 = vmatmul.mubr.f32.vlgmr.msra.gmra.mrb[0].mxu0 %v2491_v2  ;;  %1394 = vmatmul.mubr.f32.vlgmr.msra.gmra.mrb[0].mxu1 %v2512_v10  ;;  %v1771_v2 = vld [vmem:[%s3010_s2 + $0x468] sm:$0xff]  ;;  %v1773_v10 = vld [vmem:[%s3010_s2 + $0x478] sm:$0xff] }
  0x85   :  { %2050 = vmatpush1.bf16.msra.mxu0 %v2049_v39  ;;  %2210 = vmatpush1.bf16.msra.mxu1 %v2049_v39  ;;  %v2059_v50 = vpack.c.bf16 %v1773_v10, %v1771_v2 }
  0x86   :  { %2052 = vmatprep.subr.bf16.mxu0 %v2051_v40  ;;  %2212 = vmatprep.subr.bf16.mxu1 %v2051_v40 }
  0x87   :  { %593 = vmatprep.mubr.f32.mxu0 %v2320_v3  ;;  %1399 = vmatprep.mubr.f32.mxu1 %v2320_v3 }
  0x88   :  { %594 = vmatmul.mubr.f32.gmra.mrb[2].mxu0 %v2517_v11  ;;  %1400 = vmatmul.mubr.f32.gmra.mrb[2].mxu1 %v2538_v18  ;;  %v1775_v11 = vld [vmem:[%s3010_s2 + $0x488] sm:$0xff]  ;;  %v1777_v18 = vld [vmem:[%s3010_s2 + $0x498] sm:$0xff] }
  0x89   :  { %2054 = vmatpush1.bf16.msra.mxu0 %v2053_v45  ;;  %2214 = vmatpush1.bf16.msra.mxu1 %v2053_v45  ;;  %v2063_v54 = vpack.c.bf16 %v1777_v18, %v1775_v11 }
  0x8a   :  { %2056 = vmatprep.subr.bf16.mxu0 %v2055_v46  ;;  %2216 = vmatprep.subr.bf16.mxu1 %v2055_v46 }
  0x8b   :  { %599 = vmatprep.mubr.f32.mxu0 %v2320_v3  ;;  %1405 = vmatprep.mubr.f32.mxu1 %v2320_v3 }
  0x8c   :  { %600 = vmatmul.mubr.f32.gmra.mrb[4].mxu0 %v2543_v19  ;;  %1406 = vmatmul.mubr.f32.gmra.mrb[4].mxu1 %v2564_v26 }
  0x8d   :  { %2058 = vmatpush1.bf16.msra.mxu0 %v2057_v49  ;;  %2218 = vmatpush1.bf16.msra.mxu1 %v2057_v49 }
  0x8e   :  { %2060 = vmatprep.subr.bf16.mxu0 %v2059_v50  ;;  %2220 = vmatprep.subr.bf16.mxu1 %v2059_v50 }
  0x8f   :  { %605 = vmatprep.mubr.f32.mxu0 %v2320_v3  ;;  %1411 = vmatprep.mubr.f32.mxu1 %v2320_v3 }
  0x90   :  { %606 = vmatmul.mubr.f32.gmra.mrb[6].mxu0 %v2569_v27  ;;  %1412 = vmatmul.mubr.f32.gmra.mrb[6].mxu1 %v2690_v17 }
  0x91   :  { %2062 = vmatpush1.bf16.msra.mxu0 %v2061_v53  ;;  %2222 = vmatpush1.bf16.msra.mxu1 %v2061_v53 }
  0x92   :  { %2064 = vmatprep.subr.bf16.mxu0 %v2063_v54  ;;  %2224 = vmatprep.subr.bf16.mxu1 %v2063_v54 }
  0x93   :  { %611 = vmatprep.mubr.f32.mxu0 %v2320_v3  ;;  %1417 = vmatprep.mubr.f32.mxu1 %v2320_v3 }
  0x94   :  { %612 = vmatmul.mubr.f32.gmra.mrb[8].mxu0 %v2811_v8  ;;  %1418 = vmatmul.mubr.f32.gmra.mrb[8].mxu1 %v1296_v60 }
  0x95   :  { %2066 = vmatpush1.bf16.msra.mxu0 %v2065_v59  ;;  %2226 = vmatpush1.bf16.msra.mxu1 %v2065_v59 }
  0x96   :  { %2068 = vmatprep.subr.bf16.mxu0 %v2067_v61  ;;  %2228 = vmatprep.subr.bf16.mxu1 %v2067_v61 }
  0x97   :  { %750 = vmatprep.mubr.f32.mxu0 %v2320_v3  ;;  %1555 = vmatprep.mubr.f32.mxu1 %v2320_v3 }
  0x99   :  { %2070 = vmatpush1.bf16.msra.mxu0 %v2069_v4  ;;  %2230 = vmatpush1.bf16.msra.mxu1 %v2069_v4 }
  0x9a   :  { %2072 = vmatprep.subr.bf16.mxu0 %v2071_v5  ;;  %2232 = vmatprep.subr.bf16.mxu1 %v2071_v5 }
  0x9d   :  { %2074 = vmatpush1.bf16.msra.mxu0 %v2073_v13  ;;  %2234 = vmatpush1.bf16.msra.mxu1 %v2073_v13 }
  0x9e   :  { %2076 = vmatprep.subr.bf16.mxu0 %v2075_v14  ;;  %2236 = vmatprep.subr.bf16.mxu1 %v2075_v14 }
  0xa1   :  { %2078 = vmatpush1.bf16.msra.mxu0 %v2077_v20  ;;  %2238 = vmatpush1.bf16.msra.mxu1 %v2077_v20 }
  0xa4   :  { %751 = vmatmul.mubr.f32.vlgmr.msra.gmra.mrb[0].mxu0 %v648_v21  ;;  %1556 = vmatmul.mubr.f32.vlgmr.msra.gmra.mrb[0].mxu1 %v1454_v22 }
  0xa5   :  { %756 = vmatprep.mubr.f32.mxu0 %v2320_v3  ;;  %1561 = vmatprep.mubr.f32.mxu1 %v2320_v3 }
  0xa8   :  { %757 = vmatmul.mubr.f32.gmra.mrb[2].mxu0 %v649_v23  ;;  %1562 = vmatmul.mubr.f32.gmra.mrb[2].mxu1 %v2543_v19  ;;  %v1458_v19 = vld [vmem:[%s3012_s1 + $0x30] sm:$0xff] }
  0xa9   :  { %762 = vmatprep.mubr.f32.mxu0 %v2320_v3  ;;  %1567 = vmatprep.mubr.f32.mxu1 %v2320_v3 }
  0xac   :  { %763 = vmatmul.mubr.f32.gmra.mrb[4].mxu0 %v2564_v26  ;;  %1568 = vmatmul.mubr.f32.gmra.mrb[4].mxu1 %v2569_v27 }
  0xad   :  { %768 = vmatprep.mubr.f32.mxu0 %v2320_v3  ;;  %1573 = vmatprep.mubr.f32.mxu1 %v2320_v3 }
  0xb0   :  { %769 = vmatmul.mubr.f32.gmra.mrb[6].mxu0 %v2690_v17  ;;  %1574 = vmatmul.mubr.f32.gmra.mrb[6].mxu1 %v2811_v8  ;;  %v1918_v17 = vld [vmem:[%s3013_s3] ss:$0 sm:$0xff] }
  0xb1   :  { %774 = vmatprep.mubr.f32.mxu0 %v2320_v3  ;;  %1579 = vmatprep.mubr.f32.mxu1 %v2320_v3 }
  0xb4   :  { %775 = vmatmul.mubr.f32.gmra.mrb[8].mxu0 %v1296_v60  ;;  %1580 = vmatmul.mubr.f32.gmra.mrb[8].mxu1 %v1458_v19 }
 0x177   :  { %v752_v26 = vpop.f32.mrb[0].mxu0  ;;  %v1557_v27 = vpop.f32.mrb[0].mxu1 }
 0x178   :  { %v754_v24 = vpop.f32.mrb[1].mxu0  ;;  %v1559_v25 = vpop.f32.mrb[1].mxu1 }
 0x179   :  { %v821_v28 = vmax.f32 %v752_v26, %v754_v24  ;;  %v1626_v29 = vmax.f32 %v1557_v27, %v1559_v25 }
 0x17b   :  { %v1631_v8 = vmax.f32 %v821_v28, %v1626_v29  ;;  %v758_v30 = vpop.f32.mrb[2].mxu0  ;;  %v1563_v31 = vpop.f32.mrb[2].mxu1 }
 0x17c   :  { %v760_v3 = vpop.f32.mrb[3].mxu0  ;;  %v1565_v32 = vpop.f32.mrb[3].mxu1 }
 0x17d   :  { %v1643_v33 = vadd.f32 %v1918_v17, %v1631_v8  ;;  %v822_v34 = vmax.f32 %v758_v30, %v760_v3  ;;  %v1627_v35 = vmax.f32 %v1563_v31, %v1565_v32 }
 0x17f   :  { %v1648_v36 = vmax.f32 %v1643_v33, 0.0  ;;  %v1632_v37 = vmax.f32 %v822_v34, %v1627_v35  ;;  %v764_v38 = vpop.f32.mrb[4].mxu0  ;;  %v1569_v39 = vpop.f32.mrb[4].mxu1 }
 0x180   :  { %v766_v40 = vpop.f32.mrb[5].mxu0  ;;  %v1571_v41 = vpop.f32.mrb[5].mxu1 }
 0x181   :  { %1653 = vst [vmem:[%s3014_s4] sm:$0xff] %v1648_v36  ;;  %v1644_v42 = vadd.f32 %v1918_v17, %v1632_v37  ;;  %v823_v43 = vmax.f32 %v764_v38, %v766_v40  ;;  %v1628_v44 = vmax.f32 %v1569_v39, %v1571_v41 }
 0x183   :  { %v1649_v45 = vmax.f32 %v1644_v42, 0.0  ;;  %v1633_v46 = vmax.f32 %v823_v43, %v1628_v44  ;;  %v770_v47 = vpop.f32.mrb[6].mxu0  ;;  %v1575_v48 = vpop.f32.mrb[6].mxu1 }
 0x184   :  { %v772_v2 = vpop.f32.mrb[7].mxu0  ;;  %v1577_v10 = vpop.f32.mrb[7].mxu1 }
 0x185   :  { %1654 = vst [vmem:[%s3014_s4 + $0x8] sm:$0xff] %v1649_v45  ;;  %v1645_v49 = vadd.f32 %v1918_v17, %v1633_v46  ;;  %v824_v50 = vmax.f32 %v770_v47, %v772_v2  ;;  %v1629_v51 = vmax.f32 %v1575_v48, %v1577_v10 }
 0x187   :  { %v1650_v52 = vmax.f32 %v1645_v49, 0.0  ;;  %v1634_v11 = vmax.f32 %v824_v50, %v1629_v51  ;;  %v776_v18 = vpop.f32.mrb[8].mxu0  ;;  %v1581_v53 = vpop.f32.mrb[8].mxu1 }
 0x188   :  { %v778_v54 = vpop.f32.mrb[9].mxu0  ;;  %v1583_v1 = vpop.f32.mrb[9].mxu1 }
 0x189   :  { %1655 = vst [vmem:[%s3014_s4 + $0x10] sm:$0xff] %v1650_v52  ;;  %v1646_v55 = vadd.f32 %v1918_v17, %v1634_v11  ;;  %v825_v56 = vmax.f32 %v776_v18, %v778_v54  ;;  %v1630_v57 = vmax.f32 %v1581_v53, %v1583_v1 }
 0x18b   :  { %v1651_v59 = vmax.f32 %v1646_v55, 0.0  ;;  %v1635_v60 = vmax.f32 %v825_v56, %v1630_v57 }
 0x18d   :  { %1656 = vst [vmem:[%s3014_s4 + $0x18] sm:$0xff] %v1651_v59  ;;  %v1647_v61 = vadd.f32 %v1918_v17, %v1635_v60 }
 0x18f   :  { %v1652_v58 = vmax.f32 %v1647_v61, 0.0 }
 0x191   :  { %1657 = vst [vmem:[%s3014_s4 + $0x20] sm:$0xff] %v1652_v58 }

// kernel: net_forward.3
= control target key start
LH: loop header
LB: loop body
LE: loop exit
PB: predicated region body
PF: predicated region fallthrough
CT: control target
= control target key end

     0   :  { %v3989_v3 = vmov 0.0   ;;  %vm55_vm0 = vcmask 785408   ;;  %s5104_s2 = inlined_call_operand.vmem [shape: f32[5,96,256], index: 2, kind: input, shape index: {}]   ;;  %s5105_s0 = inlined_call_operand.vmem [shape: f32[1,128,96], index: 0, kind: input, shape index: {}]   ;;  %s5106_s1 = inlined_call_operand.vmem [shape: f32[1,128,96], index: 1, kind: input, shape index: {}]   ;;  %s5107_s3 = inlined_call_operand.vmem [shape: f32[1,128], index: 3, kind: input, shape index: {}]   ;;  %s5108_s4 = inlined_call_operand.vmem [shape: f32[1,112,128], index: 4, kind: output, shape index: {}]  }
   0x1   :  { %v32_v0 = vld [vmem:[%s5104_s2 + $0x8] sm:$0xff]  ;;  %v34_v1 = vld [vmem:[%s5104_s2 + $0x18] sm:$0xff]  ;;  %v31_v2 = vld [vmem:[%s5104_s2] sm:$0xff]  ;;  %162 = vmatprep.mubr.f32.mxu0 %v3989_v3  ;;  %1717 = vmatprep.mubr.f32.mxu1 %v3989_v3 }
   0x2   :  { %v3524_v4 = vpack.c.bf16 %v34_v1, %v32_v0  ;;  %v33_v5 = vld [vmem:[%s5104_s2 + $0x10] sm:$0xff]  ;;  %v36_v6 = vld [vmem:[%s5104_s2 + $0x28] sm:$0xff]  ;;  %v38_v7 = vld [vmem:[%s5104_s2 + $0x38] sm:$0xff] }
   0x3   :  { %v3526_v8 = vpack.c.bf16 %v33_v5, %v31_v2  ;;  %v3528_v9 = vpack.c.bf16 %v38_v7, %v36_v6  ;;  %v35_v10 = vld [vmem:[%s5104_s2 + $0x20] sm:$0xff]  ;;  %v37_v11 = vld [vmem:[%s5104_s2 + $0x30] sm:$0xff]  ;;  %v40_v12 = vld [vmem:[%s5104_s2 + $0x48] sm:$0xff] }
   0x4   :  { %3525 = vmatprep.subr.bf16.mxu0 %v3524_v4  ;;  %3645 = vmatprep.subr.bf16.mxu1 %v3524_v4  ;;  %v42_v13 = vld [vmem:[%s5104_s2 + $0x58] sm:$0xff]  ;;  %v3530_v14 = vpack.c.bf16 %v37_v11, %v35_v10  ;;  %v39_v16 = vld [vmem:[%s5104_s2 + $0x40] sm:$0xff]  ;;  %v41_v17 = vld [vmem:[%s5104_s2 + $0x50] sm:$0xff] }
   0x5   :  { %3527 = vmatpush1.bf16.msra.mxu0 %v3526_v8  ;;  %3647 = vmatpush1.bf16.msra.mxu1 %v3526_v8  ;;  %v3532_v15 = vpack.c.bf16 %v42_v13, %v40_v12  ;;  %v44_v18 = vld [vmem:[%s5104_s2 + $0x68] sm:$0xff]  ;;  %v46_v19 = vld [vmem:[%s5104_s2 + $0x78] sm:$0xff]  ;;  %v3534_v20 = vpack.c.bf16 %v41_v17, %v39_v16  ;;  %v43_v22 = vld [vmem:[%s5104_s2 + $0x60] sm:$0xff] }
   0x6   :  { %3529 = vmatprep.subr.bf16.mxu0 %v3528_v9  ;;  %3649 = vmatprep.subr.bf16.mxu1 %v3528_v9  ;;  %v3536_v21 = vpack.c.bf16 %v46_v19, %v44_v18  ;;  %v45_v23 = vld [vmem:[%s5104_s2 + $0x70] sm:$0xff]  ;;  %v48_v24 = vld [vmem:[%s5104_s2 + $0x88] sm:$0xff]  ;;  %v50_v25 = vld [vmem:[%s5104_s2 + $0x98] sm:$0xff] }
   0x7   :  { %v3538_v26 = vpack.c.bf16 %v45_v23, %v43_v22  ;;  %v3540_v27 = vpack.c.bf16 %v50_v25, %v48_v24  ;;  %v47_v28 = vld [vmem:[%s5104_s2 + $0x80] sm:$0xff]  ;;  %v49_v29 = vld [vmem:[%s5104_s2 + $0x90] sm:$0xff]  ;;  %v52_v30 = vld [vmem:[%s5104_s2 + $0xa8] sm:$0xff] }
   0x8   :  { %v54_v31 = vld [vmem:[%s5104_s2 + $0xb8] sm:$0xff]  ;;  %v3542_v32 = vpack.c.bf16 %v49_v29, %v47_v28  ;;  %v51_v34 = vld [vmem:[%s5104_s2 + $0xa0] sm:$0xff]  ;;  %v53_v35 = vld [vmem:[%s5104_s2 + $0xb0] sm:$0xff] }
   0x9   :  { %3531 = vmatpush1.bf16.msra.mxu0 %v3530_v14  ;;  %3651 = vmatpush1.bf16.msra.mxu1 %v3530_v14  ;;  %v3544_v33 = vpack.c.bf16 %v54_v31, %v52_v30  ;;  %v3206_v36 = vld [vmem:[%s5104_s2 + $0xc8] sm:$0xff]  ;;  %v3208_v37 = vld [vmem:[%s5104_s2 + $0xd8] sm:$0xff]  ;;  %v3546_v38 = vpack.c.bf16 %v53_v35, %v51_v34  ;;  %v3205_v40 = vld [vmem:[%s5104_s2 + $0xc0] sm:$0xff] }
   0xa   :  { %3533 = vmatprep.subr.bf16.mxu0 %v3532_v15  ;;  %3653 = vmatprep.subr.bf16.mxu1 %v3532_v15  ;;  %v3548_v39 = vpack.c.bf16 %v3208_v37, %v3206_v36  ;;  %v3207_v41 = vld [vmem:[%s5104_s2 + $0xd0] sm:$0xff]  ;;  %v3210_v42 = vld [vmem:[%s5104_s2 + $0xe8] sm:$0xff]  ;;  %v3212_v43 = vld [vmem:[%s5104_s2 + $0xf8] sm:$0xff] }
   0xb   :  { %v17_v44 = vld [vmem:[%s5105_s0] sm:$0xff]  ;;  %v3550_v46 = vpack.c.bf16 %v3207_v41, %v3205_v40  ;;  %v3552_v47 = vpack.c.bf16 %v3212_v43, %v3210_v42  ;;  %v3211_v49 = vld [vmem:[%s5104_s2 + $0xf0] sm:$0xff]  ;;  %v3214_v50 = vld [vmem:[%s5104_s2 + $0x108] sm:$0xff] }
   0xc   :  { %v4113_v45 = vld [vmem:[%s5106_s1] sm:$0xff]  ;;  %v3216_v51 = vld [vmem:[%s5104_s2 + $0x118] sm:$0xff]  ;;  %v4133_v52 = vld [vmem:[%s5105_s0 + $0x8] sm:$0xff] }
   0xd   :  { %3535 = vmatpush1.bf16.msra.mxu0 %v3534_v20  ;;  %3655 = vmatpush1.bf16.msra.mxu1 %v3534_v20  ;;  %v3209_v48 = vld [vmem:[%s5104_s2 + $0xe0] sm:$0xff]  ;;  %v4138_v53 = vld [vmem:[%s5106_s1 + $0x8] sm:$0xff]  ;;  %v3556_v55 = vpack.c.bf16 %v3216_v51, %v3214_v50  ;;  %v3215_v57 = vld [vmem:[%s5104_s2 + $0x110] sm:$0xff] }
   0xe   :  { %3537 = vmatprep.subr.bf16.mxu0 %v3536_v21  ;;  %3657 = vmatprep.subr.bf16.mxu1 %v3536_v21  ;;  %v3554_v54 = vpack.c.bf16 %v3211_v49, %v3209_v48  ;;  %v3213_v56 = vld [vmem:[%s5104_s2 + $0x100] sm:$0xff]  ;;  %v3218_v58 = vld [vmem:[%s5104_s2 + $0x128] sm:$0xff]  ;;  %v3220_v59 = vld [vmem:[%s5104_s2 + $0x138] sm:$0xff] }
   0xf   :  { %v4163_v60 = vld [vmem:[%s5105_s0 + $0x10] sm:$0xff]  ;;  %v3558_v62 = vpack.c.bf16 %v3215_v57, %v3213_v56  ;;  %v3560_v63 = vpack.c.bf16 %v3220_v59, %v3218_v58  ;;  %v3217_v0 = vld [vmem:[%s5104_s2 + $0x120] sm:$0xff]  ;;  %v3222_v2 = vld [vmem:[%s5104_s2 + $0x148] sm:$0xff] }
  0x10   :  { %v4168_v61 = vld [vmem:[%s5106_s1 + $0x10] sm:$0xff]  ;;  %v3224_v4 = vld [vmem:[%s5104_s2 + $0x158] sm:$0xff]  ;;  %v3221_v9 = vld [vmem:[%s5104_s2 + $0x140] sm:$0xff] }
  0x11   :  { %3539 = vmatpush1.bf16.msra.mxu0 %v3538_v26  ;;  %3659 = vmatpush1.bf16.msra.mxu1 %v3538_v26  ;;  %v3219_v1 = vld [vmem:[%s5104_s2 + $0x130] sm:$0xff]  ;;  %v4191_v5 = vld [vmem:[%s5105_s0 + $0x18] sm:$0xff]  ;;  %v3564_v8 = vpack.c.bf16 %v3224_v4, %v3222_v2  ;;  %v3226_v11 = vld [vmem:[%s5104_s2 + $0x168] sm:$0xff] }
  0x12   :  { %3541 = vmatprep.subr.bf16.mxu0 %v3540_v27  ;;  %3661 = vmatprep.subr.bf16.mxu1 %v3540_v27  ;;  %v4196_v6 = vld [vmem:[%s5106_s1 + $0x18] sm:$0xff]  ;;  %v3562_v7 = vpack.c.bf16 %v3219_v1, %v3217_v0  ;;  %v3223_v10 = vld [vmem:[%s5104_s2 + $0x150] sm:$0xff]  ;;  %v4219_v13 = vld [vmem:[%s5105_s0 + $0x20] sm:$0xff] }
  0x13   :  { %v3228_v12 = vld [vmem:[%s5104_s2 + $0x178] sm:$0xff]  ;;  %v4224_v14 = vld [vmem:[%s5106_s1 + $0x20] sm:$0xff]  ;;  %v3566_v15 = vpack.c.bf16 %v3223_v10, %v3221_v9  ;;  %v3227_v18 = vld [vmem:[%s5104_s2 + $0x170] sm:$0xff] }
  0x14   :  { %v3568_v16 = vpack.c.bf16 %v3228_v12, %v3226_v11  ;;  %v3225_v17 = vld [vmem:[%s5104_s2 + $0x160] sm:$0xff]  ;;  %v3244_v19 = vld [vmem:[%s5104_s2 + $0x188] sm:$0xff]  ;;  %v3246_v20 = vld [vmem:[%s5104_s2 + $0x198] sm:$0xff] }
  0x15   :  { %3543 = vmatpush1.bf16.msra.mxu0 %v3542_v32  ;;  %3663 = vmatpush1.bf16.msra.mxu1 %v3542_v32  ;;  %v4247_v21 = vld [vmem:[%s5105_s0 + $0x28] sm:$0xff]  ;;  %v3570_v23 = vpack.c.bf16 %v3227_v18, %v3225_v17  ;;  %v3572_v24 = vpack.c.bf16 %v3246_v20, %v3244_v19  ;;  %v4263_v25 = vld [vmem:[%s5105_s0 + $0x30] sm:$0xff]  ;;  %v4279_v27 = vld [vmem:[%s5105_s0 + $0x38] sm:$0xff] }
  0x16   :  { %3545 = vmatprep.subr.bf16.mxu0 %v3544_v33  ;;  %3665 = vmatprep.subr.bf16.mxu1 %v3544_v33  ;;  %v4252_v22 = vld [vmem:[%s5106_s1 + $0x28] sm:$0xff]  ;;  %v4268_v26 = vld [vmem:[%s5106_s1 + $0x30] sm:$0xff]  ;;  %v4284_v28 = vld [vmem:[%s5106_s1 + $0x38] sm:$0xff] }
  0x17   :  { %v4295_v29 = vld [vmem:[%s5105_s0 + $0x40] sm:$0xff]  ;;  %v4311_v31 = vld [vmem:[%s5105_s0 + $0x48] sm:$0xff]  ;;  %v4327_v33 = vld [vmem:[%s5105_s0 + $0x50] sm:$0xff] }
  0x18   :  { %v4300_v30 = vld [vmem:[%s5106_s1 + $0x40] sm:$0xff]  ;;  %v4316_v32 = vld [vmem:[%s5106_s1 + $0x48] sm:$0xff]  ;;  %v4332_v34 = vld [vmem:[%s5106_s1 + $0x50] sm:$0xff] }
  0x19   :  { %3547 = vmatpush1.bf16.msra.mxu0 %v3546_v38  ;;  %3667 = vmatpush1.bf16.msra.mxu1 %v3546_v38  ;;  %v4343_v35 = vld [vmem:[%s5105_s0 + $0x58] sm:$0xff]  ;;  %v4359_v37 = vld [vmem:[%s5105_s0 + $0x60] sm:$0xff]  ;;  %v4380_v40 = vld [vmem:[%s5106_s1 + $0x68] sm:$0xff] }
  0x1a   :  { %3549 = vmatprep.subr.bf16.mxu0 %v3548_v39  ;;  %3669 = vmatprep.subr.bf16.mxu1 %v3548_v39  ;;  %v4348_v36 = vld [vmem:[%s5106_s1 + $0x58] sm:$0xff]  ;;  %v4364_v38 = vld [vmem:[%s5106_s1 + $0x60] sm:$0xff]  ;;  %v4375_v39 = vld [vmem:[%s5105_s0 + $0x68] sm:$0xff] }
  0x1b   :  { %v3243_v41 = vld [vmem:[%s5104_s2 + $0x180] sm:$0xff]  ;;  %v3245_v42 = vld [vmem:[%s5104_s2 + $0x190] sm:$0xff]  ;;  %v3248_v43 = vld [vmem:[%s5104_s2 + $0x1a8] sm:$0xff] }
  0x1c   :  { %3191 = vmatmul.mubr.msk.f32.vlgmr.msra.gmra.mrb[0].mxu0 %vm55_vm0, %v17_v44  ;;  %3357 = vmatmul.mubr.msk.f32.vlgmr.msra.gmra.mrb[0].mxu1 %vm55_vm0, %v4113_v45  ;;  %v3250_v44 = vld [vmem:[%s5104_s2 + $0x1b8] sm:$0xff]  ;;  %v3247_v48 = vld [vmem:[%s5104_s2 + $0x1a0] sm:$0xff]  ;;  %v3249_v49 = vld [vmem:[%s5104_s2 + $0x1b0] sm:$0xff] }
  0x1d   :  { %3551 = vmatpush1.bf16.msra.mxu0 %v3550_v46  ;;  %3671 = vmatpush1.bf16.msra.mxu1 %v3550_v46  ;;  %v3574_v46 = vpack.c.bf16 %v3245_v42, %v3243_v41  ;;  %v3252_v50 = vld [vmem:[%s5104_s2 + $0x1c8] sm:$0xff]  ;;  %v3254_v51 = vld [vmem:[%s5104_s2 + $0x1d8] sm:$0xff]  ;;  %v3253_v56 = vld [vmem:[%s5104_s2 + $0x1d0] sm:$0xff] }
  0x1e   :  { %168 = vmatprep.mubr.f32.mxu0 %v3989_v3  ;;  %1723 = vmatprep.mubr.f32.mxu1 %v3989_v3  ;;  %v3256_v57 = vld [vmem:[%s5104_s2 + $0x1e8] sm:$0xff]  ;;  %v3258_v58 = vld [vmem:[%s5104_s2 + $0x1f8] sm:$0xff]  ;;  %v3257_v0 = vld [vmem:[%s5104_s2 + $0x1f0] sm:$0xff] }
  0x1f   :  { %3553 = vmatprep.subr.bf16.mxu0 %v3552_v47  ;;  %3673 = vmatprep.subr.bf16.mxu1 %v3552_v47  ;;  %v3576_v47 = vpack.c.bf16 %v3250_v44, %v3248_v43  ;;  %v3260_v1 = vld [vmem:[%s5104_s2 + $0x208] sm:$0xff]  ;;  %v3262_v2 = vld [vmem:[%s5104_s2 + $0x218] sm:$0xff]  ;;  %v3261_v9 = vld [vmem:[%s5104_s2 + $0x210] sm:$0xff] }
  0x20   :  { %3192 = vmatmul.mubr.msk.f32.gmra.mrb[2].mxu0 %vm55_vm0, %v4133_v52  ;;  %3358 = vmatmul.mubr.msk.f32.gmra.mrb[2].mxu1 %vm55_vm0, %v4138_v53  ;;  %v3264_v10 = vld [vmem:[%s5104_s2 + $0x228] sm:$0xff]  ;;  %v3266_v11 = vld [vmem:[%s5104_s2 + $0x238] sm:$0xff]  ;;  %v3265_v17 = vld [vmem:[%s5104_s2 + $0x230] sm:$0xff] }
  0x21   :  { %174 = vmatprep.mubr.f32.mxu0 %v3989_v3  ;;  %1729 = vmatprep.mubr.f32.mxu1 %v3989_v3  ;;  %v3282_v18 = vld [vmem:[%s5104_s2 + $0x248] sm:$0xff]  ;;  %v3284_v19 = vld [vmem:[%s5104_s2 + $0x258] sm:$0xff]  ;;  %v3281_v41 = vld [vmem:[%s5104_s2 + $0x240] sm:$0xff] }
  0x22   :  { %3555 = vmatpush1.bf16.msra.mxu0 %v3554_v54  ;;  %3675 = vmatpush1.bf16.msra.mxu1 %v3554_v54  ;;  %v3578_v54 = vpack.c.bf16 %v3249_v49, %v3247_v48  ;;  %v3283_v42 = vld [vmem:[%s5104_s2 + $0x250] sm:$0xff]  ;;  %v3286_v43 = vld [vmem:[%s5104_s2 + $0x268] sm:$0xff]  ;;  %v3288_v44 = vld [vmem:[%s5104_s2 + $0x278] sm:$0xff] }
  0x23   :  { %3557 = vmatprep.subr.bf16.mxu0 %v3556_v55  ;;  %3677 = vmatprep.subr.bf16.mxu1 %v3556_v55  ;;  %v3251_v55 = vld [vmem:[%s5104_s2 + $0x1c0] sm:$0xff]  ;;  %v3287_v49 = vld [vmem:[%s5104_s2 + $0x270] sm:$0xff] }
  0x24   :  { %3193 = vmatmul.mubr.msk.f32.gmra.mrb[4].mxu0 %vm55_vm0, %v4163_v60  ;;  %3359 = vmatmul.mubr.msk.f32.gmra.mrb[4].mxu1 %vm55_vm0, %v4168_v61  ;;  %v3582_v59 = vpack.c.bf16 %v3253_v56, %v3251_v55  ;;  %v3285_v48 = vld [vmem:[%s5104_s2 + $0x260] sm:$0xff]  ;;  %v3294_v55 = vld [vmem:[%s5104_s2 + $0x2a8] sm:$0xff]  ;;  %v3296_v56 = vld [vmem:[%s5104_s2 + $0x2b8] sm:$0xff] }
  0x25   :  { %180 = vmatprep.mubr.f32.mxu0 %v3989_v3  ;;  %1735 = vmatprep.mubr.f32.mxu1 %v3989_v3 }
  0x26   :  { %3559 = vmatpush1.bf16.msra.mxu0 %v3558_v62  ;;  %3679 = vmatpush1.bf16.msra.mxu1 %v3558_v62  ;;  %v3584_v62 = vpack.c.bf16 %v3258_v58, %v3256_v57  ;;  %v3295_v58 = vld [vmem:[%s5104_s2 + $0x2b0] sm:$0xff] }
  0x27   :  { %3561 = vmatprep.subr.bf16.mxu0 %v3560_v63  ;;  %3681 = vmatprep.subr.bf16.mxu1 %v3560_v63  ;;  %v3255_v63 = vld [vmem:[%s5104_s2 + $0x1e0] sm:$0xff] }
  0x28   :  { %3194 = vmatmul.mubr.msk.f32.gmra.mrb[6].mxu0 %vm55_vm0, %v4191_v5  ;;  %3360 = vmatmul.mubr.msk.f32.gmra.mrb[6].mxu1 %vm55_vm0, %v4196_v6  ;;  %v3586_v4 = vpack.c.bf16 %v3257_v0, %v3255_v63  ;;  %v3299_v0 = vld [vmem:[%s5104_s2 + $0x2d0] sm:$0xff] }
  0x29   :  { %186 = vmatprep.mubr.f32.mxu0 %v3989_v3  ;;  %1741 = vmatprep.mubr.f32.mxu1 %v3989_v3 }
  0x2a   :  { %3563 = vmatpush1.bf16.msra.mxu0 %v3562_v7  ;;  %3683 = vmatpush1.bf16.msra.mxu1 %v3562_v7  ;;  %v3588_v7 = vpack.c.bf16 %v3262_v2, %v3260_v1  ;;  %v3302_v1 = vld [vmem:[%s5104_s2 + $0x2e8] sm:$0xff]  ;;  %v3304_v2 = vld [vmem:[%s5104_s2 + $0x2f8] sm:$0xff] }
  0x2b   :  { %3565 = vmatprep.subr.bf16.mxu0 %v3564_v8  ;;  %3685 = vmatprep.subr.bf16.mxu1 %v3564_v8  ;;  %v3259_v8 = vld [vmem:[%s5104_s2 + $0x200] sm:$0xff] }
  0x2c   :  { %3195 = vmatmul.mubr.msk.f32.gmra.mrb[8].mxu0 %vm55_vm0, %v4219_v13  ;;  %3361 = vmatmul.mubr.msk.f32.gmra.mrb[8].mxu1 %vm55_vm0, %v4224_v14  ;;  %v3590_v12 = vpack.c.bf16 %v3261_v9, %v3259_v8  ;;  %v3320_v8 = vld [vmem:[%s5104_s2 + $0x308] sm:$0xff]  ;;  %v3322_v9 = vld [vmem:[%s5104_s2 + $0x318] sm:$0xff] }
  0x2d   :  { %192 = vmatprep.mubr.f32.mxu0 %v3989_v3  ;;  %1747 = vmatprep.mubr.f32.mxu1 %v3989_v3 }
  0x2e   :  { %3567 = vmatpush1.bf16.msra.mxu0 %v3566_v15  ;;  %3687 = vmatpush1.bf16.msra.mxu1 %v3566_v15  ;;  %v3592_v15 = vpack.c.bf16 %v3266_v11, %v3264_v10  ;;  %v3327_v11 = vld [vmem:[%s5104_s2 + $0x340] sm:$0xff] }
  0x2f   :  { %3569 = vmatprep.subr.bf16.mxu0 %v3568_v16  ;;  %3689 = vmatprep.subr.bf16.mxu1 %v3568_v16  ;;  %v3263_v16 = vld [vmem:[%s5104_s2 + $0x220] sm:$0xff] }
  0x30   :  { %3196 = vmatmul.mubr.msk.f32.gmra.mrb[10].mxu0 %vm55_vm0, %v4247_v21  ;;  %3362 = vmatmul.mubr.msk.f32.gmra.mrb[10].mxu1 %vm55_vm0, %v4252_v22  ;;  %v3594_v20 = vpack.c.bf16 %v3265_v17, %v3263_v16  ;;  %v3334_v16 = vld [vmem:[%s5104_s2 + $0x378] sm:$0xff] }
  0x31   :  { %198 = vmatprep.mubr.f32.mxu0 %v3989_v3  ;;  %1753 = vmatprep.mubr.f32.mxu1 %v3989_v3  ;;  %v4778_v17 = vld [vmem:[%s5106_s1 + $0x18] sm:$0xff] }
  0x32   :  { %3571 = vmatpush1.bf16.msra.mxu0 %v3570_v23  ;;  %3691 = vmatpush1.bf16.msra.mxu1 %v3570_v23  ;;  %v3596_v23 = vpack.c.bf16 %v3284_v19, %v3282_v18  ;;  %v4783_v18 = vld [vmem:[%s5105_s0 + $0x20] sm:$0xff] }
  0x33   :  { %3573 = vmatprep.subr.bf16.mxu0 %v3572_v24  ;;  %3693 = vmatprep.subr.bf16.mxu1 %v3572_v24  ;;  %v4541_v24 = vld [vmem:[%s5105_s0 + $0x70] sm:$0xff] }
  0x34   :  { %3197 = vmatmul.mubr.msk.f32.gmra.mrb[12].mxu0 %vm55_vm0, %v4263_v25  ;;  %3363 = vmatmul.mubr.msk.f32.gmra.mrb[12].mxu1 %vm55_vm0, %v4268_v26 }
  0x35   :  { %204 = vmatprep.mubr.f32.mxu0 %v3989_v3  ;;  %1759 = vmatprep.mubr.f32.mxu1 %v3989_v3 }
  0x38   :  { %3198 = vmatmul.mubr.msk.f32.gmra.mrb[14].mxu0 %vm55_vm0, %v4279_v27  ;;  %3364 = vmatmul.mubr.msk.f32.gmra.mrb[14].mxu1 %vm55_vm0, %v4284_v28 }
  0x39   :  { %210 = vmatprep.mubr.f32.mxu0 %v3989_v3  ;;  %1765 = vmatprep.mubr.f32.mxu1 %v3989_v3 }
  0x3c   :  { %3199 = vmatmul.mubr.msk.f32.gmra.mrb[16].mxu0 %vm55_vm0, %v4295_v29  ;;  %3365 = vmatmul.mubr.msk.f32.gmra.mrb[16].mxu1 %vm55_vm0, %v4300_v30 }
  0x3d   :  { %216 = vmatprep.mubr.f32.mxu0 %v3989_v3  ;;  %1771 = vmatprep.mubr.f32.mxu1 %v3989_v3 }
  0x40   :  { %3200 = vmatmul.mubr.msk.f32.gmra.mrb[18].mxu0 %vm55_vm0, %v4311_v31  ;;  %3366 = vmatmul.mubr.msk.f32.gmra.mrb[18].mxu1 %vm55_vm0, %v4316_v32 }
  0x41   :  { %222 = vmatprep.mubr.f32.mxu0 %v3989_v3  ;;  %1777 = vmatprep.mubr.f32.mxu1 %v3989_v3 }
  0x44   :  { %3201 = vmatmul.mubr.msk.f32.gmra.mrb[20].mxu0 %vm55_vm0, %v4327_v33  ;;  %3367 = vmatmul.mubr.msk.f32.gmra.mrb[20].mxu1 %vm55_vm0, %v4332_v34 }
  0x45   :  { %228 = vmatprep.mubr.f32.mxu0 %v3989_v3  ;;  %1783 = vmatprep.mubr.f32.mxu1 %v3989_v3 }
  0x48   :  { %3202 = vmatmul.mubr.msk.f32.gmra.mrb[22].mxu0 %vm55_vm0, %v4343_v35  ;;  %3368 = vmatmul.mubr.msk.f32.gmra.mrb[22].mxu1 %vm55_vm0, %v4348_v36 }
  0x49   :  { %234 = vmatprep.mubr.f32.mxu0 %v3989_v3  ;;  %1789 = vmatprep.mubr.f32.mxu1 %v3989_v3 }
  0x4c   :  { %3203 = vmatmul.mubr.msk.f32.gmra.mrb[24].mxu0 %vm55_vm0, %v4359_v37  ;;  %3369 = vmatmul.mubr.msk.f32.gmra.mrb[24].mxu1 %vm55_vm0, %v4364_v38 }
  0x4d   :  { %240 = vmatprep.mubr.f32.mxu0 %v3989_v3  ;;  %1795 = vmatprep.mubr.f32.mxu1 %v3989_v3 }
  0x50   :  { %3204 = vmatmul.mubr.msk.f32.gmra.mrb[26].mxu0 %vm55_vm0, %v4375_v39  ;;  %3370 = vmatmul.mubr.msk.f32.gmra.mrb[26].mxu1 %vm55_vm0, %v4380_v40 }
  0x51   :  { %420 = vmatprep.mubr.f32.mxu0 %v3989_v3  ;;  %1974 = vmatprep.mubr.f32.mxu1 %v3989_v3 }
  0x54   :  { %3229 = vmatmul.mubr.msk.f32.vlgmr.msra.gmra.mrb[0].mxu0 %vm55_vm0, %v4113_v45  ;;  %3395 = vmatmul.mubr.msk.f32.vlgmr.msra.gmra.mrb[0].mxu1 %vm55_vm0, %v4133_v52  ;;  %v3580_v45 = vpack.c.bf16 %v3254_v51, %v3252_v50  ;;  %v3290_v50 = vld [vmem:[%s5104_s2 + $0x288] sm:$0xff]  ;;  %v3292_v51 = vld [vmem:[%s5104_s2 + $0x298] sm:$0xff] }
  0x55   :  { %3575 = vmatpush1.bf16.msra.mxu0 %v3574_v46  ;;  %3695 = vmatpush1.bf16.msra.mxu1 %v3574_v46  ;;  %v3598_v46 = vpack.c.bf16 %v3283_v42, %v3281_v41  ;;  %v3333_v41 = vld [vmem:[%s5104_s2 + $0x370] sm:$0xff]  ;;  %v3336_v42 = vld [vmem:[%s5104_s2 + $0x388] sm:$0xff] }
  0x56   :  { %426 = vmatprep.mubr.f32.mxu0 %v3989_v3  ;;  %1980 = vmatprep.mubr.f32.mxu1 %v3989_v3 }
  0x57   :  { %3577 = vmatprep.subr.bf16.mxu0 %v3576_v47  ;;  %3697 = vmatprep.subr.bf16.mxu1 %v3576_v47  ;;  %v3600_v47 = vpack.c.bf16 %v3288_v44, %v3286_v43  ;;  %v3338_v43 = vld [vmem:[%s5104_s2 + $0x398] sm:$0xff]  ;;  %v4806_v44 = vld [vmem:[%s5106_s1 + $0x20] sm:$0xff] }
  0x58   :  { %3230 = vmatmul.mubr.msk.f32.gmra.mrb[2].mxu0 %vm55_vm0, %v4138_v53  ;;  %3396 = vmatmul.mubr.msk.f32.gmra.mrb[2].mxu1 %vm55_vm0, %v4163_v60 }
  0x59   :  { %432 = vmatprep.mubr.f32.mxu0 %v3989_v3  ;;  %1986 = vmatprep.mubr.f32.mxu1 %v3989_v3 }
  0x5a   :  { %3579 = vmatpush1.bf16.msra.mxu0 %v3578_v54  ;;  %3699 = vmatpush1.bf16.msra.mxu1 %v3578_v54  ;;  %v3602_v54 = vpack.c.bf16 %v3287_v49, %v3285_v48  ;;  %v3636_v48 = vpack.c.bf16 %v3338_v43, %v3336_v42  ;;  %v3335_v49 = vld [vmem:[%s5104_s2 + $0x380] sm:$0xff] }
  0x5b   :  { %3581 = vmatprep.subr.bf16.mxu0 %v3580_v45  ;;  %3701 = vmatprep.subr.bf16.mxu1 %v3580_v45  ;;  %v3291_v45 = vld [vmem:[%s5104_s2 + $0x290] sm:$0xff] }
  0x5c   :  { %3231 = vmatmul.mubr.msk.f32.gmra.mrb[4].mxu0 %vm55_vm0, %v4168_v61  ;;  %3397 = vmatmul.mubr.msk.f32.gmra.mrb[4].mxu1 %vm55_vm0, %v4191_v5 }
  0x5d   :  { %438 = vmatprep.mubr.f32.mxu0 %v3989_v3  ;;  %1992 = vmatprep.mubr.f32.mxu1 %v3989_v3 }
  0x5e   :  { %3583 = vmatpush1.bf16.msra.mxu0 %v3582_v59  ;;  %3703 = vmatpush1.bf16.msra.mxu1 %v3582_v59  ;;  %v3298_v59 = vld [vmem:[%s5104_s2 + $0x2c8] sm:$0xff] }
  0x5f   :  { %3585 = vmatprep.subr.bf16.mxu0 %v3584_v62  ;;  %3705 = vmatprep.subr.bf16.mxu1 %v3584_v62  ;;  %v3300_v62 = vld [vmem:[%s5104_s2 + $0x2d8] sm:$0xff] }
  0x60   :  { %3232 = vmatmul.mubr.msk.f32.gmra.mrb[6].mxu0 %vm55_vm0, %v4196_v6  ;;  %3398 = vmatmul.mubr.msk.f32.gmra.mrb[6].mxu1 %vm55_vm0, %v4219_v13 }
  0x61   :  { %444 = vmatprep.mubr.f32.mxu0 %v3989_v3  ;;  %1998 = vmatprep.mubr.f32.mxu1 %v3989_v3 }
  0x62   :  { %3587 = vmatpush1.bf16.msra.mxu0 %v3586_v4  ;;  %3707 = vmatpush1.bf16.msra.mxu1 %v3586_v4 }
  0x63   :  { %3589 = vmatprep.subr.bf16.mxu0 %v3588_v7  ;;  %3709 = vmatprep.subr.bf16.mxu1 %v3588_v7  ;;  %v3303_v7 = vld [vmem:[%s5104_s2 + $0x2f0] sm:$0xff] }
  0x64   :  { %3233 = vmatmul.mubr.msk.f32.gmra.mrb[8].mxu0 %vm55_vm0, %v4224_v14  ;;  %3399 = vmatmul.mubr.msk.f32.gmra.mrb[8].mxu1 %vm55_vm0, %v4247_v21 }
  0x65   :  { %450 = vmatprep.mubr.f32.mxu0 %v3989_v3  ;;  %2004 = vmatprep.mubr.f32.mxu1 %v3989_v3 }
  0x66   :  { %3591 = vmatpush1.bf16.msra.mxu0 %v3590_v12  ;;  %3711 = vmatpush1.bf16.msra.mxu1 %v3590_v12  ;;  %v3329_v12 = vld [vmem:[%s5104_s2 + $0x350] sm:$0xff] }
  0x67   :  { %3593 = vmatprep.subr.bf16.mxu0 %v3592_v15  ;;  %3713 = vmatprep.subr.bf16.mxu1 %v3592_v15  ;;  %v3332_v15 = vld [vmem:[%s5104_s2 + $0x368] sm:$0xff]  ;;  %v3630_v19 = vpack.c.bf16 %v3329_v12, %v3327_v11 }
  0x68   :  { %3234 = vmatmul.mubr.msk.f32.gmra.mrb[10].mxu0 %vm55_vm0, %v4252_v22  ;;  %3400 = vmatmul.mubr.msk.f32.gmra.mrb[10].mxu1 %vm55_vm0, %v4263_v25 }
  0x69   :  { %456 = vmatprep.mubr.f32.mxu0 %v3989_v3  ;;  %2010 = vmatprep.mubr.f32.mxu1 %v3989_v3 }
  0x6a   :  { %3595 = vmatpush1.bf16.msra.mxu0 %v3594_v20  ;;  %3715 = vmatpush1.bf16.msra.mxu1 %v3594_v20  ;;  %v3632_v20 = vpack.c.bf16 %v3334_v16, %v3332_v15 }
  0x6b   :  { %3597 = vmatprep.subr.bf16.mxu0 %v3596_v23  ;;  %3717 = vmatprep.subr.bf16.mxu1 %v3596_v23  ;;  %v3331_v23 = vld [vmem:[%s5104_s2 + $0x360] sm:$0xff] }
  0x6c   :  { %3235 = vmatmul.mubr.msk.f32.gmra.mrb[12].mxu0 %vm55_vm0, %v4268_v26  ;;  %3401 = vmatmul.mubr.msk.f32.gmra.mrb[12].mxu1 %vm55_vm0, %v4279_v27 }
  0x6d   :  { %462 = vmatprep.mubr.f32.mxu0 %v3989_v3  ;;  %2016 = vmatprep.mubr.f32.mxu1 %v3989_v3 }
  0x70   :  { %3236 = vmatmul.mubr.msk.f32.gmra.mrb[14].mxu0 %vm55_vm0, %v4284_v28  ;;  %3402 = vmatmul.mubr.msk.f32.gmra.mrb[14].mxu1 %vm55_vm0, %v4295_v29 }
  0x71   :  { %468 = vmatprep.mubr.f32.mxu0 %v3989_v3  ;;  %2022 = vmatprep.mubr.f32.mxu1 %v3989_v3 }
  0x74   :  { %3237 = vmatmul.mubr.msk.f32.gmra.mrb[16].mxu0 %vm55_vm0, %v4300_v30  ;;  %3403 = vmatmul.mubr.msk.f32.gmra.mrb[16].mxu1 %vm55_vm0, %v4311_v31 }
  0x75   :  { %474 = vmatprep.mubr.f32.mxu0 %v3989_v3  ;;  %2028 = vmatprep.mubr.f32.mxu1 %v3989_v3 }
  0x78   :  { %3238 = vmatmul.mubr.msk.f32.gmra.mrb[18].mxu0 %vm55_vm0, %v4316_v32  ;;  %3404 = vmatmul.mubr.msk.f32.gmra.mrb[18].mxu1 %vm55_vm0, %v4327_v33 }
  0x79   :  { %480 = vmatprep.mubr.f32.mxu0 %v3989_v3  ;;  %2034 = vmatprep.mubr.f32.mxu1 %v3989_v3 }
  0x7c   :  { %3239 = vmatmul.mubr.msk.f32.gmra.mrb[20].mxu0 %vm55_vm0, %v4332_v34  ;;  %3405 = vmatmul.mubr.msk.f32.gmra.mrb[20].mxu1 %vm55_vm0, %v4343_v35 }
  0x7d   :  { %486 = vmatprep.mubr.f32.mxu0 %v3989_v3  ;;  %2040 = vmatprep.mubr.f32.mxu1 %v3989_v3 }
  0x80   :  { %3240 = vmatmul.mubr.msk.f32.gmra.mrb[22].mxu0 %vm55_vm0, %v4348_v36  ;;  %3406 = vmatmul.mubr.msk.f32.gmra.mrb[22].mxu1 %vm55_vm0, %v4359_v37 }
  0x81   :  { %492 = vmatprep.mubr.f32.mxu0 %v3989_v3  ;;  %2046 = vmatprep.mubr.f32.mxu1 %v3989_v3 }
  0x84   :  { %3241 = vmatmul.mubr.msk.f32.gmra.mrb[24].mxu0 %vm55_vm0, %v4364_v38  ;;  %3407 = vmatmul.mubr.msk.f32.gmra.mrb[24].mxu1 %vm55_vm0, %v4375_v39 }
  0x85   :  { %498 = vmatprep.mubr.f32.mxu0 %v3989_v3  ;;  %2052 = vmatprep.mubr.f32.mxu1 %v3989_v3 }
  0x88   :  { %3242 = vmatmul.mubr.msk.f32.gmra.mrb[26].mxu0 %vm55_vm0, %v4380_v40  ;;  %3408 = vmatmul.mubr.msk.f32.gmra.mrb[26].mxu1 %vm55_vm0, %v4541_v24 }
  0x89   :  { %734 = vmatprep.mubr.f32.mxu0 %v3989_v3  ;;  %2287 = vmatprep.mubr.f32.mxu1 %v3989_v3 }
  0x8c   :  { %3267 = vmatmul.mubr.msk.f32.vlgmr.msra.gmra.mrb[0].mxu0 %vm55_vm0, %v4133_v52  ;;  %3433 = vmatmul.mubr.msk.f32.vlgmr.msra.gmra.mrb[0].mxu1 %vm55_vm0, %v4138_v53  ;;  %v3604_v52 = vpack.c.bf16 %v3292_v51, %v3290_v50  ;;  %v3289_v53 = vld [vmem:[%s5104_s2 + $0x280] sm:$0xff]  ;;  %v3337_v50 = vld [vmem:[%s5104_s2 + $0x390] sm:$0xff]  ;;  %v3340_v51 = vld [vmem:[%s5104_s2 + $0x3a8] sm:$0xff] }
  0x8d   :  { %3599 = vmatpush1.bf16.msra.mxu0 %v3598_v46  ;;  %3719 = vmatpush1.bf16.msra.mxu1 %v3598_v46  ;;  %v3606_v57 = vpack.c.bf16 %v3291_v45, %v3289_v53  ;;  %v4811_v46 = vld [vmem:[%s5105_s0 + $0x28] sm:$0xff]  ;;  %v4839_v53 = vld [vmem:[%s5105_s0 + $0x30] sm:$0xff]  ;;  %v3638_v45 = vpack.c.bf16 %v3337_v50, %v3335_v49 }
  0x8e   :  { %740 = vmatprep.mubr.f32.mxu0 %v3989_v3  ;;  %2293 = vmatprep.mubr.f32.mxu1 %v3989_v3 }
  0x8f   :  { %3601 = vmatprep.subr.bf16.mxu0 %v3600_v47  ;;  %3721 = vmatprep.subr.bf16.mxu1 %v3600_v47  ;;  %v3634_v47 = vpack.c.bf16 %v3333_v41, %v3331_v23 }
  0x90   :  { %3268 = vmatmul.mubr.msk.f32.gmra.mrb[2].mxu0 %vm55_vm0, %v4163_v60  ;;  %3434 = vmatmul.mubr.msk.f32.gmra.mrb[2].mxu1 %vm55_vm0, %v4168_v61  ;;  %v3608_v60 = vpack.c.bf16 %v3296_v56, %v3294_v55  ;;  %v3293_v61 = vld [vmem:[%s5104_s2 + $0x2a0] sm:$0xff] }
  0x91   :  { %746 = vmatprep.mubr.f32.mxu0 %v3989_v3  ;;  %2299 = vmatprep.mubr.f32.mxu1 %v3989_v3  ;;  %v3610_v63 = vpack.c.bf16 %v3295_v58, %v3293_v61  ;;  %v3339_v56 = vld [vmem:[%s5104_s2 + $0x3a0] sm:$0xff]  ;;  %v4861_v61 = vld [vmem:[%s5105_s0 + $0x38] sm:$0xff] }
  0x92   :  { %3603 = vmatpush1.bf16.msra.mxu0 %v3602_v54  ;;  %3723 = vmatpush1.bf16.msra.mxu1 %v3602_v54  ;;  %v3342_v54 = vld [vmem:[%s5104_s2 + $0x3b8] sm:$0xff] }
  0x93   :  { %3605 = vmatprep.subr.bf16.mxu0 %v3604_v52  ;;  %3725 = vmatprep.subr.bf16.mxu1 %v3604_v52  ;;  %v4834_v52 = vld [vmem:[%s5106_s1 + $0x28] sm:$0xff]  ;;  %v3640_v55 = vpack.c.bf16 %v3342_v54, %v3340_v51 }
  0x94   :  { %3269 = vmatmul.mubr.msk.f32.gmra.mrb[4].mxu0 %vm55_vm0, %v4191_v5  ;;  %3435 = vmatmul.mubr.msk.f32.gmra.mrb[4].mxu1 %vm55_vm0, %v4196_v6  ;;  %v3612_v5 = vpack.c.bf16 %v3300_v62, %v3298_v59  ;;  %v3297_v6 = vld [vmem:[%s5104_s2 + $0x2c0] sm:$0xff]  ;;  %v4872_v59 = vld [vmem:[%s5106_s1 + $0x38] sm:$0xff] }
  0x95   :  { %752 = vmatprep.mubr.f32.mxu0 %v3989_v3  ;;  %2305 = vmatprep.mubr.f32.mxu1 %v3989_v3  ;;  %v3614_v4 = vpack.c.bf16 %v3299_v0, %v3297_v6  ;;  %v4877_v62 = vld [vmem:[%s5105_s0 + $0x40] sm:$0xff]  ;;  %v4904_v6 = vld [vmem:[%s5106_s1 + $0x48] sm:$0xff]  ;;  %v4909_v0 = vld [vmem:[%s5105_s0 + $0x50] sm:$0xff] }
  0x96   :  { %3607 = vmatpush1.bf16.msra.mxu0 %v3606_v57  ;;  %3727 = vmatpush1.bf16.msra.mxu1 %v3606_v57  ;;  %v3341_v57 = vld [vmem:[%s5104_s2 + $0x3b0] sm:$0xff] }
  0x97   :  { %3609 = vmatprep.subr.bf16.mxu0 %v3608_v60  ;;  %3729 = vmatprep.subr.bf16.mxu1 %v3608_v60  ;;  %v4856_v60 = vld [vmem:[%s5106_s1 + $0x30] sm:$0xff]  ;;  %v3642_v58 = vpack.c.bf16 %v3341_v57, %v3339_v56 }
  0x98   :  { %3270 = vmatmul.mubr.msk.f32.gmra.mrb[6].mxu0 %vm55_vm0, %v4219_v13  ;;  %3436 = vmatmul.mubr.msk.f32.gmra.mrb[6].mxu1 %vm55_vm0, %v4224_v14  ;;  %v3616_v13 = vpack.c.bf16 %v3304_v2, %v3302_v1  ;;  %v3301_v14 = vld [vmem:[%s5104_s2 + $0x2e0] sm:$0xff]  ;;  %v912_v1 = vld [vmem:[%s5106_s1 + $0x50] sm:$0xff]  ;;  %v4923_v2 = vld [vmem:[%s5105_s0 + $0x58] sm:$0xff] }
  0x99   :  { %758 = vmatprep.mubr.f32.mxu0 %v3989_v3  ;;  %2311 = vmatprep.mubr.f32.mxu1 %v3989_v3  ;;  %v3618_v10 = vpack.c.bf16 %v3303_v7, %v3301_v14  ;;  %v914_v14 = vld [vmem:[%s5106_s1 + $0x60] sm:$0xff]  ;;  %v2467_v7 = vld [vmem:[%s5105_s0 + $0x68] sm:$0xff] }
  0x9a   :  { %3611 = vmatpush1.bf16.msra.mxu0 %v3610_v63  ;;  %3731 = vmatpush1.bf16.msra.mxu1 %v3610_v63  ;;  %v4888_v63 = vld [vmem:[%s5106_s1 + $0x40] sm:$0xff] }
  0x9b   :  { %3613 = vmatprep.subr.bf16.mxu0 %v3612_v5  ;;  %3733 = vmatprep.subr.bf16.mxu1 %v3612_v5  ;;  %v4893_v5 = vld [vmem:[%s5105_s0 + $0x48] sm:$0xff] }
  0x9c   :  { %3271 = vmatmul.mubr.msk.f32.gmra.mrb[8].mxu0 %vm55_vm0, %v4247_v21  ;;  %3437 = vmatmul.mubr.msk.f32.gmra.mrb[8].mxu1 %vm55_vm0, %v4252_v22  ;;  %v3620_v21 = vpack.c.bf16 %v3322_v9, %v3320_v8  ;;  %v4702_v22 = vld [vmem:[%s5106_s1 + $0x70] sm:$0xff]  ;;  %v915_v8 = vld [vmem:[%s5106_s1 + $0x68] sm:$0xff]  ;;  %v2469_v9 = vld [vmem:[%s5105_s0 + $0x78] sm:$0xff] }
  0x9d   :  { %764 = vmatprep.mubr.f32.mxu0 %v3989_v3  ;;  %2317 = vmatprep.mubr.f32.mxu1 %v3989_v3 }
  0x9e   :  { %3615 = vmatpush1.bf16.msra.mxu0 %v3614_v4  ;;  %3735 = vmatpush1.bf16.msra.mxu1 %v3614_v4  ;;  %v913_v4 = vld [vmem:[%s5106_s1 + $0x58] sm:$0xff] }
  0x9f   :  { %3617 = vmatprep.subr.bf16.mxu0 %v3616_v13  ;;  %3737 = vmatprep.subr.bf16.mxu1 %v3616_v13  ;;  %v2466_v13 = vld [vmem:[%s5105_s0 + $0x60] sm:$0xff] }
  0xa0   :  { %3272 = vmatmul.mubr.msk.f32.gmra.mrb[10].mxu0 %vm55_vm0, %v4263_v25  ;;  %3438 = vmatmul.mubr.msk.f32.gmra.mrb[10].mxu1 %vm55_vm0, %v4268_v26  ;;  %v3319_v25 = vld [vmem:[%s5104_s2 + $0x300] sm:$0xff]  ;;  %v3321_v26 = vld [vmem:[%s5104_s2 + $0x310] sm:$0xff] }
  0xa1   :  { %770 = vmatprep.mubr.f32.mxu0 %v3989_v3  ;;  %2323 = vmatprep.mubr.f32.mxu1 %v3989_v3 }
  0xa2   :  { %3619 = vmatpush1.bf16.msra.mxu0 %v3618_v10  ;;  %3739 = vmatpush1.bf16.msra.mxu1 %v3618_v10  ;;  %v2782_v10 = vld [vmem:[%s5106_s1 + $0x78] sm:$0xff] }
  0xa3   :  { %3621 = vmatprep.subr.bf16.mxu0 %v3620_v21  ;;  %3741 = vmatprep.subr.bf16.mxu1 %v3620_v21 }
  0xa4   :  { %3273 = vmatmul.mubr.msk.f32.gmra.mrb[12].mxu0 %vm55_vm0, %v4279_v27  ;;  %3439 = vmatmul.mubr.msk.f32.gmra.mrb[12].mxu1 %vm55_vm0, %v4284_v28  ;;  %v3324_v27 = vld [vmem:[%s5104_s2 + $0x328] sm:$0xff]  ;;  %v3326_v28 = vld [vmem:[%s5104_s2 + $0x338] sm:$0xff] }
  0xa5   :  { %776 = vmatprep.mubr.f32.mxu0 %v3989_v3  ;;  %2329 = vmatprep.mubr.f32.mxu1 %v3989_v3 }
  0xa8   :  { %3274 = vmatmul.mubr.msk.f32.gmra.mrb[14].mxu0 %vm55_vm0, %v4295_v29  ;;  %3440 = vmatmul.mubr.msk.f32.gmra.mrb[14].mxu1 %vm55_vm0, %v4300_v30  ;;  %v903_v29 = vld [vmem:[%s5106_s1 + $0x8] sm:$0xff]  ;;  %v4728_v30 = vld [vmem:[%s5105_s0 + $0x10] sm:$0xff] }
  0xa9   :  { %782 = vmatprep.mubr.f32.mxu0 %v3989_v3  ;;  %2335 = vmatprep.mubr.f32.mxu1 %v3989_v3 }
  0xac   :  { %3275 = vmatmul.mubr.msk.f32.gmra.mrb[16].mxu0 %vm55_vm0, %v4311_v31  ;;  %3441 = vmatmul.mubr.msk.f32.gmra.mrb[16].mxu1 %vm55_vm0, %v4316_v32  ;;  %v3622_v31 = vpack.c.bf16 %v3321_v26, %v3319_v25  ;;  %v3624_v32 = vpack.c.bf16 %v3326_v28, %v3324_v27 }
  0xad   :  { %788 = vmatprep.mubr.f32.mxu0 %v3989_v3  ;;  %2341 = vmatprep.mubr.f32.mxu1 %v3989_v3 }
  0xb0   :  { %3276 = vmatmul.mubr.msk.f32.gmra.mrb[18].mxu0 %vm55_vm0, %v4327_v33  ;;  %3442 = vmatmul.mubr.msk.f32.gmra.mrb[18].mxu1 %vm55_vm0, %v4332_v34  ;;  %v3323_v33 = vld [vmem:[%s5104_s2 + $0x320] sm:$0xff]  ;;  %v3325_v34 = vld [vmem:[%s5104_s2 + $0x330] sm:$0xff] }
  0xb1   :  { %794 = vmatprep.mubr.f32.mxu0 %v3989_v3  ;;  %2347 = vmatprep.mubr.f32.mxu1 %v3989_v3 }
  0xb4   :  { %3277 = vmatmul.mubr.msk.f32.gmra.mrb[20].mxu0 %vm55_vm0, %v4343_v35  ;;  %3443 = vmatmul.mubr.msk.f32.gmra.mrb[20].mxu1 %vm55_vm0, %v4348_v36  ;;  %v3328_v35 = vld [vmem:[%s5104_s2 + $0x348] sm:$0xff]  ;;  %v3330_v36 = vld [vmem:[%s5104_s2 + $0x358] sm:$0xff] }
  0xb5   :  { %800 = vmatprep.mubr.f32.mxu0 %v3989_v3  ;;  %2353 = vmatprep.mubr.f32.mxu1 %v3989_v3 }
  0xb8   :  { %3278 = vmatmul.mubr.msk.f32.gmra.mrb[22].mxu0 %vm55_vm0, %v4359_v37  ;;  %3444 = vmatmul.mubr.msk.f32.gmra.mrb[22].mxu1 %vm55_vm0, %v4364_v38  ;;  %v4748_v37 = vld [vmem:[%s5106_s1 + $0x10] sm:$0xff]  ;;  %v4753_v38 = vld [vmem:[%s5105_s0 + $0x18] sm:$0xff] }
  0xb9   :  { %806 = vmatprep.mubr.f32.mxu0 %v3989_v3  ;;  %2359 = vmatprep.mubr.f32.mxu1 %v3989_v3 }
  0xbc   :  { %3279 = vmatmul.mubr.msk.f32.gmra.mrb[24].mxu0 %vm55_vm0, %v4375_v39  ;;  %3445 = vmatmul.mubr.msk.f32.gmra.mrb[24].mxu1 %vm55_vm0, %v4380_v40  ;;  %v3626_v39 = vpack.c.bf16 %v3325_v34, %v3323_v33  ;;  %v3628_v40 = vpack.c.bf16 %v3330_v36, %v3328_v35 }
  0xbd   :  { %812 = vmatprep.mubr.f32.mxu0 %v3989_v3  ;;  %2365 = vmatprep.mubr.f32.mxu1 %v3989_v3 }
  0xc0   :  { %3280 = vmatmul.mubr.msk.f32.gmra.mrb[26].mxu0 %vm55_vm0, %v4541_v24  ;;  %3446 = vmatmul.mubr.msk.f32.gmra.mrb[26].mxu1 %vm55_vm0, %v4702_v22 }
  0xc1   :  { %1048 = vmatprep.mubr.f32.mxu0 %v3989_v3  ;;  %2600 = vmatprep.mubr.f32.mxu1 %v3989_v3 }
  0xc4   :  { %3305 = vmatmul.mubr.msk.f32.vlgmr.msra.gmra.mrb[0].mxu0 %vm55_vm0, %v903_v29  ;;  %3471 = vmatmul.mubr.msk.f32.vlgmr.msra.gmra.mrb[0].mxu1 %vm55_vm0, %v4728_v30 }
  0xc5   :  { %3623 = vmatpush1.bf16.msra.mxu0 %v3622_v31  ;;  %3743 = vmatpush1.bf16.msra.mxu1 %v3622_v31 }
  0xc6   :  { %1054 = vmatprep.mubr.f32.mxu0 %v3989_v3  ;;  %2606 = vmatprep.mubr.f32.mxu1 %v3989_v3 }
  0xc7   :  { %3625 = vmatprep.subr.bf16.mxu0 %v3624_v32  ;;  %3745 = vmatprep.subr.bf16.mxu1 %v3624_v32 }
  0xc8   :  { %3306 = vmatmul.mubr.msk.f32.gmra.mrb[2].mxu0 %vm55_vm0, %v4748_v37  ;;  %3472 = vmatmul.mubr.msk.f32.gmra.mrb[2].mxu1 %vm55_vm0, %v4753_v38 }
  0xc9   :  { %1060 = vmatprep.mubr.f32.mxu0 %v3989_v3  ;;  %2612 = vmatprep.mubr.f32.mxu1 %v3989_v3 }
  0xca   :  { %3627 = vmatpush1.bf16.msra.mxu0 %v3626_v39  ;;  %3747 = vmatpush1.bf16.msra.mxu1 %v3626_v39 }
  0xcb   :  { %3629 = vmatprep.subr.bf16.mxu0 %v3628_v40  ;;  %3749 = vmatprep.subr.bf16.mxu1 %v3628_v40 }
  0xcc   :  { %3307 = vmatmul.mubr.msk.f32.gmra.mrb[4].mxu0 %vm55_vm0, %v4778_v17  ;;  %3473 = vmatmul.mubr.msk.f32.gmra.mrb[4].mxu1 %vm55_vm0, %v4783_v18 }
  0xcd   :  { %1066 = vmatprep.mubr.f32.mxu0 %v3989_v3  ;;  %2618 = vmatprep.mubr.f32.mxu1 %v3989_v3 }
  0xce   :  { %3631 = vmatpush1.bf16.msra.mxu0 %v3630_v19  ;;  %3751 = vmatpush1.bf16.msra.mxu1 %v3630_v19 }
  0xcf   :  { %3633 = vmatprep.subr.bf16.mxu0 %v3632_v20  ;;  %3753 = vmatprep.subr.bf16.mxu1 %v3632_v20 }
  0xd0   :  { %3308 = vmatmul.mubr.msk.f32.gmra.mrb[6].mxu0 %vm55_vm0, %v4806_v44  ;;  %3474 = vmatmul.mubr.msk.f32.gmra.mrb[6].mxu1 %vm55_vm0, %v4811_v46 }
  0xd1   :  { %1072 = vmatprep.mubr.f32.mxu0 %v3989_v3  ;;  %2624 = vmatprep.mubr.f32.mxu1 %v3989_v3 }
  0xd2   :  { %3635 = vmatpush1.bf16.msra.mxu0 %v3634_v47  ;;  %3755 = vmatpush1.bf16.msra.mxu1 %v3634_v47 }
  0xd3   :  { %3637 = vmatprep.subr.bf16.mxu0 %v3636_v48  ;;  %3757 = vmatprep.subr.bf16.mxu1 %v3636_v48 }
  0xd4   :  { %3309 = vmatmul.mubr.msk.f32.gmra.mrb[8].mxu0 %vm55_vm0, %v4834_v52  ;;  %3475 = vmatmul.mubr.msk.f32.gmra.mrb[8].mxu1 %vm55_vm0, %v4839_v53 }
  0xd5   :  { %1078 = vmatprep.mubr.f32.mxu0 %v3989_v3  ;;  %2630 = vmatprep.mubr.f32.mxu1 %v3989_v3 }
  0xd6   :  { %3639 = vmatpush1.bf16.msra.mxu0 %v3638_v45  ;;  %3759 = vmatpush1.bf16.msra.mxu1 %v3638_v45 }
  0xd7   :  { %3641 = vmatprep.subr.bf16.mxu0 %v3640_v55  ;;  %3761 = vmatprep.subr.bf16.mxu1 %v3640_v55 }
  0xd8   :  { %3310 = vmatmul.mubr.msk.f32.gmra.mrb[10].mxu0 %vm55_vm0, %v4856_v60  ;;  %3476 = vmatmul.mubr.msk.f32.gmra.mrb[10].mxu1 %vm55_vm0, %v4861_v61 }
  0xd9   :  { %1084 = vmatprep.mubr.f32.mxu0 %v3989_v3  ;;  %2636 = vmatprep.mubr.f32.mxu1 %v3989_v3 }
  0xda   :  { %3643 = vmatpush1.bf16.msra.mxu0 %v3642_v58  ;;  %3763 = vmatpush1.bf16.msra.mxu1 %v3642_v58 }
  0xdc   :  { %3311 = vmatmul.mubr.msk.f32.gmra.mrb[12].mxu0 %vm55_vm0, %v4872_v59  ;;  %3477 = vmatmul.mubr.msk.f32.gmra.mrb[12].mxu1 %vm55_vm0, %v4877_v62 }
  0xdd   :  { %1090 = vmatprep.mubr.f32.mxu0 %v3989_v3  ;;  %2642 = vmatprep.mubr.f32.mxu1 %v3989_v3 }
  0xe0   :  { %3312 = vmatmul.mubr.msk.f32.gmra.mrb[14].mxu0 %vm55_vm0, %v4888_v63  ;;  %3478 = vmatmul.mubr.msk.f32.gmra.mrb[14].mxu1 %vm55_vm0, %v4893_v5 }
  0xe1   :  { %1096 = vmatprep.mubr.f32.mxu0 %v3989_v3  ;;  %2648 = vmatprep.mubr.f32.mxu1 %v3989_v3 }
  0xe4   :  { %3313 = vmatmul.mubr.msk.f32.gmra.mrb[16].mxu0 %vm55_vm0, %v4904_v6  ;;  %3479 = vmatmul.mubr.msk.f32.gmra.mrb[16].mxu1 %vm55_vm0, %v4909_v0 }
  0xe5   :  { %1102 = vmatprep.mubr.f32.mxu0 %v3989_v3  ;;  %2654 = vmatprep.mubr.f32.mxu1 %v3989_v3 }
  0xe8   :  { %3314 = vmatmul.mubr.msk.f32.gmra.mrb[18].mxu0 %vm55_vm0, %v912_v1  ;;  %3480 = vmatmul.mubr.msk.f32.gmra.mrb[18].mxu1 %vm55_vm0, %v4923_v2 }
  0xe9   :  { %1108 = vmatprep.mubr.f32.mxu0 %v3989_v3  ;;  %2660 = vmatprep.mubr.f32.mxu1 %v3989_v3 }
  0xec   :  { %3315 = vmatmul.mubr.msk.f32.gmra.mrb[20].mxu0 %vm55_vm0, %v913_v4  ;;  %3481 = vmatmul.mubr.msk.f32.gmra.mrb[20].mxu1 %vm55_vm0, %v2466_v13 }
  0xed   :  { %1114 = vmatprep.mubr.f32.mxu0 %v3989_v3  ;;  %2666 = vmatprep.mubr.f32.mxu1 %v3989_v3 }
  0xf0   :  { %3316 = vmatmul.mubr.msk.f32.gmra.mrb[22].mxu0 %vm55_vm0, %v914_v14  ;;  %3482 = vmatmul.mubr.msk.f32.gmra.mrb[22].mxu1 %vm55_vm0, %v2467_v7 }
  0xf1   :  { %1120 = vmatprep.mubr.f32.mxu0 %v3989_v3  ;;  %2672 = vmatprep.mubr.f32.mxu1 %v3989_v3 }
  0xf4   :  { %3317 = vmatmul.mubr.msk.f32.gmra.mrb[24].mxu0 %vm55_vm0, %v915_v8  ;;  %3483 = vmatmul.mubr.msk.f32.gmra.mrb[24].mxu1 %vm55_vm0, %v4541_v24 }
  0xf5   :  { %1126 = vmatprep.mubr.f32.mxu0 %v3989_v3  ;;  %2678 = vmatprep.mubr.f32.mxu1 %v3989_v3 }
  0xf8   :  { %3318 = vmatmul.mubr.msk.f32.gmra.mrb[26].mxu0 %vm55_vm0, %v4702_v22  ;;  %3484 = vmatmul.mubr.msk.f32.gmra.mrb[26].mxu1 %vm55_vm0, %v2469_v9 }
  0xf9   :  { %1362 = vmatprep.mubr.f32.mxu0 %v3989_v3  ;;  %2913 = vmatprep.mubr.f32.mxu1 %v3989_v3 }
  0xfc   :  { %3343 = vmatmul.mubr.msk.f32.vlgmr.msra.gmra.mrb[0].mxu0 %vm55_vm0, %v4728_v30  ;;  %3509 = vmatmul.mubr.msk.f32.vlgmr.msra.gmra.mrb[0].mxu1 %vm55_vm0, %v4748_v37 }
  0xfd   :  { %1368 = vmatprep.mubr.f32.mxu0 %v3989_v3  ;;  %2919 = vmatprep.mubr.f32.mxu1 %v3989_v3 }
 0x100   :  { %3344 = vmatmul.mubr.msk.f32.gmra.mrb[2].mxu0 %vm55_vm0, %v4753_v38  ;;  %3510 = vmatmul.mubr.msk.f32.gmra.mrb[2].mxu1 %vm55_vm0, %v4778_v17 }
 0x101   :  { %1374 = vmatprep.mubr.f32.mxu0 %v3989_v3  ;;  %2925 = vmatprep.mubr.f32.mxu1 %v3989_v3 }
 0x104   :  { %3345 = vmatmul.mubr.msk.f32.gmra.mrb[4].mxu0 %vm55_vm0, %v4783_v18  ;;  %3511 = vmatmul.mubr.msk.f32.gmra.mrb[4].mxu1 %vm55_vm0, %v4806_v44 }
 0x105   :  { %1380 = vmatprep.mubr.f32.mxu0 %v3989_v3  ;;  %2931 = vmatprep.mubr.f32.mxu1 %v3989_v3 }
 0x108   :  { %3346 = vmatmul.mubr.msk.f32.gmra.mrb[6].mxu0 %vm55_vm0, %v4811_v46  ;;  %3512 = vmatmul.mubr.msk.f32.gmra.mrb[6].mxu1 %vm55_vm0, %v4834_v52 }
 0x109   :  { %1386 = vmatprep.mubr.f32.mxu0 %v3989_v3  ;;  %2937 = vmatprep.mubr.f32.mxu1 %v3989_v3 }
 0x10c   :  { %3347 = vmatmul.mubr.msk.f32.gmra.mrb[8].mxu0 %vm55_vm0, %v4839_v53  ;;  %3513 = vmatmul.mubr.msk.f32.gmra.mrb[8].mxu1 %vm55_vm0, %v4856_v60 }
 0x10d   :  { %1392 = vmatprep.mubr.f32.mxu0 %v3989_v3  ;;  %2943 = vmatprep.mubr.f32.mxu1 %v3989_v3 }
 0x110   :  { %3348 = vmatmul.mubr.msk.f32.gmra.mrb[10].mxu0 %vm55_vm0, %v4861_v61  ;;  %3514 = vmatmul.mubr.msk.f32.gmra.mrb[10].mxu1 %vm55_vm0, %v4872_v59 }
 0x111   :  { %1398 = vmatprep.mubr.f32.mxu0 %v3989_v3  ;;  %2949 = vmatprep.mubr.f32.mxu1 %v3989_v3 }
 0x114   :  { %3349 = vmatmul.mubr.msk.f32.gmra.mrb[12].mxu0 %vm55_vm0, %v4877_v62  ;;  %3515 = vmatmul.mubr.msk.f32.gmra.mrb[12].mxu1 %vm55_vm0, %v4888_v63 }
 0x115   :  { %1404 = vmatprep.mubr.f32.mxu0 %v3989_v3  ;;  %2955 = vmatprep.mubr.f32.mxu1 %v3989_v3 }
 0x118   :  { %3350 = vmatmul.mubr.msk.f32.gmra.mrb[14].mxu0 %vm55_vm0, %v4893_v5  ;;  %3516 = vmatmul.mubr.msk.f32.gmra.mrb[14].mxu1 %vm55_vm0, %v4904_v6 }
 0x119   :  { %1410 = vmatprep.mubr.f32.mxu0 %v3989_v3  ;;  %2961 = vmatprep.mubr.f32.mxu1 %v3989_v3 }
 0x11c   :  { %3351 = vmatmul.mubr.msk.f32.gmra.mrb[16].mxu0 %vm55_vm0, %v4909_v0  ;;  %3517 = vmatmul.mubr.msk.f32.gmra.mrb[16].mxu1 %vm55_vm0, %v912_v1 }
 0x11d   :  { %1416 = vmatprep.mubr.f32.mxu0 %v3989_v3  ;;  %2967 = vmatprep.mubr.f32.mxu1 %v3989_v3 }
 0x120   :  { %3352 = vmatmul.mubr.msk.f32.gmra.mrb[18].mxu0 %vm55_vm0, %v4923_v2  ;;  %3518 = vmatmul.mubr.msk.f32.gmra.mrb[18].mxu1 %vm55_vm0, %v913_v4 }
 0x121   :  { %1422 = vmatprep.mubr.f32.mxu0 %v3989_v3  ;;  %2973 = vmatprep.mubr.f32.mxu1 %v3989_v3 }
 0x124   :  { %3353 = vmatmul.mubr.msk.f32.gmra.mrb[20].mxu0 %vm55_vm0, %v2466_v13  ;;  %3519 = vmatmul.mubr.msk.f32.gmra.mrb[20].mxu1 %vm55_vm0, %v914_v14 }
 0x125   :  { %1428 = vmatprep.mubr.f32.mxu0 %v3989_v3  ;;  %2979 = vmatprep.mubr.f32.mxu1 %v3989_v3 }
 0x128   :  { %3354 = vmatmul.mubr.msk.f32.gmra.mrb[22].mxu0 %vm55_vm0, %v2467_v7  ;;  %3520 = vmatmul.mubr.msk.f32.gmra.mrb[22].mxu1 %vm55_vm0, %v915_v8 }
 0x129   :  { %1434 = vmatprep.mubr.f32.mxu0 %v3989_v3  ;;  %2985 = vmatprep.mubr.f32.mxu1 %v3989_v3 }
 0x12c   :  { %3355 = vmatmul.mubr.msk.f32.gmra.mrb[24].mxu0 %vm55_vm0, %v4541_v24  ;;  %3521 = vmatmul.mubr.msk.f32.gmra.mrb[24].mxu1 %vm55_vm0, %v4702_v22  ;;  %v5046_v22 = vld [vmem:[%s5107_s3] ss:$0 sm:$0xff] }
 0x12d   :  { %1440 = vmatprep.mubr.f32.mxu0 %v3989_v3  ;;  %2991 = vmatprep.mubr.f32.mxu1 %v3989_v3 }
 0x130   :  { %3356 = vmatmul.mubr.msk.f32.gmra.mrb[26].mxu0 %vm55_vm0, %v2469_v9  ;;  %3522 = vmatmul.mubr.msk.f32.gmra.mrb[26].mxu1 %vm55_vm0, %v2782_v10 }
 0x1cf   :  { %v1364_v21 = vpop.f32.mrb[0].mxu0  ;;  %v2915_v25 = vpop.f32.mrb[0].mxu1 }
 0x1d0   :  { %v1366_v26 = vpop.f32.mrb[1].mxu0  ;;  %v2917_v27 = vpop.f32.mrb[1].mxu1 }
 0x1d1   :  { %v1559_v24 = vmax.f32 %v1364_v21, %v1366_v26  ;;  %v3110_v28 = vmax.f32 %v2915_v25, %v2917_v27 }
 0x1d3   :  { %v3124_v3 = vmax.f32 %v1559_v24, %v3110_v28  ;;  %v1370_v29 = vpop.f32.mrb[2].mxu0  ;;  %v2921_v30 = vpop.f32.mrb[2].mxu1 }
 0x1d4   :  { %v1372_v31 = vpop.f32.mrb[3].mxu0  ;;  %v2923_v32 = vpop.f32.mrb[3].mxu1 }
 0x1d5   :  { %v3145_v33 = vadd.f32 %v5046_v22, %v3124_v3  ;;  %v1560_v34 = vmax.f32 %v1370_v29, %v1372_v31  ;;  %v3111_v35 = vmax.f32 %v2921_v30, %v2923_v32 }
 0x1d7   :  { %v3159_v36 = vmax.f32 %v3145_v33, 0.0  ;;  %v3125_v37 = vmax.f32 %v1560_v34, %v3111_v35  ;;  %v1376_v38 = vpop.f32.mrb[4].mxu0  ;;  %v2927_v39 = vpop.f32.mrb[4].mxu1 }
 0x1d8   :  { %v1378_v40 = vpop.f32.mrb[5].mxu0  ;;  %v2929_v11 = vpop.f32.mrb[5].mxu1 }
 0x1d9   :  { %3173 = vst [vmem:[%s5108_s4] sm:$0xff] %v3159_v36  ;;  %v3146_v12 = vadd.f32 %v5046_v22, %v3125_v37  ;;  %v1561_v15 = vmax.f32 %v1376_v38, %v1378_v40  ;;  %v3112_v16 = vmax.f32 %v2927_v39, %v2929_v11 }
 0x1db   :  { %v3160_v17 = vmax.f32 %v3146_v12, 0.0  ;;  %v3126_v18 = vmax.f32 %v1561_v15, %v3112_v16  ;;  %v1382_v19 = vpop.f32.mrb[6].mxu0  ;;  %v2933_v20 = vpop.f32.mrb[6].mxu1 }
 0x1dc   :  { %v1384_v23 = vpop.f32.mrb[7].mxu0  ;;  %v2935_v41 = vpop.f32.mrb[7].mxu1 }
 0x1dd   :  { %3174 = vst [vmem:[%s5108_s4 + $0x8] sm:$0xff] %v3160_v17  ;;  %v3147_v42 = vadd.f32 %v5046_v22, %v3126_v18  ;;  %v1562_v43 = vmax.f32 %v1382_v19, %v1384_v23  ;;  %v3113_v44 = vmax.f32 %v2933_v20, %v2935_v41 }
 0x1df   :  { %v3161_v46 = vmax.f32 %v3147_v42, 0.0  ;;  %v3127_v47 = vmax.f32 %v1562_v43, %v3113_v44  ;;  %v1388_v48 = vpop.f32.mrb[8].mxu0  ;;  %v2939_v49 = vpop.f32.mrb[8].mxu1 }
 0x1e0   :  { %v1390_v50 = vpop.f32.mrb[9].mxu0  ;;  %v2941_v51 = vpop.f32.mrb[9].mxu1 }
 0x1e1   :  { %3175 = vst [vmem:[%s5108_s4 + $0x10] sm:$0xff] %v3161_v46  ;;  %v3148_v54 = vadd.f32 %v5046_v22, %v3127_v47  ;;  %v1563_v52 = vmax.f32 %v1388_v48, %v1390_v50  ;;  %v3114_v53 = vmax.f32 %v2939_v49, %v2941_v51 }
 0x1e3   :  { %v3162_v45 = vmax.f32 %v3148_v54, 0.0  ;;  %v3128_v55 = vmax.f32 %v1563_v52, %v3114_v53  ;;  %v1394_v56 = vpop.f32.mrb[10].mxu0  ;;  %v2945_v57 = vpop.f32.mrb[10].mxu1 }
 0x1e4   :  { %v1396_v60 = vpop.f32.mrb[11].mxu0  ;;  %v2947_v61 = vpop.f32.mrb[11].mxu1 }
 0x1e5   :  { %3176 = vst [vmem:[%s5108_s4 + $0x18] sm:$0xff] %v3162_v45  ;;  %v3149_v58 = vadd.f32 %v5046_v22, %v3128_v55  ;;  %v1564_v59 = vmax.f32 %v1394_v56, %v1396_v60  ;;  %v3115_v62 = vmax.f32 %v2945_v57, %v2947_v61 }
 0x1e7   :  { %v3163_v63 = vmax.f32 %v3149_v58, 0.0  ;;  %v3129_v5 = vmax.f32 %v1564_v59, %v3115_v62  ;;  %v1400_v6 = vpop.f32.mrb[12].mxu0  ;;  %v2951_v0 = vpop.f32.mrb[12].mxu1 }
 0x1e8   :  { %v1402_v1 = vpop.f32.mrb[13].mxu0  ;;  %v2953_v2 = vpop.f32.mrb[13].mxu1 }
 0x1e9   :  { %3177 = vst [vmem:[%s5108_s4 + $0x20] sm:$0xff] %v3163_v63  ;;  %v3150_v4 = vadd.f32 %v5046_v22, %v3129_v5  ;;  %v1565_v13 = vmax.f32 %v1400_v6, %v1402_v1  ;;  %v3116_v14 = vmax.f32 %v2951_v0, %v2953_v2 }
 0x1eb   :  { %v3164_v7 = vmax.f32 %v3150_v4, 0.0  ;;  %v3130_v8 = vmax.f32 %v1565_v13, %v3116_v14  ;;  %v1406_v9 = vpop.f32.mrb[14].mxu0  ;;  %v2957_v10 = vpop.f32.mrb[14].mxu1 }
 0x1ec   :  { %v1408_v21 = vpop.f32.mrb[15].mxu0  ;;  %v2959_v25 = vpop.f32.mrb[15].mxu1 }
 0x1ed   :  { %3178 = vst [vmem:[%s5108_s4 + $0x28] sm:$0xff] %v3164_v7  ;;  %v3151_v26 = vadd.f32 %v5046_v22, %v3130_v8  ;;  %v1566_v27 = vmax.f32 %v1406_v9, %v1408_v21  ;;  %v3117_v24 = vmax.f32 %v2957_v10, %v2959_v25 }
 0x1ef   :  { %v3165_v28 = vmax.f32 %v3151_v26, 0.0  ;;  %v3131_v3 = vmax.f32 %v1566_v27, %v3117_v24  ;;  %v1412_v29 = vpop.f32.mrb[16].mxu0  ;;  %v2963_v30 = vpop.f32.mrb[16].mxu1 }
 0x1f0   :  { %v1414_v31 = vpop.f32.mrb[17].mxu0  ;;  %v2965_v32 = vpop.f32.mrb[17].mxu1 }
 0x1f1   :  { %3179 = vst [vmem:[%s5108_s4 + $0x30] sm:$0xff] %v3165_v28  ;;  %v3152_v33 = vadd.f32 %v5046_v22, %v3131_v3  ;;  %v1567_v34 = vmax.f32 %v1412_v29, %v1414_v31  ;;  %v3118_v35 = vmax.f32 %v2963_v30, %v2965_v32 }
 0x1f3   :  { %v3166_v36 = vmax.f32 %v3152_v33, 0.0  ;;  %v3132_v37 = vmax.f32 %v1567_v34, %v3118_v35  ;;  %v1418_v38 = vpop.f32.mrb[18].mxu0  ;;  %v2969_v39 = vpop.f32.mrb[18].mxu1 }
 0x1f4   :  { %v1420_v40 = vpop.f32.mrb[19].mxu0  ;;  %v2971_v11 = vpop.f32.mrb[19].mxu1 }
 0x1f5   :  { %3180 = vst [vmem:[%s5108_s4 + $0x38] sm:$0xff] %v3166_v36  ;;  %v3153_v12 = vadd.f32 %v5046_v22, %v3132_v37  ;;  %v1568_v15 = vmax.f32 %v1418_v38, %v1420_v40  ;;  %v3119_v16 = vmax.f32 %v2969_v39, %v2971_v11 }
 0x1f7   :  { %v3167_v17 = vmax.f32 %v3153_v12, 0.0  ;;  %v3133_v18 = vmax.f32 %v1568_v15, %v3119_v16  ;;  %v1424_v19 = vpop.f32.mrb[20].mxu0  ;;  %v2975_v20 = vpop.f32.mrb[20].mxu1 }
 0x1f8   :  { %v1426_v23 = vpop.f32.mrb[21].mxu0  ;;  %v2977_v41 = vpop.f32.mrb[21].mxu1 }
 0x1f9   :  { %3181 = vst [vmem:[%s5108_s4 + $0x40] sm:$0xff] %v3167_v17  ;;  %v3154_v42 = vadd.f32 %v5046_v22, %v3133_v18  ;;  %v1569_v43 = vmax.f32 %v1424_v19, %v1426_v23  ;;  %v3120_v44 = vmax.f32 %v2975_v20, %v2977_v41 }
 0x1fb   :  { %v3168_v46 = vmax.f32 %v3154_v42, 0.0  ;;  %v3134_v47 = vmax.f32 %v1569_v43, %v3120_v44  ;;  %v1430_v48 = vpop.f32.mrb[22].mxu0  ;;  %v2981_v49 = vpop.f32.mrb[22].mxu1 }
 0x1fc   :  { %v1432_v50 = vpop.f32.mrb[23].mxu0  ;;  %v2983_v51 = vpop.f32.mrb[23].mxu1 }
 0x1fd   :  { %3182 = vst [vmem:[%s5108_s4 + $0x48] sm:$0xff] %v3168_v46  ;;  %v3155_v54 = vadd.f32 %v5046_v22, %v3134_v47  ;;  %v1570_v52 = vmax.f32 %v1430_v48, %v1432_v50  ;;  %v3121_v53 = vmax.f32 %v2981_v49, %v2983_v51 }
 0x1ff   :  { %v3169_v45 = vmax.f32 %v3155_v54, 0.0  ;;  %v3135_v55 = vmax.f32 %v1570_v52, %v3121_v53  ;;  %v1436_v56 = vpop.f32.mrb[24].mxu0  ;;  %v2987_v57 = vpop.f32.mrb[24].mxu1 }
 0x200   :  { %v1438_v60 = vpop.f32.mrb[25].mxu0  ;;  %v2989_v61 = vpop.f32.mrb[25].mxu1 }
 0x201   :  { %3183 = vst [vmem:[%s5108_s4 + $0x50] sm:$0xff] %v3169_v45  ;;  %v3156_v58 = vadd.f32 %v5046_v22, %v3135_v55  ;;  %v1571_v59 = vmax.f32 %v1436_v56, %v1438_v60  ;;  %v3122_v62 = vmax.f32 %v2987_v57, %v2989_v61 }
 0x203   :  { %v3170_v63 = vmax.f32 %v3156_v58, 0.0  ;;  %v3136_v5 = vmax.f32 %v1571_v59, %v3122_v62  ;;  %v1442_v6 = vpop.f32.mrb[26].mxu0  ;;  %v2993_v0 = vpop.f32.mrb[26].mxu1 }
 0x204   :  { %v1444_v1 = vpop.f32.mrb[27].mxu0  ;;  %v2995_v2 = vpop.f32.mrb[27].mxu1 }
 0x205   :  { %3184 = vst [vmem:[%s5108_s4 + $0x58] sm:$0xff] %v3170_v63  ;;  %v3157_v4 = vadd.f32 %v5046_v22, %v3136_v5  ;;  %v1572_v13 = vmax.f32 %v1442_v6, %v1444_v1  ;;  %v3123_v14 = vmax.f32 %v2993_v0, %v2995_v2 }
 0x207   :  { %v3171_v7 = vmax.f32 %v3157_v4, 0.0  ;;  %v3137_v8 = vmax.f32 %v1572_v13, %v3123_v14 }
 0x209   :  { %3185 = vst [vmem:[%s5108_s4 + $0x60] sm:$0xff] %v3171_v7  ;;  %v3158_v9 = vadd.f32 %v5046_v22, %v3137_v8 }
 0x20b   :  { %v3172_v10 = vmax.f32 %v3158_v9, 0.0 }
 0x20d   :  { %3186 = vst [vmem:[%s5108_s4 + $0x68] sm:$0xff] %v3172_v10 }

</bundles_post_ra>
